<compile_context>
chip_gen: v5e
topology: v5e:2x2
jax: 0.10.0
libtpu: 0.0.40
codegen_flags: <defaults>
</compile_context>

<pallas_src>
import jax
import jax.numpy as jnp
from jax import lax
from jax.experimental import pallas as pl
from jax.experimental.pallas import tpu as pltpu

NEG_SLOPE = 0.2       # LeakyReLU slope in GAT attention
NEG_INF = -1e9        # additive mask value for non-edges / cross-graph pairs
NORM_EPS = 1e-12      # F.normalize eps

# (v_feats_in, filters, heads) for conv1/conv2/conv3
LAYERS = ((11, 16, 6), (16 * 6, 32, 6), (32 * 6, 64, 6))
D_OUT = LAYERS[-1][1] * LAYERS[-1][2]      # 384 = per-graph pooled feature width


def _floordiv_const(idx, size):
    """idx // size for an int32 array with a static positive Python int `size`."""
    if size & (size - 1) == 0:                       # power of two -> shift (VPU-safe)
        return idx >> (size.bit_length() - 1)
    return idx // size


# ----------------------------------------------------------------------------
# One multi-head GAT layer on the 2-graph batched node matrix (values only).
#   x:(2N,Fin)  bias:(2N,2N)  w_all:(Fin,H*F)  a_src:(Fin,H)  a_dst:(H,Fin)
# ----------------------------------------------------------------------------
def _gat_layer(x, bias, w_all, a_src, a_dst, heads, filt):
    n2 = x.shape[0]
    hf = heads * filt

    # Batched projection for all heads + folded attention scores (3 MXU ops).
    hh = jnp.dot(x, w_all, preferred_element_type=jnp.float32)        # (2N, H*F)
    src = jnp.dot(x, a_src, preferred_element_type=jnp.float32)       # (2N, H)
    dst_t = lax.dot_general(a_dst, x, (((1,), (1,)), ((), ())),
                            preferred_element_type=jnp.float32)       # (H, 2N)

    # Per-head masked softmax: short static unroll (H=6); each head's block is
    # a few vregs at 2N=32 and the heads are independent, so the scheduler can
    # interleave their VPU/XLU/EUP chains.
    alphas = []
    for hd in range(heads):
        e = src[:, hd:hd + 1] + dst_t[hd:hd + 1, :]                   # (2N, 2N)
        e = jnp.where(e > 0, e, NEG_SLOPE * e) + bias                 # LeakyReLU + bias
        m = jnp.max(e, axis=1, keepdims=True)
        p = jnp.exp(e - m)                                            # non-edges underflow to 0
        denom = jnp.maximum(jnp.sum(p, axis=1, keepdims=True),
                            jnp.float32(1e-20))                       # robustness guard
        alphas.append(p * pl.reciprocal(denom, approx=True))          # EUP divide
    a_all = jnp.concatenate(alphas, axis=1)                           # (2N, H*2N)

    # Scatter hh into a block-diagonal RHS so all per-head aggregations become
    # ONE lane-dense MXU op whose result is already the head-concatenated
    # layer output.
    hh_rep = jnp.concatenate([hh] * heads, axis=0)                    # (H*2N, H*F)
    row_head = _floordiv_const(
        lax.broadcasted_iota(jnp.int32, (heads * n2, hf), 0), n2)
    col_head = _floordiv_const(
        lax.broadcasted_iota(jnp.int32, (heads * n2, hf), 1), filt)
    b_diag = jnp.where(row_head == col_head, hh_rep, jnp.float32(0.0))
    agg = jnp.dot(a_all, b_diag, preferred_element_type=jnp.float32)  # (2N, H*F)

    # ELU (clamp the exp argument so the discarded branch stays finite).
    return jnp.where(agg > 0, agg, jnp.exp(jnp.minimum(agg, 0.0)) - 1.0)


# ----------------------------------------------------------------------------
# Fully fused kernel: bias build + 3 DGAT layers + pooling + L2-norm + Dense.
# Single grid step; both graphs batched along the node (sublane) axis.
# ----------------------------------------------------------------------------
def _gnn35_kernel(x_ref, adj_ref,
                  w1_ref, s1_ref, d1_ref,
                  w2_ref, s2_ref, d2_ref,
                  w3_ref, s3_ref, d3_ref,
                  wd_ref, bd_ref,
                  o_ref):
    ng, n, _ = x_ref.shape

    # Stack the two graphs along the node axis: (2N, Fin0).
    x = jnp.concatenate([x_ref[g] for g in range(ng)], axis=0)

    # Block-diagonal additive attention bias: 0 on edges within a graph,
    # -1e9 on non-edges and on all cross-graph pairs.
    off_block = jnp.full((n, n), jnp.float32(NEG_INF))
    rows = []
    for g in range(ng):
        blocks = []
        for gg in range(ng):
            if gg == g:
                blocks.append(jnp.where(adj_ref[g] > 0.0,
                                        jnp.float32(0.0), jnp.float32(NEG_INF)))
            else:
                blocks.append(off_block)
        rows.append(jnp.concatenate(blocks, axis=1))
    bias = jnp.concatenate(rows, axis=0)                              # (2N, 2N)

    # Three DGAT layers back-to-back; intermediates never leave VMEM/vregs.
    h = x
    layer_refs = ((w1_ref, s1_ref, d1_ref),
                  (w2_ref, s2_ref, d2_ref),
                  (w3_ref, s3_ref, d3_ref))
    for (_, filt, heads), (w_r, s_r, d_r) in zip(LAYERS, layer_refs):
        h = _gat_layer(h, bias, w_r[...], s_r[...], d_r[...], heads, filt)

    # Readout fused in-kernel: per-graph node-sum pooling, joint L2 normalize
    # of the concatenated 768-vector, Dense(768 -> 1).
    pooled_int = jnp.sum(h[:n, :], axis=0, keepdims=True)             # (1, D_OUT)
    pooled_nh = jnp.sum(h[n:, :], axis=0, keepdims=True)              # (1, D_OUT)
    w_int = wd_ref[0:1, :]
    w_nh = wd_ref[1:2, :]
    sq = (jnp.sum(pooled_int * pooled_int, axis=1, keepdims=True)
          + jnp.sum(pooled_nh * pooled_nh, axis=1, keepdims=True))    # (1, 1)
    dotv = (jnp.sum(pooled_int * w_int, axis=1, keepdims=True)
            + jnp.sum(pooled_nh * w_nh, axis=1, keepdims=True))       # (1, 1)
    # 1 / max(||v||, eps)  ==  rsqrt(max(||v||^2, eps^2))  -> EUP rsqrt
    inv = lax.rsqrt(jnp.maximum(sq, jnp.float32(NORM_EPS * NORM_EPS)))
    o_ref[...] = dotv * inv + bd_ref[...]


# ----------------------------------------------------------------------------
# Parameters (torch-like per-head form) and one-time weight folding (NOT jitted
# into the forward — hoisted per perf review).
# ----------------------------------------------------------------------------
def init_params(key):
    params = {"convs": []}
    for (fin, filt, heads) in LAYERS:
        key, kw, ks, kd = jax.random.split(key, 4)
        params["convs"].append({
            "w": jax.random.normal(kw, (heads, fin, filt), jnp.float32)
                 / jnp.sqrt(jnp.float32(fin)),
            "a_src": jax.random.normal(ks, (heads, 1, filt), jnp.float32)
                     / jnp.sqrt(jnp.float32(filt)),
            "a_dst": jax.random.normal(kd, (heads, 1, filt), jnp.float32)
                     / jnp.sqrt(jnp.float32(filt)),
        })
    key, kw, kb = jax.random.split(key, 3)
    d_in = 2 * D_OUT
    params["dense"] = {
        "w": jax.random.normal(kw, (1, d_in), jnp.float32)
             / jnp.sqrt(jnp.float32(d_in)),
        "b": jnp.zeros((1, 1), jnp.float32),
    }
    return params


def fold_params(params):
    """Per layer: (Fin,H*F) batched projection, (Fin,H) src proj, (H,Fin) dst
    proj; plus the dense weight reshaped to (2, 384) [row0=int, row1=nh]."""
    folded = []
    for (fin, filt, heads), p in zip(LAYERS, params["convs"]):
        w_all = jnp.transpose(p["w"], (1, 0, 2)).reshape(fin, heads * filt)
        a_src = jnp.einsum("hif,hf->ih", p["w"], p["a_src"][:, 0, :])   # (Fin, H)
        a_dst = jnp.einsum("hif,hf->hi", p["w"], p["a_dst"][:, 0, :])   # (H, Fin)
        folded += [w_all, a_src, a_dst]
    folded.append(params["dense"]["w"].reshape(2, D_OUT))
    folded.append(params["dense"]["b"].reshape(1, 1))
    return tuple(folded)


# ----------------------------------------------------------------------------
# Full forward: exactly ONE pallas_call (no wrapper-side compute except the
# final (1,1)->(1,) reshape).
# ----------------------------------------------------------------------------
def gnn35_forward(folded, x_pair, adj_pair):
    """x_pair:(2,N,11)  adj_pair:(2,N,N)  ->  (1,) prediction."""
    ng, n, fin0 = x_pair.shape
    in_specs = [pl.BlockSpec((ng, n, fin0), lambda i: (0, 0, 0)),
                pl.BlockSpec((ng, n, n), lambda i: (0, 0, 0))]
    in_specs += [pl.BlockSpec(f.shape, lambda i: (0, 0)) for f in folded]
    out = pl.pallas_call(
        _gnn35_kernel,
        out_shape=jax.ShapeDtypeStruct((1, 1), jnp.float32),
        grid=(1,),                                   # single step, both graphs batched
        in_specs=in_specs,
        out_specs=pl.BlockSpec((1, 1), lambda i: (0, 0)),
        compiler_params=pltpu.CompilerParams(
            dimension_semantics=("arbitrary",)),
    )(x_pair, adj_pair, *folded)
    return out.reshape(1)                            # torch.squeeze(x, 1)


if __name__ == "__main__":
    N = 16  # number of graph nodes (small synthetic graph)
    key = jax.random.PRNGKey(0)
    key, k1, k2, k3, k4 = jax.random.split(key, 5)

    x_int = jax.random.normal(k1, (N, 11), jnp.float32)
    x_nh = jax.random.normal(k2, (N, 11), jnp.float32)

    def make_adj(k):
        a = (jax.random.uniform(k, (N, N)) < 0.3).astype(jnp.float32)
        a = jnp.maximum(a, a.T)                      # symmetric
        return jnp.minimum(a + jnp.eye(N, dtype=jnp.float32), 1.0)  # self-loops

    adj_int = make_adj(k3)
    adj_nh = make_adj(k4)

    x_pair = jnp.stack([x_int, x_nh], axis=0)        # (2, N, 11)  == torch input x
    adj_pair = jnp.stack([adj_int, adj_nh], axis=0)  # (2, N, N)

    params = init_params(key)
    folded = fold_params(params)                     # one-time, outside the jit

    fwd = jax.jit(gnn35_forward)
    out = fwd(folded, x_pair, adj_pair)
    out = jax.block_until_ready(out)
    assert out.shape == (1,) and bool(jnp.isfinite(out).all())
    print("KERNEL_OK")
</pallas_src>

<mosaic_0001>
module attributes {stable_mosaic.version = 11 : i64} {
  func.func @_gnn35_kernel(%arg0: i32, %arg1: memref<2x16x11xf32, #tpu.memory_space<vmem>>, %arg2: memref<2x16x16xf32, #tpu.memory_space<vmem>>, %arg3: memref<11x96xf32, #tpu.memory_space<vmem>>, %arg4: memref<11x6xf32, #tpu.memory_space<vmem>>, %arg5: memref<6x11xf32, #tpu.memory_space<vmem>>, %arg6: memref<96x192xf32, #tpu.memory_space<vmem>>, %arg7: memref<96x6xf32, #tpu.memory_space<vmem>>, %arg8: memref<6x96xf32, #tpu.memory_space<vmem>>, %arg9: memref<192x384xf32, #tpu.memory_space<vmem>>, %arg10: memref<192x6xf32, #tpu.memory_space<vmem>>, %arg11: memref<6x192xf32, #tpu.memory_space<vmem>>, %arg12: memref<2x384xf32, #tpu.memory_space<vmem>>, %arg13: memref<1x1xf32, #tpu.memory_space<vmem>>, %arg14: memref<1x1xf32, #tpu.memory_space<vmem>>) attributes {dimension_semantics = [#tpu.dimension_semantics<arbitrary>], iteration_bounds = array<i64: 1>, scalar_prefetch = 0 : i64, scratch_operands = 0 : i64, tpu.core_type = #tpu.core_type<tc>, window_params = [{pipeline_mode = #tpu.pipeline_mode<synchronous>, transform_indices = @transform_0, window_bounds = array<i64: 2, 16, 11>}, {pipeline_mode = #tpu.pipeline_mode<synchronous>, transform_indices = @transform_1, window_bounds = array<i64: 2, 16, 16>}, {pipeline_mode = #tpu.pipeline_mode<synchronous>, transform_indices = @transform_2, window_bounds = array<i64: 11, 96>}, {pipeline_mode = #tpu.pipeline_mode<synchronous>, transform_indices = @transform_3, window_bounds = array<i64: 11, 6>}, {pipeline_mode = #tpu.pipeline_mode<synchronous>, transform_indices = @transform_4, window_bounds = array<i64: 6, 11>}, {pipeline_mode = #tpu.pipeline_mode<synchronous>, transform_indices = @transform_5, window_bounds = array<i64: 96, 192>}, {pipeline_mode = #tpu.pipeline_mode<synchronous>, transform_indices = @transform_6, window_bounds = array<i64: 96, 6>}, {pipeline_mode = #tpu.pipeline_mode<synchronous>, transform_indices = @transform_7, window_bounds = array<i64: 6, 96>}, {pipeline_mode = #tpu.pipeline_mode<synchronous>, transform_indices = @transform_8, window_bounds = array<i64: 192, 384>}, {pipeline_mode = #tpu.pipeline_mode<synchronous>, transform_indices = @transform_9, window_bounds = array<i64: 192, 6>}, {pipeline_mode = #tpu.pipeline_mode<synchronous>, transform_indices = @transform_10, window_bounds = array<i64: 6, 192>}, {pipeline_mode = #tpu.pipeline_mode<synchronous>, transform_indices = @transform_11, window_bounds = array<i64: 2, 384>}, {pipeline_mode = #tpu.pipeline_mode<synchronous>, transform_indices = @transform_12, window_bounds = array<i64: 1, 1>}, {pipeline_mode = #tpu.pipeline_mode<synchronous>, transform_indices = @transform_13, window_bounds = array<i64: 1, 1>}]} {
    %c0 = arith.constant 0 : index
    %c0_0 = arith.constant 0 : index
    %c0_1 = arith.constant 0 : index
    %0 = vector.load %arg1[%c0, %c0_0, %c0_1] : memref<2x16x11xf32, #tpu.memory_space<vmem>>, vector<1x16x11xf32>
    %1 = vector.shape_cast %0 : vector<1x16x11xf32> to vector<16x11xf32>
    %c1 = arith.constant 1 : index
    %c0_2 = arith.constant 0 : index
    %c0_3 = arith.constant 0 : index
    %2 = vector.load %arg1[%c1, %c0_2, %c0_3] : memref<2x16x11xf32, #tpu.memory_space<vmem>>, vector<1x16x11xf32>
    %3 = vector.shape_cast %2 : vector<1x16x11xf32> to vector<16x11xf32>
    %4 = tpu.concatenate %1, %3 in 0 : vector<16x11xf32>, vector<16x11xf32> -> vector<32x11xf32>
    %cst = arith.constant -1.000000e+09 : f32
    %5 = vector.broadcast %cst : f32 to vector<16x16xf32>
    %c0_4 = arith.constant 0 : index
    %c0_5 = arith.constant 0 : index
    %c0_6 = arith.constant 0 : index
    %6 = vector.load %arg2[%c0_4, %c0_5, %c0_6] : memref<2x16x16xf32, #tpu.memory_space<vmem>>, vector<1x16x16xf32>
    %7 = vector.shape_cast %6 : vector<1x16x16xf32> to vector<16x16xf32>
    %cst_7 = arith.constant 0.000000e+00 : f32
    %8 = vector.broadcast %cst_7 : f32 to vector<16x16xf32>
    %9 = arith.cmpf ogt, %7, %8 : vector<16x16xf32>
    %cst_8 = arith.constant 0.000000e+00 : f32
    %cst_9 = arith.constant -1.000000e+09 : f32
    %10 = vector.broadcast %cst_8 : f32 to vector<16x16xf32>
    %11 = vector.broadcast %cst_9 : f32 to vector<16x16xf32>
    %12 = arith.select %9, %10, %11 : vector<16x16xi1>, vector<16x16xf32>
    %13 = tpu.concatenate %12, %5 in 1 : vector<16x16xf32>, vector<16x16xf32> -> vector<16x32xf32>
    %c1_10 = arith.constant 1 : index
    %c0_11 = arith.constant 0 : index
    %c0_12 = arith.constant 0 : index
    %14 = vector.load %arg2[%c1_10, %c0_11, %c0_12] : memref<2x16x16xf32, #tpu.memory_space<vmem>>, vector<1x16x16xf32>
    %15 = vector.shape_cast %14 : vector<1x16x16xf32> to vector<16x16xf32>
    %cst_13 = arith.constant 0.000000e+00 : f32
    %16 = vector.broadcast %cst_13 : f32 to vector<16x16xf32>
    %17 = arith.cmpf ogt, %15, %16 : vector<16x16xf32>
    %cst_14 = arith.constant 0.000000e+00 : f32
    %cst_15 = arith.constant -1.000000e+09 : f32
    %18 = vector.broadcast %cst_14 : f32 to vector<16x16xf32>
    %19 = vector.broadcast %cst_15 : f32 to vector<16x16xf32>
    %20 = arith.select %17, %18, %19 : vector<16x16xi1>, vector<16x16xf32>
    %21 = tpu.concatenate %5, %20 in 1 : vector<16x16xf32>, vector<16x16xf32> -> vector<16x32xf32>
    %22 = tpu.concatenate %13, %21 in 0 : vector<16x32xf32>, vector<16x32xf32> -> vector<32x32xf32>
    %c0_16 = arith.constant 0 : index
    %c0_17 = arith.constant 0 : index
    %23 = vector.load %arg3[%c0_16, %c0_17] : memref<11x96xf32, #tpu.memory_space<vmem>>, vector<11x96xf32>
    %c0_18 = arith.constant 0 : index
    %c0_19 = arith.constant 0 : index
    %24 = vector.load %arg4[%c0_18, %c0_19] : memref<11x6xf32, #tpu.memory_space<vmem>>, vector<11x6xf32>
    %c0_20 = arith.constant 0 : index
    %c0_21 = arith.constant 0 : index
    %25 = vector.load %arg5[%c0_20, %c0_21] : memref<6x11xf32, #tpu.memory_space<vmem>>, vector<6x11xf32>
    %cst_22 = arith.constant dense<0.000000e+00> : vector<32x96xf32>
    %26 = tpu.matmul %4, %23, %cst_22 {dimension_numbers = #tpu.dot_dimension_numbers<[1], [0], [0], [1], [0, 0, 1, 1], [], []>} : vector<32x11xf32>, vector<11x96xf32>, vector<32x96xf32> -> vector<32x96xf32>
    %cst_23 = arith.constant dense<0.000000e+00> : vector<32x6xf32>
    %27 = tpu.matmul %4, %24, %cst_23 {dimension_numbers = #tpu.dot_dimension_numbers<[1], [0], [0], [1], [0, 0, 1, 1], [], []>} : vector<32x11xf32>, vector<11x6xf32>, vector<32x6xf32> -> vector<32x6xf32>
    %cst_24 = arith.constant dense<0.000000e+00> : vector<6x32xf32>
    %28 = tpu.matmul %25, %4, %cst_24 {dimension_numbers = #tpu.dot_dimension_numbers<[1], [1], [0], [0], [0, 0, 1, 0], [], []>} : vector<6x11xf32>, vector<32x11xf32>, vector<6x32xf32> -> vector<6x32xf32>
    %29 = vector.extract_strided_slice %27 {offsets = [0, 0], sizes = [32, 1], strides = [1, 1]} : vector<32x6xf32> to vector<32x1xf32>
    %30 = vector.extract_strided_slice %28 {offsets = [0, 0], sizes = [1, 32], strides = [1, 1]} : vector<6x32xf32> to vector<1x32xf32>
    %31 = vector.broadcast %29 : vector<32x1xf32> to vector<32x32xf32>
    %32 = vector.broadcast %30 : vector<1x32xf32> to vector<32x32xf32>
    %33 = arith.addf %31, %32 : vector<32x32xf32>
    %cst_25 = arith.constant 0.000000e+00 : f32
    %34 = vector.broadcast %cst_25 : f32 to vector<32x32xf32>
    %35 = arith.cmpf ogt, %33, %34 : vector<32x32xf32>
    %cst_26 = arith.constant 2.000000e-01 : f32
    %36 = vector.broadcast %cst_26 : f32 to vector<32x32xf32>
    %37 = arith.mulf %36, %33 : vector<32x32xf32>
    %38 = arith.select %35, %33, %37 : vector<32x32xi1>, vector<32x32xf32>
    %39 = arith.addf %38, %22 : vector<32x32xf32>
    %cst_27 = arith.constant dense<0xFF800000> : vector<32xf32>
    %40 = vector.multi_reduction <maximumf>, %39, %cst_27 [1] : vector<32x32xf32> to vector<32xf32>
    %41 = vector.shape_cast %40 : vector<32xf32> to vector<32x1xf32>
    %42 = vector.broadcast %41 : vector<32x1xf32> to vector<32x32xf32>
    %43 = arith.subf %39, %42 : vector<32x32xf32>
    %44 = math.exp %43 : vector<32x32xf32>
    %cst_28 = arith.constant dense<0.000000e+00> : vector<32xf32>
    %45 = vector.multi_reduction <add>, %44, %cst_28 [1] : vector<32x32xf32> to vector<32xf32>
    %46 = vector.shape_cast %45 : vector<32xf32> to vector<32x1xf32>
    %cst_29 = arith.constant 9.99999968E-21 : f32
    %47 = vector.broadcast %cst_29 : f32 to vector<32x1xf32>
    %48 = arith.maximumf %46, %47 : vector<32x1xf32>
    %49 = tpu.reciprocal %48 {approx = true} : vector<32x1xf32> -> vector<32x1xf32>
    %50 = vector.broadcast %49 : vector<32x1xf32> to vector<32x32xf32>
    %51 = arith.mulf %44, %50 : vector<32x32xf32>
    %52 = vector.extract_strided_slice %27 {offsets = [0, 1], sizes = [32, 1], strides = [1, 1]} : vector<32x6xf32> to vector<32x1xf32>
    %53 = vector.extract_strided_slice %28 {offsets = [1, 0], sizes = [1, 32], strides = [1, 1]} : vector<6x32xf32> to vector<1x32xf32>
    %54 = vector.broadcast %52 : vector<32x1xf32> to vector<32x32xf32>
    %55 = vector.broadcast %53 : vector<1x32xf32> to vector<32x32xf32>
    %56 = arith.addf %54, %55 : vector<32x32xf32>
    %cst_30 = arith.constant 0.000000e+00 : f32
    %57 = vector.broadcast %cst_30 : f32 to vector<32x32xf32>
    %58 = arith.cmpf ogt, %56, %57 : vector<32x32xf32>
    %cst_31 = arith.constant 2.000000e-01 : f32
    %59 = vector.broadcast %cst_31 : f32 to vector<32x32xf32>
    %60 = arith.mulf %59, %56 : vector<32x32xf32>
    %61 = arith.select %58, %56, %60 : vector<32x32xi1>, vector<32x32xf32>
    %62 = arith.addf %61, %22 : vector<32x32xf32>
    %cst_32 = arith.constant dense<0xFF800000> : vector<32xf32>
    %63 = vector.multi_reduction <maximumf>, %62, %cst_32 [1] : vector<32x32xf32> to vector<32xf32>
    %64 = vector.shape_cast %63 : vector<32xf32> to vector<32x1xf32>
    %65 = vector.broadcast %64 : vector<32x1xf32> to vector<32x32xf32>
    %66 = arith.subf %62, %65 : vector<32x32xf32>
    %67 = math.exp %66 : vector<32x32xf32>
    %cst_33 = arith.constant dense<0.000000e+00> : vector<32xf32>
    %68 = vector.multi_reduction <add>, %67, %cst_33 [1] : vector<32x32xf32> to vector<32xf32>
    %69 = vector.shape_cast %68 : vector<32xf32> to vector<32x1xf32>
    %cst_34 = arith.constant 9.99999968E-21 : f32
    %70 = vector.broadcast %cst_34 : f32 to vector<32x1xf32>
    %71 = arith.maximumf %69, %70 : vector<32x1xf32>
    %72 = tpu.reciprocal %71 {approx = true} : vector<32x1xf32> -> vector<32x1xf32>
    %73 = vector.broadcast %72 : vector<32x1xf32> to vector<32x32xf32>
    %74 = arith.mulf %67, %73 : vector<32x32xf32>
    %75 = vector.extract_strided_slice %27 {offsets = [0, 2], sizes = [32, 1], strides = [1, 1]} : vector<32x6xf32> to vector<32x1xf32>
    %76 = vector.extract_strided_slice %28 {offsets = [2, 0], sizes = [1, 32], strides = [1, 1]} : vector<6x32xf32> to vector<1x32xf32>
    %77 = vector.broadcast %75 : vector<32x1xf32> to vector<32x32xf32>
    %78 = vector.broadcast %76 : vector<1x32xf32> to vector<32x32xf32>
    %79 = arith.addf %77, %78 : vector<32x32xf32>
    %cst_35 = arith.constant 0.000000e+00 : f32
    %80 = vector.broadcast %cst_35 : f32 to vector<32x32xf32>
    %81 = arith.cmpf ogt, %79, %80 : vector<32x32xf32>
    %cst_36 = arith.constant 2.000000e-01 : f32
    %82 = vector.broadcast %cst_36 : f32 to vector<32x32xf32>
    %83 = arith.mulf %82, %79 : vector<32x32xf32>
    %84 = arith.select %81, %79, %83 : vector<32x32xi1>, vector<32x32xf32>
    %85 = arith.addf %84, %22 : vector<32x32xf32>
    %cst_37 = arith.constant dense<0xFF800000> : vector<32xf32>
    %86 = vector.multi_reduction <maximumf>, %85, %cst_37 [1] : vector<32x32xf32> to vector<32xf32>
    %87 = vector.shape_cast %86 : vector<32xf32> to vector<32x1xf32>
    %88 = vector.broadcast %87 : vector<32x1xf32> to vector<32x32xf32>
    %89 = arith.subf %85, %88 : vector<32x32xf32>
    %90 = math.exp %89 : vector<32x32xf32>
    %cst_38 = arith.constant dense<0.000000e+00> : vector<32xf32>
    %91 = vector.multi_reduction <add>, %90, %cst_38 [1] : vector<32x32xf32> to vector<32xf32>
    %92 = vector.shape_cast %91 : vector<32xf32> to vector<32x1xf32>
    %cst_39 = arith.constant 9.99999968E-21 : f32
    %93 = vector.broadcast %cst_39 : f32 to vector<32x1xf32>
    %94 = arith.maximumf %92, %93 : vector<32x1xf32>
    %95 = tpu.reciprocal %94 {approx = true} : vector<32x1xf32> -> vector<32x1xf32>
    %96 = vector.broadcast %95 : vector<32x1xf32> to vector<32x32xf32>
    %97 = arith.mulf %90, %96 : vector<32x32xf32>
    %98 = vector.extract_strided_slice %27 {offsets = [0, 3], sizes = [32, 1], strides = [1, 1]} : vector<32x6xf32> to vector<32x1xf32>
    %99 = vector.extract_strided_slice %28 {offsets = [3, 0], sizes = [1, 32], strides = [1, 1]} : vector<6x32xf32> to vector<1x32xf32>
    %100 = vector.broadcast %98 : vector<32x1xf32> to vector<32x32xf32>
    %101 = vector.broadcast %99 : vector<1x32xf32> to vector<32x32xf32>
    %102 = arith.addf %100, %101 : vector<32x32xf32>
    %cst_40 = arith.constant 0.000000e+00 : f32
    %103 = vector.broadcast %cst_40 : f32 to vector<32x32xf32>
    %104 = arith.cmpf ogt, %102, %103 : vector<32x32xf32>
    %cst_41 = arith.constant 2.000000e-01 : f32
    %105 = vector.broadcast %cst_41 : f32 to vector<32x32xf32>
    %106 = arith.mulf %105, %102 : vector<32x32xf32>
    %107 = arith.select %104, %102, %106 : vector<32x32xi1>, vector<32x32xf32>
    %108 = arith.addf %107, %22 : vector<32x32xf32>
    %cst_42 = arith.constant dense<0xFF800000> : vector<32xf32>
    %109 = vector.multi_reduction <maximumf>, %108, %cst_42 [1] : vector<32x32xf32> to vector<32xf32>
    %110 = vector.shape_cast %109 : vector<32xf32> to vector<32x1xf32>
    %111 = vector.broadcast %110 : vector<32x1xf32> to vector<32x32xf32>
    %112 = arith.subf %108, %111 : vector<32x32xf32>
    %113 = math.exp %112 : vector<32x32xf32>
    %cst_43 = arith.constant dense<0.000000e+00> : vector<32xf32>
    %114 = vector.multi_reduction <add>, %113, %cst_43 [1] : vector<32x32xf32> to vector<32xf32>
    %115 = vector.shape_cast %114 : vector<32xf32> to vector<32x1xf32>
    %cst_44 = arith.constant 9.99999968E-21 : f32
    %116 = vector.broadcast %cst_44 : f32 to vector<32x1xf32>
    %117 = arith.maximumf %115, %116 : vector<32x1xf32>
    %118 = tpu.reciprocal %117 {approx = true} : vector<32x1xf32> -> vector<32x1xf32>
    %119 = vector.broadcast %118 : vector<32x1xf32> to vector<32x32xf32>
    %120 = arith.mulf %113, %119 : vector<32x32xf32>
    %121 = vector.extract_strided_slice %27 {offsets = [0, 4], sizes = [32, 1], strides = [1, 1]} : vector<32x6xf32> to vector<32x1xf32>
    %122 = vector.extract_strided_slice %28 {offsets = [4, 0], sizes = [1, 32], strides = [1, 1]} : vector<6x32xf32> to vector<1x32xf32>
    %123 = vector.broadcast %121 : vector<32x1xf32> to vector<32x32xf32>
    %124 = vector.broadcast %122 : vector<1x32xf32> to vector<32x32xf32>
    %125 = arith.addf %123, %124 : vector<32x32xf32>
    %cst_45 = arith.constant 0.000000e+00 : f32
    %126 = vector.broadcast %cst_45 : f32 to vector<32x32xf32>
    %127 = arith.cmpf ogt, %125, %126 : vector<32x32xf32>
    %cst_46 = arith.constant 2.000000e-01 : f32
    %128 = vector.broadcast %cst_46 : f32 to vector<32x32xf32>
    %129 = arith.mulf %128, %125 : vector<32x32xf32>
    %130 = arith.select %127, %125, %129 : vector<32x32xi1>, vector<32x32xf32>
    %131 = arith.addf %130, %22 : vector<32x32xf32>
    %cst_47 = arith.constant dense<0xFF800000> : vector<32xf32>
    %132 = vector.multi_reduction <maximumf>, %131, %cst_47 [1] : vector<32x32xf32> to vector<32xf32>
    %133 = vector.shape_cast %132 : vector<32xf32> to vector<32x1xf32>
    %134 = vector.broadcast %133 : vector<32x1xf32> to vector<32x32xf32>
    %135 = arith.subf %131, %134 : vector<32x32xf32>
    %136 = math.exp %135 : vector<32x32xf32>
    %cst_48 = arith.constant dense<0.000000e+00> : vector<32xf32>
    %137 = vector.multi_reduction <add>, %136, %cst_48 [1] : vector<32x32xf32> to vector<32xf32>
    %138 = vector.shape_cast %137 : vector<32xf32> to vector<32x1xf32>
    %cst_49 = arith.constant 9.99999968E-21 : f32
    %139 = vector.broadcast %cst_49 : f32 to vector<32x1xf32>
    %140 = arith.maximumf %138, %139 : vector<32x1xf32>
    %141 = tpu.reciprocal %140 {approx = true} : vector<32x1xf32> -> vector<32x1xf32>
    %142 = vector.broadcast %141 : vector<32x1xf32> to vector<32x32xf32>
    %143 = arith.mulf %136, %142 : vector<32x32xf32>
    %144 = vector.extract_strided_slice %27 {offsets = [0, 5], sizes = [32, 1], strides = [1, 1]} : vector<32x6xf32> to vector<32x1xf32>
    %145 = vector.extract_strided_slice %28 {offsets = [5, 0], sizes = [1, 32], strides = [1, 1]} : vector<6x32xf32> to vector<1x32xf32>
    %146 = vector.broadcast %144 : vector<32x1xf32> to vector<32x32xf32>
    %147 = vector.broadcast %145 : vector<1x32xf32> to vector<32x32xf32>
    %148 = arith.addf %146, %147 : vector<32x32xf32>
    %cst_50 = arith.constant 0.000000e+00 : f32
    %149 = vector.broadcast %cst_50 : f32 to vector<32x32xf32>
    %150 = arith.cmpf ogt, %148, %149 : vector<32x32xf32>
    %cst_51 = arith.constant 2.000000e-01 : f32
    %151 = vector.broadcast %cst_51 : f32 to vector<32x32xf32>
    %152 = arith.mulf %151, %148 : vector<32x32xf32>
    %153 = arith.select %150, %148, %152 : vector<32x32xi1>, vector<32x32xf32>
    %154 = arith.addf %153, %22 : vector<32x32xf32>
    %cst_52 = arith.constant dense<0xFF800000> : vector<32xf32>
    %155 = vector.multi_reduction <maximumf>, %154, %cst_52 [1] : vector<32x32xf32> to vector<32xf32>
    %156 = vector.shape_cast %155 : vector<32xf32> to vector<32x1xf32>
    %157 = vector.broadcast %156 : vector<32x1xf32> to vector<32x32xf32>
    %158 = arith.subf %154, %157 : vector<32x32xf32>
    %159 = math.exp %158 : vector<32x32xf32>
    %cst_53 = arith.constant dense<0.000000e+00> : vector<32xf32>
    %160 = vector.multi_reduction <add>, %159, %cst_53 [1] : vector<32x32xf32> to vector<32xf32>
    %161 = vector.shape_cast %160 : vector<32xf32> to vector<32x1xf32>
    %cst_54 = arith.constant 9.99999968E-21 : f32
    %162 = vector.broadcast %cst_54 : f32 to vector<32x1xf32>
    %163 = arith.maximumf %161, %162 : vector<32x1xf32>
    %164 = tpu.reciprocal %163 {approx = true} : vector<32x1xf32> -> vector<32x1xf32>
    %165 = vector.broadcast %164 : vector<32x1xf32> to vector<32x32xf32>
    %166 = arith.mulf %159, %165 : vector<32x32xf32>
    %167 = tpu.concatenate %51, %74, %97, %120, %143, %166 in 1 : vector<32x32xf32>, vector<32x32xf32>, vector<32x32xf32>, vector<32x32xf32>, vector<32x32xf32>, vector<32x32xf32> -> vector<32x192xf32>
    %168 = tpu.concatenate %26, %26, %26, %26, %26, %26 in 0 : vector<32x96xf32>, vector<32x96xf32>, vector<32x96xf32>, vector<32x96xf32>, vector<32x96xf32>, vector<32x96xf32> -> vector<192x96xf32>
    %169 = tpu.iota {dimensions = array<i32: 0>} : vector<192x96xi32>
    %c5_i32 = arith.constant 5 : i32
    %170 = vector.broadcast %c5_i32 : i32 to vector<192x96xi32>
    %171 = arith.shrsi %169, %170 : vector<192x96xi32>
    %172 = tpu.iota {dimensions = array<i32: 1>} : vector<192x96xi32>
    %c4_i32 = arith.constant 4 : i32
    %173 = vector.broadcast %c4_i32 : i32 to vector<192x96xi32>
    %174 = arith.shrsi %172, %173 : vector<192x96xi32>
    %175 = arith.cmpi eq, %171, %174 : vector<192x96xi32>
    %cst_55 = arith.constant 0.000000e+00 : f32
    %176 = vector.broadcast %cst_55 : f32 to vector<192x96xf32>
    %177 = arith.select %175, %168, %176 : vector<192x96xi1>, vector<192x96xf32>
    %cst_56 = arith.constant dense<0.000000e+00> : vector<32x96xf32>
    %178 = tpu.matmul %167, %177, %cst_56 {dimension_numbers = #tpu.dot_dimension_numbers<[1], [0], [0], [1], [0, 0, 1, 1], [], []>} : vector<32x192xf32>, vector<192x96xf32>, vector<32x96xf32> -> vector<32x96xf32>
    %cst_57 = arith.constant 0.000000e+00 : f32
    %179 = vector.broadcast %cst_57 : f32 to vector<32x96xf32>
    %180 = arith.cmpf ogt, %178, %179 : vector<32x96xf32>
    %cst_58 = arith.constant 0.000000e+00 : f32
    %181 = vector.broadcast %cst_58 : f32 to vector<32x96xf32>
    %182 = arith.minimumf %178, %181 : vector<32x96xf32>
    %183 = math.exp %182 : vector<32x96xf32>
    %cst_59 = arith.constant 1.000000e+00 : f32
    %184 = vector.broadcast %cst_59 : f32 to vector<32x96xf32>
    %185 = arith.subf %183, %184 : vector<32x96xf32>
    %186 = arith.select %180, %178, %185 : vector<32x96xi1>, vector<32x96xf32>
    %c0_60 = arith.constant 0 : index
    %c0_61 = arith.constant 0 : index
    %187 = vector.load %arg6[%c0_60, %c0_61] : memref<96x192xf32, #tpu.memory_space<vmem>>, vector<96x192xf32>
    %c0_62 = arith.constant 0 : index
    %c0_63 = arith.constant 0 : index
    %188 = vector.load %arg7[%c0_62, %c0_63] : memref<96x6xf32, #tpu.memory_space<vmem>>, vector<96x6xf32>
    %c0_64 = arith.constant 0 : index
    %c0_65 = arith.constant 0 : index
    %189 = vector.load %arg8[%c0_64, %c0_65] : memref<6x96xf32, #tpu.memory_space<vmem>>, vector<6x96xf32>
    %cst_66 = arith.constant dense<0.000000e+00> : vector<32x192xf32>
    %190 = tpu.matmul %186, %187, %cst_66 {dimension_numbers = #tpu.dot_dimension_numbers<[1], [0], [0], [1], [0, 0, 1, 1], [], []>} : vector<32x96xf32>, vector<96x192xf32>, vector<32x192xf32> -> vector<32x192xf32>
    %cst_67 = arith.constant dense<0.000000e+00> : vector<32x6xf32>
    %191 = tpu.matmul %186, %188, %cst_67 {dimension_numbers = #tpu.dot_dimension_numbers<[1], [0], [0], [1], [0, 0, 1, 1], [], []>} : vector<32x96xf32>, vector<96x6xf32>, vector<32x6xf32> -> vector<32x6xf32>
    %cst_68 = arith.constant dense<0.000000e+00> : vector<6x32xf32>
    %192 = tpu.matmul %189, %186, %cst_68 {dimension_numbers = #tpu.dot_dimension_numbers<[1], [1], [0], [0], [0, 0, 1, 0], [], []>} : vector<6x96xf32>, vector<32x96xf32>, vector<6x32xf32> -> vector<6x32xf32>
    %193 = vector.extract_strided_slice %191 {offsets = [0, 0], sizes = [32, 1], strides = [1, 1]} : vector<32x6xf32> to vector<32x1xf32>
    %194 = vector.extract_strided_slice %192 {offsets = [0, 0], sizes = [1, 32], strides = [1, 1]} : vector<6x32xf32> to vector<1x32xf32>
    %195 = vector.broadcast %193 : vector<32x1xf32> to vector<32x32xf32>
    %196 = vector.broadcast %194 : vector<1x32xf32> to vector<32x32xf32>
    %197 = arith.addf %195, %196 : vector<32x32xf32>
    %cst_69 = arith.constant 0.000000e+00 : f32
    %198 = vector.broadcast %cst_69 : f32 to vector<32x32xf32>
    %199 = arith.cmpf ogt, %197, %198 : vector<32x32xf32>
    %cst_70 = arith.constant 2.000000e-01 : f32
    %200 = vector.broadcast %cst_70 : f32 to vector<32x32xf32>
    %201 = arith.mulf %200, %197 : vector<32x32xf32>
    %202 = arith.select %199, %197, %201 : vector<32x32xi1>, vector<32x32xf32>
    %203 = arith.addf %202, %22 : vector<32x32xf32>
    %cst_71 = arith.constant dense<0xFF800000> : vector<32xf32>
    %204 = vector.multi_reduction <maximumf>, %203, %cst_71 [1] : vector<32x32xf32> to vector<32xf32>
    %205 = vector.shape_cast %204 : vector<32xf32> to vector<32x1xf32>
    %206 = vector.broadcast %205 : vector<32x1xf32> to vector<32x32xf32>
    %207 = arith.subf %203, %206 : vector<32x32xf32>
    %208 = math.exp %207 : vector<32x32xf32>
    %cst_72 = arith.constant dense<0.000000e+00> : vector<32xf32>
    %209 = vector.multi_reduction <add>, %208, %cst_72 [1] : vector<32x32xf32> to vector<32xf32>
    %210 = vector.shape_cast %209 : vector<32xf32> to vector<32x1xf32>
    %cst_73 = arith.constant 9.99999968E-21 : f32
    %211 = vector.broadcast %cst_73 : f32 to vector<32x1xf32>
    %212 = arith.maximumf %210, %211 : vector<32x1xf32>
    %213 = tpu.reciprocal %212 {approx = true} : vector<32x1xf32> -> vector<32x1xf32>
    %214 = vector.broadcast %213 : vector<32x1xf32> to vector<32x32xf32>
    %215 = arith.mulf %208, %214 : vector<32x32xf32>
    %216 = vector.extract_strided_slice %191 {offsets = [0, 1], sizes = [32, 1], strides = [1, 1]} : vector<32x6xf32> to vector<32x1xf32>
    %217 = vector.extract_strided_slice %192 {offsets = [1, 0], sizes = [1, 32], strides = [1, 1]} : vector<6x32xf32> to vector<1x32xf32>
    %218 = vector.broadcast %216 : vector<32x1xf32> to vector<32x32xf32>
    %219 = vector.broadcast %217 : vector<1x32xf32> to vector<32x32xf32>
    %220 = arith.addf %218, %219 : vector<32x32xf32>
    %cst_74 = arith.constant 0.000000e+00 : f32
    %221 = vector.broadcast %cst_74 : f32 to vector<32x32xf32>
    %222 = arith.cmpf ogt, %220, %221 : vector<32x32xf32>
    %cst_75 = arith.constant 2.000000e-01 : f32
    %223 = vector.broadcast %cst_75 : f32 to vector<32x32xf32>
    %224 = arith.mulf %223, %220 : vector<32x32xf32>
    %225 = arith.select %222, %220, %224 : vector<32x32xi1>, vector<32x32xf32>
    %226 = arith.addf %225, %22 : vector<32x32xf32>
    %cst_76 = arith.constant dense<0xFF800000> : vector<32xf32>
    %227 = vector.multi_reduction <maximumf>, %226, %cst_76 [1] : vector<32x32xf32> to vector<32xf32>
    %228 = vector.shape_cast %227 : vector<32xf32> to vector<32x1xf32>
    %229 = vector.broadcast %228 : vector<32x1xf32> to vector<32x32xf32>
    %230 = arith.subf %226, %229 : vector<32x32xf32>
    %231 = math.exp %230 : vector<32x32xf32>
    %cst_77 = arith.constant dense<0.000000e+00> : vector<32xf32>
    %232 = vector.multi_reduction <add>, %231, %cst_77 [1] : vector<32x32xf32> to vector<32xf32>
    %233 = vector.shape_cast %232 : vector<32xf32> to vector<32x1xf32>
    %cst_78 = arith.constant 9.99999968E-21 : f32
    %234 = vector.broadcast %cst_78 : f32 to vector<32x1xf32>
    %235 = arith.maximumf %233, %234 : vector<32x1xf32>
    %236 = tpu.reciprocal %235 {approx = true} : vector<32x1xf32> -> vector<32x1xf32>
    %237 = vector.broadcast %236 : vector<32x1xf32> to vector<32x32xf32>
    %238 = arith.mulf %231, %237 : vector<32x32xf32>
    %239 = vector.extract_strided_slice %191 {offsets = [0, 2], sizes = [32, 1], strides = [1, 1]} : vector<32x6xf32> to vector<32x1xf32>
    %240 = vector.extract_strided_slice %192 {offsets = [2, 0], sizes = [1, 32], strides = [1, 1]} : vector<6x32xf32> to vector<1x32xf32>
    %241 = vector.broadcast %239 : vector<32x1xf32> to vector<32x32xf32>
    %242 = vector.broadcast %240 : vector<1x32xf32> to vector<32x32xf32>
    %243 = arith.addf %241, %242 : vector<32x32xf32>
    %cst_79 = arith.constant 0.000000e+00 : f32
    %244 = vector.broadcast %cst_79 : f32 to vector<32x32xf32>
    %245 = arith.cmpf ogt, %243, %244 : vector<32x32xf32>
    %cst_80 = arith.constant 2.000000e-01 : f32
    %246 = vector.broadcast %cst_80 : f32 to vector<32x32xf32>
    %247 = arith.mulf %246, %243 : vector<32x32xf32>
    %248 = arith.select %245, %243, %247 : vector<32x32xi1>, vector<32x32xf32>
    %249 = arith.addf %248, %22 : vector<32x32xf32>
    %cst_81 = arith.constant dense<0xFF800000> : vector<32xf32>
    %250 = vector.multi_reduction <maximumf>, %249, %cst_81 [1] : vector<32x32xf32> to vector<32xf32>
    %251 = vector.shape_cast %250 : vector<32xf32> to vector<32x1xf32>
    %252 = vector.broadcast %251 : vector<32x1xf32> to vector<32x32xf32>
    %253 = arith.subf %249, %252 : vector<32x32xf32>
    %254 = math.exp %253 : vector<32x32xf32>
    %cst_82 = arith.constant dense<0.000000e+00> : vector<32xf32>
    %255 = vector.multi_reduction <add>, %254, %cst_82 [1] : vector<32x32xf32> to vector<32xf32>
    %256 = vector.shape_cast %255 : vector<32xf32> to vector<32x1xf32>
    %cst_83 = arith.constant 9.99999968E-21 : f32
    %257 = vector.broadcast %cst_83 : f32 to vector<32x1xf32>
    %258 = arith.maximumf %256, %257 : vector<32x1xf32>
    %259 = tpu.reciprocal %258 {approx = true} : vector<32x1xf32> -> vector<32x1xf32>
    %260 = vector.broadcast %259 : vector<32x1xf32> to vector<32x32xf32>
    %261 = arith.mulf %254, %260 : vector<32x32xf32>
    %262 = vector.extract_strided_slice %191 {offsets = [0, 3], sizes = [32, 1], strides = [1, 1]} : vector<32x6xf32> to vector<32x1xf32>
    %263 = vector.extract_strided_slice %192 {offsets = [3, 0], sizes = [1, 32], strides = [1, 1]} : vector<6x32xf32> to vector<1x32xf32>
    %264 = vector.broadcast %262 : vector<32x1xf32> to vector<32x32xf32>
    %265 = vector.broadcast %263 : vector<1x32xf32> to vector<32x32xf32>
    %266 = arith.addf %264, %265 : vector<32x32xf32>
    %cst_84 = arith.constant 0.000000e+00 : f32
    %267 = vector.broadcast %cst_84 : f32 to vector<32x32xf32>
    %268 = arith.cmpf ogt, %266, %267 : vector<32x32xf32>
    %cst_85 = arith.constant 2.000000e-01 : f32
    %269 = vector.broadcast %cst_85 : f32 to vector<32x32xf32>
    %270 = arith.mulf %269, %266 : vector<32x32xf32>
    %271 = arith.select %268, %266, %270 : vector<32x32xi1>, vector<32x32xf32>
    %272 = arith.addf %271, %22 : vector<32x32xf32>
    %cst_86 = arith.constant dense<0xFF800000> : vector<32xf32>
    %273 = vector.multi_reduction <maximumf>, %272, %cst_86 [1] : vector<32x32xf32> to vector<32xf32>
    %274 = vector.shape_cast %273 : vector<32xf32> to vector<32x1xf32>
    %275 = vector.broadcast %274 : vector<32x1xf32> to vector<32x32xf32>
    %276 = arith.subf %272, %275 : vector<32x32xf32>
    %277 = math.exp %276 : vector<32x32xf32>
    %cst_87 = arith.constant dense<0.000000e+00> : vector<32xf32>
    %278 = vector.multi_reduction <add>, %277, %cst_87 [1] : vector<32x32xf32> to vector<32xf32>
    %279 = vector.shape_cast %278 : vector<32xf32> to vector<32x1xf32>
    %cst_88 = arith.constant 9.99999968E-21 : f32
    %280 = vector.broadcast %cst_88 : f32 to vector<32x1xf32>
    %281 = arith.maximumf %279, %280 : vector<32x1xf32>
    %282 = tpu.reciprocal %281 {approx = true} : vector<32x1xf32> -> vector<32x1xf32>
    %283 = vector.broadcast %282 : vector<32x1xf32> to vector<32x32xf32>
    %284 = arith.mulf %277, %283 : vector<32x32xf32>
    %285 = vector.extract_strided_slice %191 {offsets = [0, 4], sizes = [32, 1], strides = [1, 1]} : vector<32x6xf32> to vector<32x1xf32>
    %286 = vector.extract_strided_slice %192 {offsets = [4, 0], sizes = [1, 32], strides = [1, 1]} : vector<6x32xf32> to vector<1x32xf32>
    %287 = vector.broadcast %285 : vector<32x1xf32> to vector<32x32xf32>
    %288 = vector.broadcast %286 : vector<1x32xf32> to vector<32x32xf32>
    %289 = arith.addf %287, %288 : vector<32x32xf32>
    %cst_89 = arith.constant 0.000000e+00 : f32
    %290 = vector.broadcast %cst_89 : f32 to vector<32x32xf32>
    %291 = arith.cmpf ogt, %289, %290 : vector<32x32xf32>
    %cst_90 = arith.constant 2.000000e-01 : f32
    %292 = vector.broadcast %cst_90 : f32 to vector<32x32xf32>
    %293 = arith.mulf %292, %289 : vector<32x32xf32>
    %294 = arith.select %291, %289, %293 : vector<32x32xi1>, vector<32x32xf32>
    %295 = arith.addf %294, %22 : vector<32x32xf32>
    %cst_91 = arith.constant dense<0xFF800000> : vector<32xf32>
    %296 = vector.multi_reduction <maximumf>, %295, %cst_91 [1] : vector<32x32xf32> to vector<32xf32>
    %297 = vector.shape_cast %296 : vector<32xf32> to vector<32x1xf32>
    %298 = vector.broadcast %297 : vector<32x1xf32> to vector<32x32xf32>
    %299 = arith.subf %295, %298 : vector<32x32xf32>
    %300 = math.exp %299 : vector<32x32xf32>
    %cst_92 = arith.constant dense<0.000000e+00> : vector<32xf32>
    %301 = vector.multi_reduction <add>, %300, %cst_92 [1] : vector<32x32xf32> to vector<32xf32>
    %302 = vector.shape_cast %301 : vector<32xf32> to vector<32x1xf32>
    %cst_93 = arith.constant 9.99999968E-21 : f32
    %303 = vector.broadcast %cst_93 : f32 to vector<32x1xf32>
    %304 = arith.maximumf %302, %303 : vector<32x1xf32>
    %305 = tpu.reciprocal %304 {approx = true} : vector<32x1xf32> -> vector<32x1xf32>
    %306 = vector.broadcast %305 : vector<32x1xf32> to vector<32x32xf32>
    %307 = arith.mulf %300, %306 : vector<32x32xf32>
    %308 = vector.extract_strided_slice %191 {offsets = [0, 5], sizes = [32, 1], strides = [1, 1]} : vector<32x6xf32> to vector<32x1xf32>
    %309 = vector.extract_strided_slice %192 {offsets = [5, 0], sizes = [1, 32], strides = [1, 1]} : vector<6x32xf32> to vector<1x32xf32>
    %310 = vector.broadcast %308 : vector<32x1xf32> to vector<32x32xf32>
    %311 = vector.broadcast %309 : vector<1x32xf32> to vector<32x32xf32>
    %312 = arith.addf %310, %311 : vector<32x32xf32>
    %cst_94 = arith.constant 0.000000e+00 : f32
    %313 = vector.broadcast %cst_94 : f32 to vector<32x32xf32>
    %314 = arith.cmpf ogt, %312, %313 : vector<32x32xf32>
    %cst_95 = arith.constant 2.000000e-01 : f32
    %315 = vector.broadcast %cst_95 : f32 to vector<32x32xf32>
    %316 = arith.mulf %315, %312 : vector<32x32xf32>
    %317 = arith.select %314, %312, %316 : vector<32x32xi1>, vector<32x32xf32>
    %318 = arith.addf %317, %22 : vector<32x32xf32>
    %cst_96 = arith.constant dense<0xFF800000> : vector<32xf32>
    %319 = vector.multi_reduction <maximumf>, %318, %cst_96 [1] : vector<32x32xf32> to vector<32xf32>
    %320 = vector.shape_cast %319 : vector<32xf32> to vector<32x1xf32>
    %321 = vector.broadcast %320 : vector<32x1xf32> to vector<32x32xf32>
    %322 = arith.subf %318, %321 : vector<32x32xf32>
    %323 = math.exp %322 : vector<32x32xf32>
    %cst_97 = arith.constant dense<0.000000e+00> : vector<32xf32>
    %324 = vector.multi_reduction <add>, %323, %cst_97 [1] : vector<32x32xf32> to vector<32xf32>
    %325 = vector.shape_cast %324 : vector<32xf32> to vector<32x1xf32>
    %cst_98 = arith.constant 9.99999968E-21 : f32
    %326 = vector.broadcast %cst_98 : f32 to vector<32x1xf32>
    %327 = arith.maximumf %325, %326 : vector<32x1xf32>
    %328 = tpu.reciprocal %327 {approx = true} : vector<32x1xf32> -> vector<32x1xf32>
    %329 = vector.broadcast %328 : vector<32x1xf32> to vector<32x32xf32>
    %330 = arith.mulf %323, %329 : vector<32x32xf32>
    %331 = tpu.concatenate %215, %238, %261, %284, %307, %330 in 1 : vector<32x32xf32>, vector<32x32xf32>, vector<32x32xf32>, vector<32x32xf32>, vector<32x32xf32>, vector<32x32xf32> -> vector<32x192xf32>
    %332 = tpu.concatenate %190, %190, %190, %190, %190, %190 in 0 : vector<32x192xf32>, vector<32x192xf32>, vector<32x192xf32>, vector<32x192xf32>, vector<32x192xf32>, vector<32x192xf32> -> vector<192x192xf32>
    %333 = tpu.iota {dimensions = array<i32: 0>} : vector<192x192xi32>
    %c5_i32_99 = arith.constant 5 : i32
    %334 = vector.broadcast %c5_i32_99 : i32 to vector<192x192xi32>
    %335 = arith.shrsi %333, %334 : vector<192x192xi32>
    %336 = tpu.iota {dimensions = array<i32: 1>} : vector<192x192xi32>
    %c5_i32_100 = arith.constant 5 : i32
    %337 = vector.broadcast %c5_i32_100 : i32 to vector<192x192xi32>
    %338 = arith.shrsi %336, %337 : vector<192x192xi32>
    %339 = arith.cmpi eq, %335, %338 : vector<192x192xi32>
    %cst_101 = arith.constant 0.000000e+00 : f32
    %340 = vector.broadcast %cst_101 : f32 to vector<192x192xf32>
    %341 = arith.select %339, %332, %340 : vector<192x192xi1>, vector<192x192xf32>
    %cst_102 = arith.constant dense<0.000000e+00> : vector<32x192xf32>
    %342 = tpu.matmul %331, %341, %cst_102 {dimension_numbers = #tpu.dot_dimension_numbers<[1], [0], [0], [1], [0, 0, 1, 1], [], []>} : vector<32x192xf32>, vector<192x192xf32>, vector<32x192xf32> -> vector<32x192xf32>
    %cst_103 = arith.constant 0.000000e+00 : f32
    %343 = vector.broadcast %cst_103 : f32 to vector<32x192xf32>
    %344 = arith.cmpf ogt, %342, %343 : vector<32x192xf32>
    %cst_104 = arith.constant 0.000000e+00 : f32
    %345 = vector.broadcast %cst_104 : f32 to vector<32x192xf32>
    %346 = arith.minimumf %342, %345 : vector<32x192xf32>
    %347 = math.exp %346 : vector<32x192xf32>
    %cst_105 = arith.constant 1.000000e+00 : f32
    %348 = vector.broadcast %cst_105 : f32 to vector<32x192xf32>
    %349 = arith.subf %347, %348 : vector<32x192xf32>
    %350 = arith.select %344, %342, %349 : vector<32x192xi1>, vector<32x192xf32>
    %c0_106 = arith.constant 0 : index
    %c0_107 = arith.constant 0 : index
    %351 = vector.load %arg9[%c0_106, %c0_107] : memref<192x384xf32, #tpu.memory_space<vmem>>, vector<192x384xf32>
    %c0_108 = arith.constant 0 : index
    %c0_109 = arith.constant 0 : index
    %352 = vector.load %arg10[%c0_108, %c0_109] : memref<192x6xf32, #tpu.memory_space<vmem>>, vector<192x6xf32>
    %c0_110 = arith.constant 0 : index
    %c0_111 = arith.constant 0 : index
    %353 = vector.load %arg11[%c0_110, %c0_111] : memref<6x192xf32, #tpu.memory_space<vmem>>, vector<6x192xf32>
    %cst_112 = arith.constant dense<0.000000e+00> : vector<32x384xf32>
    %354 = tpu.matmul %350, %351, %cst_112 {dimension_numbers = #tpu.dot_dimension_numbers<[1], [0], [0], [1], [0, 0, 1, 1], [], []>} : vector<32x192xf32>, vector<192x384xf32>, vector<32x384xf32> -> vector<32x384xf32>
    %cst_113 = arith.constant dense<0.000000e+00> : vector<32x6xf32>
    %355 = tpu.matmul %350, %352, %cst_113 {dimension_numbers = #tpu.dot_dimension_numbers<[1], [0], [0], [1], [0, 0, 1, 1], [], []>} : vector<32x192xf32>, vector<192x6xf32>, vector<32x6xf32> -> vector<32x6xf32>
    %cst_114 = arith.constant dense<0.000000e+00> : vector<6x32xf32>
    %356 = tpu.matmul %353, %350, %cst_114 {dimension_numbers = #tpu.dot_dimension_numbers<[1], [1], [0], [0], [0, 0, 1, 0], [], []>} : vector<6x192xf32>, vector<32x192xf32>, vector<6x32xf32> -> vector<6x32xf32>
    %357 = vector.extract_strided_slice %355 {offsets = [0, 0], sizes = [32, 1], strides = [1, 1]} : vector<32x6xf32> to vector<32x1xf32>
    %358 = vector.extract_strided_slice %356 {offsets = [0, 0], sizes = [1, 32], strides = [1, 1]} : vector<6x32xf32> to vector<1x32xf32>
    %359 = vector.broadcast %357 : vector<32x1xf32> to vector<32x32xf32>
    %360 = vector.broadcast %358 : vector<1x32xf32> to vector<32x32xf32>
    %361 = arith.addf %359, %360 : vector<32x32xf32>
    %cst_115 = arith.constant 0.000000e+00 : f32
    %362 = vector.broadcast %cst_115 : f32 to vector<32x32xf32>
    %363 = arith.cmpf ogt, %361, %362 : vector<32x32xf32>
    %cst_116 = arith.constant 2.000000e-01 : f32
    %364 = vector.broadcast %cst_116 : f32 to vector<32x32xf32>
    %365 = arith.mulf %364, %361 : vector<32x32xf32>
    %366 = arith.select %363, %361, %365 : vector<32x32xi1>, vector<32x32xf32>
    %367 = arith.addf %366, %22 : vector<32x32xf32>
    %cst_117 = arith.constant dense<0xFF800000> : vector<32xf32>
    %368 = vector.multi_reduction <maximumf>, %367, %cst_117 [1] : vector<32x32xf32> to vector<32xf32>
    %369 = vector.shape_cast %368 : vector<32xf32> to vector<32x1xf32>
    %370 = vector.broadcast %369 : vector<32x1xf32> to vector<32x32xf32>
    %371 = arith.subf %367, %370 : vector<32x32xf32>
    %372 = math.exp %371 : vector<32x32xf32>
    %cst_118 = arith.constant dense<0.000000e+00> : vector<32xf32>
    %373 = vector.multi_reduction <add>, %372, %cst_118 [1] : vector<32x32xf32> to vector<32xf32>
    %374 = vector.shape_cast %373 : vector<32xf32> to vector<32x1xf32>
    %cst_119 = arith.constant 9.99999968E-21 : f32
    %375 = vector.broadcast %cst_119 : f32 to vector<32x1xf32>
    %376 = arith.maximumf %374, %375 : vector<32x1xf32>
    %377 = tpu.reciprocal %376 {approx = true} : vector<32x1xf32> -> vector<32x1xf32>
    %378 = vector.broadcast %377 : vector<32x1xf32> to vector<32x32xf32>
    %379 = arith.mulf %372, %378 : vector<32x32xf32>
    %380 = vector.extract_strided_slice %355 {offsets = [0, 1], sizes = [32, 1], strides = [1, 1]} : vector<32x6xf32> to vector<32x1xf32>
    %381 = vector.extract_strided_slice %356 {offsets = [1, 0], sizes = [1, 32], strides = [1, 1]} : vector<6x32xf32> to vector<1x32xf32>
    %382 = vector.broadcast %380 : vector<32x1xf32> to vector<32x32xf32>
    %383 = vector.broadcast %381 : vector<1x32xf32> to vector<32x32xf32>
    %384 = arith.addf %382, %383 : vector<32x32xf32>
    %cst_120 = arith.constant 0.000000e+00 : f32
    %385 = vector.broadcast %cst_120 : f32 to vector<32x32xf32>
    %386 = arith.cmpf ogt, %384, %385 : vector<32x32xf32>
    %cst_121 = arith.constant 2.000000e-01 : f32
    %387 = vector.broadcast %cst_121 : f32 to vector<32x32xf32>
    %388 = arith.mulf %387, %384 : vector<32x32xf32>
    %389 = arith.select %386, %384, %388 : vector<32x32xi1>, vector<32x32xf32>
    %390 = arith.addf %389, %22 : vector<32x32xf32>
    %cst_122 = arith.constant dense<0xFF800000> : vector<32xf32>
    %391 = vector.multi_reduction <maximumf>, %390, %cst_122 [1] : vector<32x32xf32> to vector<32xf32>
    %392 = vector.shape_cast %391 : vector<32xf32> to vector<32x1xf32>
    %393 = vector.broadcast %392 : vector<32x1xf32> to vector<32x32xf32>
    %394 = arith.subf %390, %393 : vector<32x32xf32>
    %395 = math.exp %394 : vector<32x32xf32>
    %cst_123 = arith.constant dense<0.000000e+00> : vector<32xf32>
    %396 = vector.multi_reduction <add>, %395, %cst_123 [1] : vector<32x32xf32> to vector<32xf32>
    %397 = vector.shape_cast %396 : vector<32xf32> to vector<32x1xf32>
    %cst_124 = arith.constant 9.99999968E-21 : f32
    %398 = vector.broadcast %cst_124 : f32 to vector<32x1xf32>
    %399 = arith.maximumf %397, %398 : vector<32x1xf32>
    %400 = tpu.reciprocal %399 {approx = true} : vector<32x1xf32> -> vector<32x1xf32>
    %401 = vector.broadcast %400 : vector<32x1xf32> to vector<32x32xf32>
    %402 = arith.mulf %395, %401 : vector<32x32xf32>
    %403 = vector.extract_strided_slice %355 {offsets = [0, 2], sizes = [32, 1], strides = [1, 1]} : vector<32x6xf32> to vector<32x1xf32>
    %404 = vector.extract_strided_slice %356 {offsets = [2, 0], sizes = [1, 32], strides = [1, 1]} : vector<6x32xf32> to vector<1x32xf32>
    %405 = vector.broadcast %403 : vector<32x1xf32> to vector<32x32xf32>
    %406 = vector.broadcast %404 : vector<1x32xf32> to vector<32x32xf32>
    %407 = arith.addf %405, %406 : vector<32x32xf32>
    %cst_125 = arith.constant 0.000000e+00 : f32
    %408 = vector.broadcast %cst_125 : f32 to vector<32x32xf32>
    %409 = arith.cmpf ogt, %407, %408 : vector<32x32xf32>
    %cst_126 = arith.constant 2.000000e-01 : f32
    %410 = vector.broadcast %cst_126 : f32 to vector<32x32xf32>
    %411 = arith.mulf %410, %407 : vector<32x32xf32>
    %412 = arith.select %409, %407, %411 : vector<32x32xi1>, vector<32x32xf32>
    %413 = arith.addf %412, %22 : vector<32x32xf32>
    %cst_127 = arith.constant dense<0xFF800000> : vector<32xf32>
    %414 = vector.multi_reduction <maximumf>, %413, %cst_127 [1] : vector<32x32xf32> to vector<32xf32>
    %415 = vector.shape_cast %414 : vector<32xf32> to vector<32x1xf32>
    %416 = vector.broadcast %415 : vector<32x1xf32> to vector<32x32xf32>
    %417 = arith.subf %413, %416 : vector<32x32xf32>
    %418 = math.exp %417 : vector<32x32xf32>
    %cst_128 = arith.constant dense<0.000000e+00> : vector<32xf32>
    %419 = vector.multi_reduction <add>, %418, %cst_128 [1] : vector<32x32xf32> to vector<32xf32>
    %420 = vector.shape_cast %419 : vector<32xf32> to vector<32x1xf32>
    %cst_129 = arith.constant 9.99999968E-21 : f32
    %421 = vector.broadcast %cst_129 : f32 to vector<32x1xf32>
    %422 = arith.maximumf %420, %421 : vector<32x1xf32>
    %423 = tpu.reciprocal %422 {approx = true} : vector<32x1xf32> -> vector<32x1xf32>
    %424 = vector.broadcast %423 : vector<32x1xf32> to vector<32x32xf32>
    %425 = arith.mulf %418, %424 : vector<32x32xf32>
    %426 = vector.extract_strided_slice %355 {offsets = [0, 3], sizes = [32, 1], strides = [1, 1]} : vector<32x6xf32> to vector<32x1xf32>
    %427 = vector.extract_strided_slice %356 {offsets = [3, 0], sizes = [1, 32], strides = [1, 1]} : vector<6x32xf32> to vector<1x32xf32>
    %428 = vector.broadcast %426 : vector<32x1xf32> to vector<32x32xf32>
    %429 = vector.broadcast %427 : vector<1x32xf32> to vector<32x32xf32>
    %430 = arith.addf %428, %429 : vector<32x32xf32>
    %cst_130 = arith.constant 0.000000e+00 : f32
    %431 = vector.broadcast %cst_130 : f32 to vector<32x32xf32>
    %432 = arith.cmpf ogt, %430, %431 : vector<32x32xf32>
    %cst_131 = arith.constant 2.000000e-01 : f32
    %433 = vector.broadcast %cst_131 : f32 to vector<32x32xf32>
    %434 = arith.mulf %433, %430 : vector<32x32xf32>
    %435 = arith.select %432, %430, %434 : vector<32x32xi1>, vector<32x32xf32>
    %436 = arith.addf %435, %22 : vector<32x32xf32>
    %cst_132 = arith.constant dense<0xFF800000> : vector<32xf32>
    %437 = vector.multi_reduction <maximumf>, %436, %cst_132 [1] : vector<32x32xf32> to vector<32xf32>
    %438 = vector.shape_cast %437 : vector<32xf32> to vector<32x1xf32>
    %439 = vector.broadcast %438 : vector<32x1xf32> to vector<32x32xf32>
    %440 = arith.subf %436, %439 : vector<32x32xf32>
    %441 = math.exp %440 : vector<32x32xf32>
    %cst_133 = arith.constant dense<0.000000e+00> : vector<32xf32>
    %442 = vector.multi_reduction <add>, %441, %cst_133 [1] : vector<32x32xf32> to vector<32xf32>
    %443 = vector.shape_cast %442 : vector<32xf32> to vector<32x1xf32>
    %cst_134 = arith.constant 9.99999968E-21 : f32
    %444 = vector.broadcast %cst_134 : f32 to vector<32x1xf32>
    %445 = arith.maximumf %443, %444 : vector<32x1xf32>
    %446 = tpu.reciprocal %445 {approx = true} : vector<32x1xf32> -> vector<32x1xf32>
    %447 = vector.broadcast %446 : vector<32x1xf32> to vector<32x32xf32>
    %448 = arith.mulf %441, %447 : vector<32x32xf32>
    %449 = vector.extract_strided_slice %355 {offsets = [0, 4], sizes = [32, 1], strides = [1, 1]} : vector<32x6xf32> to vector<32x1xf32>
    %450 = vector.extract_strided_slice %356 {offsets = [4, 0], sizes = [1, 32], strides = [1, 1]} : vector<6x32xf32> to vector<1x32xf32>
    %451 = vector.broadcast %449 : vector<32x1xf32> to vector<32x32xf32>
    %452 = vector.broadcast %450 : vector<1x32xf32> to vector<32x32xf32>
    %453 = arith.addf %451, %452 : vector<32x32xf32>
    %cst_135 = arith.constant 0.000000e+00 : f32
    %454 = vector.broadcast %cst_135 : f32 to vector<32x32xf32>
    %455 = arith.cmpf ogt, %453, %454 : vector<32x32xf32>
    %cst_136 = arith.constant 2.000000e-01 : f32
    %456 = vector.broadcast %cst_136 : f32 to vector<32x32xf32>
    %457 = arith.mulf %456, %453 : vector<32x32xf32>
    %458 = arith.select %455, %453, %457 : vector<32x32xi1>, vector<32x32xf32>
    %459 = arith.addf %458, %22 : vector<32x32xf32>
    %cst_137 = arith.constant dense<0xFF800000> : vector<32xf32>
    %460 = vector.multi_reduction <maximumf>, %459, %cst_137 [1] : vector<32x32xf32> to vector<32xf32>
    %461 = vector.shape_cast %460 : vector<32xf32> to vector<32x1xf32>
    %462 = vector.broadcast %461 : vector<32x1xf32> to vector<32x32xf32>
    %463 = arith.subf %459, %462 : vector<32x32xf32>
    %464 = math.exp %463 : vector<32x32xf32>
    %cst_138 = arith.constant dense<0.000000e+00> : vector<32xf32>
    %465 = vector.multi_reduction <add>, %464, %cst_138 [1] : vector<32x32xf32> to vector<32xf32>
    %466 = vector.shape_cast %465 : vector<32xf32> to vector<32x1xf32>
    %cst_139 = arith.constant 9.99999968E-21 : f32
    %467 = vector.broadcast %cst_139 : f32 to vector<32x1xf32>
    %468 = arith.maximumf %466, %467 : vector<32x1xf32>
    %469 = tpu.reciprocal %468 {approx = true} : vector<32x1xf32> -> vector<32x1xf32>
    %470 = vector.broadcast %469 : vector<32x1xf32> to vector<32x32xf32>
    %471 = arith.mulf %464, %470 : vector<32x32xf32>
    %472 = vector.extract_strided_slice %355 {offsets = [0, 5], sizes = [32, 1], strides = [1, 1]} : vector<32x6xf32> to vector<32x1xf32>
    %473 = vector.extract_strided_slice %356 {offsets = [5, 0], sizes = [1, 32], strides = [1, 1]} : vector<6x32xf32> to vector<1x32xf32>
    %474 = vector.broadcast %472 : vector<32x1xf32> to vector<32x32xf32>
    %475 = vector.broadcast %473 : vector<1x32xf32> to vector<32x32xf32>
    %476 = arith.addf %474, %475 : vector<32x32xf32>
    %cst_140 = arith.constant 0.000000e+00 : f32
    %477 = vector.broadcast %cst_140 : f32 to vector<32x32xf32>
    %478 = arith.cmpf ogt, %476, %477 : vector<32x32xf32>
    %cst_141 = arith.constant 2.000000e-01 : f32
    %479 = vector.broadcast %cst_141 : f32 to vector<32x32xf32>
    %480 = arith.mulf %479, %476 : vector<32x32xf32>
    %481 = arith.select %478, %476, %480 : vector<32x32xi1>, vector<32x32xf32>
    %482 = arith.addf %481, %22 : vector<32x32xf32>
    %cst_142 = arith.constant dense<0xFF800000> : vector<32xf32>
    %483 = vector.multi_reduction <maximumf>, %482, %cst_142 [1] : vector<32x32xf32> to vector<32xf32>
    %484 = vector.shape_cast %483 : vector<32xf32> to vector<32x1xf32>
    %485 = vector.broadcast %484 : vector<32x1xf32> to vector<32x32xf32>
    %486 = arith.subf %482, %485 : vector<32x32xf32>
    %487 = math.exp %486 : vector<32x32xf32>
    %cst_143 = arith.constant dense<0.000000e+00> : vector<32xf32>
    %488 = vector.multi_reduction <add>, %487, %cst_143 [1] : vector<32x32xf32> to vector<32xf32>
    %489 = vector.shape_cast %488 : vector<32xf32> to vector<32x1xf32>
    %cst_144 = arith.constant 9.99999968E-21 : f32
    %490 = vector.broadcast %cst_144 : f32 to vector<32x1xf32>
    %491 = arith.maximumf %489, %490 : vector<32x1xf32>
    %492 = tpu.reciprocal %491 {approx = true} : vector<32x1xf32> -> vector<32x1xf32>
    %493 = vector.broadcast %492 : vector<32x1xf32> to vector<32x32xf32>
    %494 = arith.mulf %487, %493 : vector<32x32xf32>
    %495 = tpu.concatenate %379, %402, %425, %448, %471, %494 in 1 : vector<32x32xf32>, vector<32x32xf32>, vector<32x32xf32>, vector<32x32xf32>, vector<32x32xf32>, vector<32x32xf32> -> vector<32x192xf32>
    %496 = tpu.concatenate %354, %354, %354, %354, %354, %354 in 0 : vector<32x384xf32>, vector<32x384xf32>, vector<32x384xf32>, vector<32x384xf32>, vector<32x384xf32>, vector<32x384xf32> -> vector<192x384xf32>
    %497 = tpu.iota {dimensions = array<i32: 0>} : vector<192x384xi32>
    %c5_i32_145 = arith.constant 5 : i32
    %498 = vector.broadcast %c5_i32_145 : i32 to vector<192x384xi32>
    %499 = arith.shrsi %497, %498 : vector<192x384xi32>
    %500 = tpu.iota {dimensions = array<i32: 1>} : vector<192x384xi32>
    %c6_i32 = arith.constant 6 : i32
    %501 = vector.broadcast %c6_i32 : i32 to vector<192x384xi32>
    %502 = arith.shrsi %500, %501 : vector<192x384xi32>
    %503 = arith.cmpi eq, %499, %502 : vector<192x384xi32>
    %cst_146 = arith.constant 0.000000e+00 : f32
    %504 = vector.broadcast %cst_146 : f32 to vector<192x384xf32>
    %505 = arith.select %503, %496, %504 : vector<192x384xi1>, vector<192x384xf32>
    %cst_147 = arith.constant dense<0.000000e+00> : vector<32x384xf32>
    %506 = tpu.matmul %495, %505, %cst_147 {dimension_numbers = #tpu.dot_dimension_numbers<[1], [0], [0], [1], [0, 0, 1, 1], [], []>} : vector<32x192xf32>, vector<192x384xf32>, vector<32x384xf32> -> vector<32x384xf32>
    %cst_148 = arith.constant 0.000000e+00 : f32
    %507 = vector.broadcast %cst_148 : f32 to vector<32x384xf32>
    %508 = arith.cmpf ogt, %506, %507 : vector<32x384xf32>
    %cst_149 = arith.constant 0.000000e+00 : f32
    %509 = vector.broadcast %cst_149 : f32 to vector<32x384xf32>
    %510 = arith.minimumf %506, %509 : vector<32x384xf32>
    %511 = math.exp %510 : vector<32x384xf32>
    %cst_150 = arith.constant 1.000000e+00 : f32
    %512 = vector.broadcast %cst_150 : f32 to vector<32x384xf32>
    %513 = arith.subf %511, %512 : vector<32x384xf32>
    %514 = arith.select %508, %506, %513 : vector<32x384xi1>, vector<32x384xf32>
    %515 = vector.extract_strided_slice %514 {offsets = [0, 0], sizes = [16, 384], strides = [1, 1]} : vector<32x384xf32> to vector<16x384xf32>
    %cst_151 = arith.constant dense<0.000000e+00> : vector<384xf32>
    %516 = vector.multi_reduction <add>, %515, %cst_151 [0] : vector<16x384xf32> to vector<384xf32>
    %517 = vector.shape_cast %516 : vector<384xf32> to vector<1x384xf32>
    %518 = vector.extract_strided_slice %514 {offsets = [16, 0], sizes = [16, 384], strides = [1, 1]} : vector<32x384xf32> to vector<16x384xf32>
    %cst_152 = arith.constant dense<0.000000e+00> : vector<384xf32>
    %519 = vector.multi_reduction <add>, %518, %cst_152 [0] : vector<16x384xf32> to vector<384xf32>
    %520 = vector.shape_cast %519 : vector<384xf32> to vector<1x384xf32>
    %c0_153 = arith.constant 0 : index
    %c0_154 = arith.constant 0 : index
    %521 = vector.load %arg12[%c0_153, %c0_154] : memref<2x384xf32, #tpu.memory_space<vmem>>, vector<1x384xf32>
    %c1_155 = arith.constant 1 : index
    %c0_156 = arith.constant 0 : index
    %522 = vector.load %arg12[%c1_155, %c0_156] : memref<2x384xf32, #tpu.memory_space<vmem>>, vector<1x384xf32>
    %523 = arith.mulf %517, %517 : vector<1x384xf32>
    %cst_157 = arith.constant dense<0.000000e+00> : vector<1xf32>
    %524 = vector.multi_reduction <add>, %523, %cst_157 [1] : vector<1x384xf32> to vector<1xf32>
    %525 = vector.shape_cast %524 : vector<1xf32> to vector<1x1xf32>
    %526 = arith.mulf %520, %520 : vector<1x384xf32>
    %cst_158 = arith.constant dense<0.000000e+00> : vector<1xf32>
    %527 = vector.multi_reduction <add>, %526, %cst_158 [1] : vector<1x384xf32> to vector<1xf32>
    %528 = vector.shape_cast %527 : vector<1xf32> to vector<1x1xf32>
    %529 = arith.addf %525, %528 : vector<1x1xf32>
    %530 = arith.mulf %517, %521 : vector<1x384xf32>
    %cst_159 = arith.constant dense<0.000000e+00> : vector<1xf32>
    %531 = vector.multi_reduction <add>, %530, %cst_159 [1] : vector<1x384xf32> to vector<1xf32>
    %532 = vector.shape_cast %531 : vector<1xf32> to vector<1x1xf32>
    %533 = arith.mulf %520, %522 : vector<1x384xf32>
    %cst_160 = arith.constant dense<0.000000e+00> : vector<1xf32>
    %534 = vector.multi_reduction <add>, %533, %cst_160 [1] : vector<1x384xf32> to vector<1xf32>
    %535 = vector.shape_cast %534 : vector<1xf32> to vector<1x1xf32>
    %536 = arith.addf %532, %535 : vector<1x1xf32>
    %cst_161 = arith.constant 1.000000e-24 : f32
    %537 = vector.broadcast %cst_161 : f32 to vector<1x1xf32>
    %538 = arith.maximumf %529, %537 : vector<1x1xf32>
    %539 = math.rsqrt %538 : vector<1x1xf32>
    %540 = arith.mulf %536, %539 : vector<1x1xf32>
    %c0_162 = arith.constant 0 : index
    %c0_163 = arith.constant 0 : index
    %541 = vector.load %arg13[%c0_162, %c0_163] : memref<1x1xf32, #tpu.memory_space<vmem>>, vector<1x1xf32>
    %542 = arith.addf %540, %541 : vector<1x1xf32>
    %c0_164 = arith.constant 0 : index
    %c0_165 = arith.constant 0 : index
    %543 = vector.load %arg14[%c0_164, %c0_165] : memref<1x1xf32, #tpu.memory_space<vmem>>, vector<1x1xf32>
    tpu.vector_store %arg14[%c0_164, %c0_165], %542 {strides = array<i32>} : memref<1x1xf32, #tpu.memory_space<vmem>>, vector<1x1xf32>,
    return
  }
  func.func @transform_0(%arg0: i32) -> (i32, i32, i32) {
    %c0_i32 = arith.constant 0 : i32
    %c0_i32_0 = arith.constant 0 : i32
    %c0_i32_1 = arith.constant 0 : i32
    %c0_i32_2 = arith.constant 0 : i32
    return %c0_i32, %c0_i32_0, %c0_i32_1 : i32, i32, i32
  }
  func.func @transform_1(%arg0: i32) -> (i32, i32, i32) {
    %c0_i32 = arith.constant 0 : i32
    %c0_i32_0 = arith.constant 0 : i32
    %c0_i32_1 = arith.constant 0 : i32
    %c0_i32_2 = arith.constant 0 : i32
    return %c0_i32, %c0_i32_0, %c0_i32_1 : i32, i32, i32
  }
  func.func @transform_2(%arg0: i32) -> (i32, i32) {
    %c0_i32 = arith.constant 0 : i32
    %c0_i32_0 = arith.constant 0 : i32
    %c0_i32_1 = arith.constant 0 : i32
    return %c0_i32, %c0_i32_0 : i32, i32
  }
  func.func @transform_3(%arg0: i32) -> (i32, i32) {
    %c0_i32 = arith.constant 0 : i32
    %c0_i32_0 = arith.constant 0 : i32
    %c0_i32_1 = arith.constant 0 : i32
    return %c0_i32, %c0_i32_0 : i32, i32
  }
  func.func @transform_4(%arg0: i32) -> (i32, i32) {
    %c0_i32 = arith.constant 0 : i32
    %c0_i32_0 = arith.constant 0 : i32
    %c0_i32_1 = arith.constant 0 : i32
    return %c0_i32, %c0_i32_0 : i32, i32
  }
  func.func @transform_5(%arg0: i32) -> (i32, i32) {
    %c0_i32 = arith.constant 0 : i32
    %c0_i32_0 = arith.constant 0 : i32
    %c0_i32_1 = arith.constant 0 : i32
    return %c0_i32, %c0_i32_0 : i32, i32
  }
  func.func @transform_6(%arg0: i32) -> (i32, i32) {
    %c0_i32 = arith.constant 0 : i32
    %c0_i32_0 = arith.constant 0 : i32
    %c0_i32_1 = arith.constant 0 : i32
    return %c0_i32, %c0_i32_0 : i32, i32
  }
  func.func @transform_7(%arg0: i32) -> (i32, i32) {
    %c0_i32 = arith.constant 0 : i32
    %c0_i32_0 = arith.constant 0 : i32
    %c0_i32_1 = arith.constant 0 : i32
    return %c0_i32, %c0_i32_0 : i32, i32
  }
  func.func @transform_8(%arg0: i32) -> (i32, i32) {
    %c0_i32 = arith.constant 0 : i32
    %c0_i32_0 = arith.constant 0 : i32
    %c0_i32_1 = arith.constant 0 : i32
    return %c0_i32, %c0_i32_0 : i32, i32
  }
  func.func @transform_9(%arg0: i32) -> (i32, i32) {
    %c0_i32 = arith.constant 0 : i32
    %c0_i32_0 = arith.constant 0 : i32
    %c0_i32_1 = arith.constant 0 : i32
    return %c0_i32, %c0_i32_0 : i32, i32
  }
  func.func @transform_10(%arg0: i32) -> (i32, i32) {
    %c0_i32 = arith.constant 0 : i32
    %c0_i32_0 = arith.constant 0 : i32
    %c0_i32_1 = arith.constant 0 : i32
    return %c0_i32, %c0_i32_0 : i32, i32
  }
  func.func @transform_11(%arg0: i32) -> (i32, i32) {
    %c0_i32 = arith.constant 0 : i32
    %c0_i32_0 = arith.constant 0 : i32
    %c0_i32_1 = arith.constant 0 : i32
    return %c0_i32, %c0_i32_0 : i32, i32
  }
  func.func @transform_12(%arg0: i32) -> (i32, i32) {
    %c0_i32 = arith.constant 0 : i32
    %c0_i32_0 = arith.constant 0 : i32
    %c0_i32_1 = arith.constant 0 : i32
    return %c0_i32, %c0_i32_0 : i32, i32
  }
  func.func @transform_13(%arg0: i32) -> (i32, i32) {
    %c0_i32 = arith.constant 0 : i32
    %c0_i32_0 = arith.constant 0 : i32
    %c0_i32_1 = arith.constant 0 : i32
    return %c0_i32, %c0_i32_0 : i32, i32
  }
}

</mosaic_0001>

<bundles_post_ra>
// kernel: gnn35_forward.1
= control target key start
LH: loop header
LB: loop body
LE: loop exit
PB: predicated region body
PF: predicated region fallthrough
CT: control target
= control target key end

     0   :  { %s6614_s0 = inlined_call_operand.vmem [shape: f32[2,16,11], index: 0, kind: input, shape index: {}]   ;;  %s6615_s1 = inlined_call_operand.vmem [shape: f32[2,16,16], index: 1, kind: input, shape index: {}]   ;;  %s6616_s2 = inlined_call_operand.vmem [shape: f32[11,96], index: 2, kind: input, shape index: {}]   ;;  %s6617_s3 = inlined_call_operand.vmem [shape: f32[11,6], index: 3, kind: input, shape index: {}]   ;;  %s6618_s4 = inlined_call_operand.vmem [shape: f32[6,11], index: 4, kind: input, shape index: {}]   ;;  %s6619_s5 = inlined_call_operand.vmem [shape: f32[96,192], index: 5, kind: input, shape index: {}]   ;;  %s6620_s6 = inlined_call_operand.vmem [shape: f32[96,6], index: 6, kind: input, shape index: {}]   ;;  %s6621_s7 = inlined_call_operand.vmem [shape: f32[6,96], index: 7, kind: input, shape index: {}]   ;;  %s6622_s8 = inlined_call_operand.hbm [shape: f32[192,384], index: 8, kind: input, shape index: {}]   ;;  %s6623_s9 = inlined_call_operand.vmem [shape: f32[192,6], index: 9, kind: input, shape index: {}]   ;;  %s6624_s10 = inlined_call_operand.vmem [shape: f32[6,192], index: 10, kind: input, shape index: {}]   ;;  %s6625_s11 = inlined_call_operand.vmem [shape: f32[2,384], index: 11, kind: input, shape index: {}]   ;;  %s6626_s12 = inlined_call_operand.<no memory space> [shape: f32[1,1], index: 12, kind: input, shape index: {}]   ;;  %s6627_s13 = inlined_call_operand.hbm [shape: f32[1,1], index: 13, kind: output, shape index: {}]  }
   0x1   :  { %v18_v0 = vstv %s6626_s12 }
   0x2   :  { %19 = vst [vmem:[#allocation2] sm:$0x1] %v18_v0 }
   0x3   :  { %20 = vsyncpa [#allocation4], 0 }
   0x4   :  { %21 = vsyncpa [#allocation5], 0  ;;  %s42_s29 = sshll.u32 %s6622_s8, 4  ;;  %s4356_s30 = smov [#allocation3]   ;;  %s43_s29 = int_to_ptr.hbm [resolvable:$true] %s42_s29 }
   0x5   :  { %s44_s14 = sshll.u32 %s4356_s30, 4  ;;  %s4357_s15 = smov 384   ;;  %s45_s14 = int_to_ptr.vmem [resolvable:$true] %s44_s14 }
   0x6   :  { %s4358_s16 = smov 24  }
   0x7   :  { %50 = dma.hbm_to_vmem [thread:$0]  %s43_s29, 9216, %s45_s14, [#allocation4], %s4357_s15, %s4357_s15, %s4358_s16  }
   0x8   :  { %4352 = dma.done.wait [#allocation4], 9216  }
   0x9   :  { %4353 = vsyncadd [#allocation4], 4294958080  ;;  %v6630_v1 = vmov 3   ;;  %v6632_v2 = vmov 1   ;;  %vm112_vm0 = vcmask 1042432   ;;  %v6636_v3 = vmov 0  }
   0xa   :  { %3832 = vset.pattern.permute.xlu1 %v6630_v1  ;;  %3830 = vset.pattern.permute.xlu0 %v6632_v2  ;;  %v97_v4 = vld [vmem:[%s6617_s3 + $0x8] sm:$0x7]  ;;  %v96_v5 = vld [vmem:[%s6617_s3] sm:$0xff]  ;;  %vm99_vm1 = vcmask 89088   ;;  %v4465_v7 = vld [vmem:[%s6614_s0 + $0x18] sm:$0xff]  ;;  %s4363_s28 = smov 16  }
   0xb   :  { %3834 = vset.pattern.permute.xlu2 %v6636_v3  ;;  %3542 = vmatpush.msk.msra.mxu1 %vm112_vm0, %v97_v4  ;;  %v4460_v6 = vld [vmem:[%s6614_s0] sm:$0xff]  ;;  %v3536_v8 = vld [vmem:[%s6615_s1 + $0x18] sm:$0xff]  ;;  %v3535_v9 = vld [vmem:[%s6615_s1 + $0x10] sm:$0xff]  ;;  %v4362_v10 = vmov -1e+09   ;;  %v6634_v18 = vmov 5  }
   0xc   :  { %3547 = vmatpush.xpose.msk.msra.mxu2 %vm99_vm1, %v4465_v7  ;;  %vm81_vm2 = vcmp.gt.f32.partialorder %v3536_v8, 0.0  ;;  %vm80_vm3 = vcmp.gt.f32.partialorder %v3535_v9, 0.0  ;;  %v4481_v12 = vld [vmem:[%s6614_s0 + $0x10] sm:$0xff]  ;;  %v4489_v14 = vld [vmem:[%s6614_s0 + $0x8] sm:$0xff]  ;;  %v98_v15 = vld [vmem:[%s6618_s4] sm:$0x3f] }
   0xd   :  { %163 = vmatpush.msra.mxu1 %v96_v5  ;;  %v83_v11 = vsel %vm81_vm2, 0.0, %v4362_v10  ;;  %v82_v13 = vsel %vm80_vm3, 0.0, %v4362_v10  ;;  %v6628_v19 = vmov 2   ;;  %v6638_v20 = vmov 4   ;;  %v68_v29 = vld [vmem:[%s6615_s1] sm:$0xff]  ;;  %v69_v48 = vld [vmem:[%s6615_s1 + $0x8] sm:$0xff] }
   0xe   :  { %3543 = vmatmul.msk.f32.vlgmr.msra.gmra.mxu1 %vm99_vm1, %v4460_v6  ;;  %88 = vrot.lane.b32.xlu1 %v83_v11, %s4363_s28  ;;  %vm70_vm4 = vcmp.gt.f32.partialorder %v68_v29, 0.0  ;;  %vm74_vm5 = vcmask 130048   ;;  %vm241_vm9 = vcmask 261120   ;;  %vm71_vm10 = vcmp.gt.f32.partialorder %v69_v48, 0.0  ;;  %s4368_s19 = smov 64   ;;  %s4369_s20 = smov 96  }
   0xf   :  { %86 = vrot.lane.b32.xlu2 %v82_v13, %s4363_s28  ;;  %v72_v37 = vsel %vm70_vm4, 0.0, %v4362_v10  ;;  %v73_v63 = vsel %vm71_vm10, 0.0, %v4362_v10  ;;  %s3523_s4 = sshll.u32 %s6627_s13, 4  ;;  %s3524_s4 = int_to_ptr.hbm [resolvable:$true] %s3523_s4 }
  0x10   :  { %3548 = vmatpush.xpose.msk.msra.mxu2 %vm99_vm1, %v4481_v12  ;;  %v4545_v41 = vsel %vm74_vm5, %v72_v37, -1e+09 }
  0x11   :  { %6664 = vst [vmem:[#allocation9_spill] sm:$0xff] %v4545_v41 }
  0x14   :  { %3549 = vmatpush.xpose.msk.msra.mxu2 %vm99_vm1, %v4489_v14 }
  0x16   :  { %3544 = vmatmul.msk.f32.gmra.mxu1 %vm99_vm1, %v4489_v14 }
  0x18   :  { %3550 = vmatpush.xpose.msk.msra.mxu2 %vm99_vm1, %v4460_v6 }
  0x1b   :  { %3551 = vmatmul.msk.f32.vlgmr.msra.gmra.mxu2 %vm99_vm1, %v98_v15 }
  0x1e   :  { %3545 = vmatmul.msk.f32.gmra.mxu1 %vm99_vm1, %v4481_v12 }
  0x26   :  { %3546 = vmatmul.msk.f32.gmra.mxu1 %vm99_vm1, %v4465_v7 }
  0x69   :  { %v4526_v23 = vpop.permute.xlu2 %86 }
  0x80   :  { %v4529_v26 = vpop.permute.xlu1 %88 }
  0x8b   :  { %v165_v16 = vpop.f32.mrf.mxu1 }
  0x8c   :  { %202 = vperm.xlu2 %3834, %v165_v16   ;;  %461 = vperm.xlu1 %3832, %v165_v16  }
  0x8d   :  { %291 = vperm.xlu0 %3830, %v165_v16  }
  0x93   :  { %v168_v17 = vpop.f32.mrf.mxu1 }
  0x94   :  { %3836 = vset.pattern.permute.xlu2 %v6632_v2  ;;  %3833 = vset.pattern.permute.xlu1 %v6634_v18 }
  0x95   :  { %3831 = vset.pattern.permute.xlu0 %v6628_v19  ;;  %631 = vperm.xlu1 %3833, %v165_v16  }
  0x96   :  { %376 = vperm.xlu0 %3831, %v165_v16   ;;  %295 = vperm.xlu2 %3836, %v168_v17  }
  0x9b   :  { %v171_v21 = vpop.f32.mrf.mxu1 }
  0x9d   :  { %3835 = vset.pattern.permute.xlu1 %v6638_v20 }
  0x9e   :  { %3842 = vset.pattern.permute.xlu0 %v6632_v2  ;;  %3837 = vset.pattern.permute.xlu2 %v6628_v19  ;;  %v197_v27 = vpop.f32.mrf.mxu2 }
  0x9f   :  { %546 = vperm.xlu1 %3835, %v165_v16   ;;  %380 = vperm.xlu2 %3837, %v168_v17   ;;  %v4534_v30 = vperm.slane %v197_v27, 0  ;;  %v4536_v31 = vperm.slane %v197_v27, 3  ;;  %v4538_v32 = vperm.slane %v197_v27, 1  ;;  %v4556_v49 = vperm.slane %v197_v27, 5 }
  0xa0   :  { %299 = vperm.xlu0 %3842, %v171_v21   ;;  %v4560_v51 = vperm.slane %v197_v27, 2  ;;  %v4581_v16 = vsel %vm74_vm5, %v73_v63, -1e+09 }
  0xa1   :  { %6665 = vst [vmem:[#allocation10_spill] sm:$0xff] %v4581_v16 }
  0xa3   :  { %v174_v22 = vpop.f32.mrf.mxu1 }
  0xa7   :  { %3838 = vset.pattern.permute.xlu1 %v6630_v1  ;;  %3839 = vset.pattern.permute.xlu2 %v6634_v18 }
  0xa8   :  { %3847 = vset.pattern.permute.xlu0 %v6638_v20  ;;  %465 = vperm.xlu1 %3838, %v168_v17  }
  0xa9   :  { %635 = vperm.xlu2 %3839, %v168_v17   ;;  %554 = vperm.xlu0 %3847, %v171_v21  }
  0xb0   :  { %3843 = vset.pattern.permute.xlu1 %v6628_v19 }
  0xb1   :  { %3840 = vset.pattern.permute.xlu2 %v6636_v3  ;;  %3848 = vset.pattern.permute.xlu0 %v6632_v2 }
  0xb2   :  { %207 = vperm.xlu2 %3840, %v168_v17   ;;  %384 = vperm.xlu1 %3843, %v171_v21  }
  0xb3   :  { %303 = vperm.xlu0 %3848, %v174_v22  }
  0xba   :  { %3841 = vset.pattern.permute.xlu2 %v6638_v20  ;;  %3845 = vset.pattern.permute.xlu1 %v6634_v18 }
  0xbb   :  { %3850 = vset.pattern.permute.xlu0 %v6634_v18  ;;  %550 = vperm.xlu2 %3841, %v168_v17  }
  0xbc   :  { %639 = vperm.xlu1 %3845, %v171_v21   ;;  %643 = vperm.xlu0 %3850, %v174_v22  }
  0xc3   :  { %3844 = vset.pattern.permute.xlu2 %v6630_v1 }
  0xc4   :  { %3846 = vset.pattern.permute.xlu1 %v6636_v3  ;;  %3851 = vset.pattern.permute.xlu0 %v6636_v3 }
  0xc5   :  { %469 = vperm.xlu2 %3844, %v171_v21   ;;  %212 = vperm.xlu1 %3846, %v171_v21   ;;  %v4586_v21 = vperm.slane %v197_v27, 4 }
  0xc6   :  { %217 = vperm.xlu0 %3851, %v174_v22  }
  0xcd   :  { %3849 = vset.pattern.permute.xlu1 %v6628_v19  ;;  %473 = vperm.xlu2 %3844, %v174_v22  }
  0xce   :  { %388 = vperm.xlu1 %3849, %v174_v22   ;;  %3879 = vset.pattern.permute.xlu0 %v6628_v19 }
  0xd6   :  { %3852 = vset.pattern.permute.xlu1 %v6638_v20 }
  0xd7   :  { %558 = vperm.xlu1 %3852, %v174_v22  }
  0xdf   :  { %3878 = vset.pattern.permute.xlu1 %v6632_v2 }
  0xe6   :  { %v203_v24 = vpop.permute.xlu2 %202 }
  0xe7   :  { %v221_v34 = vadd.f32 %v4534_v30, %v203_v24 }
  0xe9   :  { %v229_v42 = vmul.f32 0.2, %v221_v34  ;;  %vm225_vm8 = vcmp.gt.f32.partialorder %v221_v34, 0.0 }
  0xeb   :  { %v233_v54 = vsel %vm225_vm8, %v221_v34, %v229_v42 }
  0xec   :  { %v4569_v61 = vadd.f32 %v233_v54, %v4545_v41 }
  0xee   :  { %v242_v13 = vsel %vm241_vm9, %v4569_v61, -inf }
  0xf0   :  { %v296_v25 = vpop.permute.xlu2 %295 }
  0xf1   :  { %v308_v55 = vadd.f32 %v4538_v32, %v296_v25 }
  0xf3   :  { %v316_v0 = vmul.f32 0.2, %v308_v55  ;;  %vm312_vm13 = vcmp.gt.f32.partialorder %v308_v55, 0.0 }
  0xf5   :  { %v320_v24 = vsel %vm312_vm13, %v308_v55, %v316_v0 }
  0xf6   :  { %v4592_v34 = vadd.f32 %v320_v24, %v4581_v16 }
  0xf9   :  { %v381_v28 = vpop.permute.xlu2 %380 }
  0xfa   :  { %v393_v17 = vadd.f32 %v4560_v51, %v381_v28 }
  0xfc   :  { %vm397_vm2 = vcmp.gt.f32.partialorder %v393_v17, 0.0 }
  0xfe   :  { %v462_v33 = vpop.permute.xlu1 %461 }
  0xff   :  { %v477_v35 = vadd.f32 %v4536_v31, %v462_v33  ;;  %v292_v36 = vpop.permute.xlu0 %291 }
 0x100   :  { %v307_v38 = vadd.f32 %v4538_v32, %v292_v36 }
 0x101   :  { %v485_v39 = vmul.f32 0.2, %v477_v35  ;;  %vm481_vm6 = vcmp.gt.f32.partialorder %v477_v35, 0.0 }
 0x102   :  { %v315_v40 = vmul.f32 0.2, %v307_v38  ;;  %vm311_vm7 = vcmp.gt.f32.partialorder %v307_v38, 0.0 }
 0x103   :  { %v636_v43 = vpop.permute.xlu2 %635  ;;  %v489_v44 = vsel %vm481_vm6, %v477_v35, %v485_v39  ;;  %v401_v35 = vmul.f32 0.2, %v393_v17  ;;  %v330_v39 = vsel %vm241_vm9, %v4592_v34, -inf }
 0x104   :  { %v4548_v45 = vadd.f32 %v489_v44, %v4545_v41  ;;  %v319_v46 = vsel %vm311_vm7, %v307_v38, %v315_v40  ;;  %v648_v58 = vadd.f32 %v4556_v49, %v636_v43 }
 0x105   :  { %v4551_v47 = vadd.f32 %v319_v46, %v4545_v41  ;;  %v405_v44 = vsel %vm397_vm2, %v393_v17, %v401_v35 }
 0x106   :  { %v497_v50 = vsel %vm241_vm9, %v4548_v45, -inf  ;;  %v656_v8 = vmul.f32 0.2, %v648_v58  ;;  %vm652_vm14 = vcmp.gt.f32.partialorder %v648_v58, 0.0 }
 0x107   :  { %v632_v52 = vpop.permute.xlu1 %631  ;;  %498 = vmax.xlane.f32.xlu2 %v497_v50  ;;  %v327_v53 = vsel %vm241_vm9, %v4551_v47, -inf }
 0x108   :  { %v647_v56 = vadd.f32 %v4556_v49, %v632_v52  ;;  %v377_v57 = vpop.permute.xlu0 %376  ;;  %328 = vmax.xlane.f32.xlu0 %v327_v53  ;;  %v660_v29 = vsel %vm652_vm14, %v648_v58, %v656_v8  ;;  %v4610_v53 = vadd.f32 %v405_v44, %v4581_v16 }
 0x109   :  { %v392_v59 = vadd.f32 %v4560_v51, %v377_v57  ;;  %v4595_v37 = vadd.f32 %v660_v29, %v4581_v16 }
 0x10a   :  { %v655_v60 = vmul.f32 0.2, %v647_v56  ;;  %vm651_vm11 = vcmp.gt.f32.partialorder %v647_v56, 0.0  ;;  %v415_v58 = vsel %vm241_vm9, %v4610_v53, -inf }
 0x10b   :  { %v400_v62 = vmul.f32 0.2, %v392_v59  ;;  %vm396_vm12 = vcmp.gt.f32.partialorder %v392_v59, 0.0  ;;  %v670_v43 = vsel %vm241_vm9, %v4595_v37, -inf }
 0x10c   :  { %v208_v4 = vpop.permute.xlu2 %207  ;;  %v659_v5 = vsel %vm651_vm11, %v647_v56, %v655_v60 }
 0x10d   :  { %v404_v9 = vsel %vm396_vm12, %v392_v59, %v400_v62  ;;  %v4573_v11 = vadd.f32 %v659_v5, %v4545_v41  ;;  %v222_v50 = vadd.f32 %v4534_v30, %v208_v4 }
 0x10e   :  { %v4578_v15 = vadd.f32 %v404_v9, %v4545_v41 }
 0x10f   :  { %243 = vmax.xlane.f32.xlu2 %v242_v13  ;;  %v667_v10 = vsel %vm241_vm9, %v4573_v11, -inf  ;;  %v230_v56 = vmul.f32 0.2, %v222_v50  ;;  %vm226_vm6 = vcmp.gt.f32.partialorder %v222_v50, 0.0 }
 0x110   :  { %v412_v22 = vsel %vm241_vm9, %v4578_v15, -inf  ;;  %668 = vmax.xlane.f32.xlu0 %v667_v10 }
 0x111   :  { %v547_v25 = vpop.permute.xlu1 %546  ;;  %413 = vmax.xlane.f32.xlu1 %v412_v22  ;;  %v234_v5 = vsel %vm226_vm6, %v222_v50, %v230_v56 }
 0x112   :  { %v562_v33 = vadd.f32 %v4586_v21, %v547_v25  ;;  %v300_v27 = vpop.permute.xlu0 %299  ;;  %v4625_v13 = vadd.f32 %v234_v5, %v4581_v16  ;;  %v4631_v25 = vsel %vm74_vm5, -1e+09, %v4526_v23 }
 0x113   :  { %v309_v0 = vadd.f32 %v4538_v32, %v300_v27  ;;  %6666 = vst [vmem:[#allocation11_spill] sm:$0xff] %v4631_v25 }
 0x114   :  { %v570_v36 = vmul.f32 0.2, %v562_v33  ;;  %vm566_vm15 = vcmp.gt.f32.partialorder %v562_v33, 0.0  ;;  %v245_v35 = vsel %vm241_vm9, %v4625_v13, -inf }
 0x115   :  { %v551_v28 = vpop.permute.xlu2 %550  ;;  %v317_v10 = vmul.f32 0.2, %v309_v0  ;;  %vm313_vm8 = vcmp.gt.f32.partialorder %v309_v0, 0.0 }
 0x116   :  { %v574_v38 = vsel %vm566_vm15, %v562_v33, %v570_v36  ;;  %v563_v42 = vadd.f32 %v4586_v21, %v551_v28 }
 0x117   :  { %v4600_v40 = vadd.f32 %v574_v38, %v4545_v41  ;;  %v321_v28 = vsel %vm313_vm8, %v309_v0, %v317_v10 }
 0x118   :  { %331 = vmax.xlane.f32.xlu0 %v330_v39  ;;  %v571_v54 = vmul.f32 0.2, %v563_v42  ;;  %vm567_vm4 = vcmp.gt.f32.partialorder %v563_v42, 0.0  ;;  %v4642_v23 = vadd.f32 %v321_v28, %v4631_v25  ;;  %v4672_v28 = vsel %vm74_vm5, -1e+09, %v4529_v26 }
 0x119   :  { %671 = vmax.xlane.f32.xlu1 %v670_v43  ;;  %v582_v46 = vsel %vm241_vm9, %v4600_v40, -inf  ;;  %6667 = vst [vmem:[#allocation12_spill] sm:$0xff] %v4672_v28 }
 0x11a   :  { %v466_v48 = vpop.permute.xlu1 %465  ;;  %583 = vmax.xlane.f32.xlu2 %v582_v46  ;;  %v575_v62 = vsel %vm567_vm4, %v563_v42, %v571_v54  ;;  %v333_v46 = vsel %vm241_vm9, %v4642_v23, -inf }
 0x11b   :  { %v478_v52 = vadd.f32 %v4536_v31, %v466_v48  ;;  %v555_v57 = vpop.permute.xlu0 %554  ;;  %v4621_v4 = vadd.f32 %v575_v62, %v4581_v16 }
 0x11c   :  { %v564_v48 = vadd.f32 %v4586_v21, %v555_v57 }
 0x11d   :  { %v486_v55 = vmul.f32 0.2, %v478_v52  ;;  %vm482_vm3 = vcmp.gt.f32.partialorder %v478_v52, 0.0  ;;  %v585_v22 = vsel %vm241_vm9, %v4621_v4, -inf }
 0x11e   :  { %vm568_vm12 = vcmp.gt.f32.partialorder %v564_v48, 0.0 }
 0x11f   :  { %v490_v59 = vsel %vm482_vm3, %v478_v52, %v486_v55  ;;  %v470_v24 = vpop.permute.xlu2 %469 }
 0x120   :  { %416 = vmax.xlane.f32.xlu0 %v415_v58  ;;  %v4615_v60 = vadd.f32 %v490_v59, %v4581_v16  ;;  %v479_v27 = vadd.f32 %v4536_v31, %v470_v24  ;;  %v572_v59 = vmul.f32 0.2, %v564_v48 }
 0x122   :  { %v500_v63 = vsel %vm241_vm9, %v4615_v60, -inf  ;;  %v487_v42 = vmul.f32 0.2, %v479_v27  ;;  %vm483_vm10 = vcmp.gt.f32.partialorder %v479_v27, 0.0 }
 0x123   :  { %501 = vmax.xlane.f32.xlu2 %v500_v63 }
 0x124   :  { %v385_v8 = vpop.permute.xlu1 %384  ;;  %v491_v54 = vsel %vm483_vm10, %v479_v27, %v487_v42 }
 0x125   :  { %v394_v9 = vadd.f32 %v4560_v51, %v385_v8  ;;  %v304_v29 = vpop.permute.xlu0 %303  ;;  %v4654_v58 = vadd.f32 %v491_v54, %v4631_v25 }
 0x126   :  { %v310_v8 = vadd.f32 %v4538_v32, %v304_v29 }
 0x127   :  { %v402_v17 = vmul.f32 0.2, %v394_v9  ;;  %vm398_vm7 = vcmp.gt.f32.partialorder %v394_v9, 0.0  ;;  %v503_v5 = vsel %vm241_vm9, %v4654_v58, -inf }
 0x128   :  { %586 = vmax.xlane.f32.xlu0 %v585_v22  ;;  %vm314_vm15 = vcmp.gt.f32.partialorder %v310_v8, 0.0 }
 0x129   :  { %v406_v33 = vsel %vm398_vm7, %v394_v9, %v402_v17  ;;  %v576_v9 = vsel %vm568_vm12, %v564_v48, %v572_v59  ;;  %v474_v48 = vpop.permute.xlu2 %473 }
 0x12a   :  { %v4636_v36 = vadd.f32 %v406_v33, %v4631_v25  ;;  %v318_v33 = vmul.f32 0.2, %v310_v8 }
 0x12b   :  { %246 = vmax.xlane.f32.xlu2 %v245_v35 }
 0x12c   :  { %v418_v38 = vsel %vm241_vm9, %v4636_v36, -inf }
 0x12d   :  { %419 = vmax.xlane.f32.xlu1 %v418_v38 }
 0x12e   :  { %v640_v39 = vpop.permute.xlu1 %639  ;;  %v644_v50 = vpop.permute.xlu0 %643 }
 0x12f   :  { %v649_v43 = vadd.f32 %v4556_v49, %v640_v39  ;;  %v650_v63 = vadd.f32 %v4556_v49, %v644_v50  ;;  %v4665_v49 = vadd.f32 %v576_v9, %v4631_v25 }
 0x131   :  { %v657_v44 = vmul.f32 0.2, %v649_v43  ;;  %vm653_vm11 = vcmp.gt.f32.partialorder %v649_v43, 0.0  ;;  %v658_v10 = vmul.f32 0.2, %v650_v63  ;;  %vm654_vm14 = vcmp.gt.f32.partialorder %v650_v63, 0.0 }
 0x132   :  { %v588_v38 = vsel %vm241_vm9, %v4665_v49, -inf }
 0x133   :  { %334 = vmax.xlane.f32.xlu2 %v333_v46  ;;  %v661_v52 = vsel %vm653_vm11, %v649_v43, %v657_v44  ;;  %v662_v29 = vsel %vm654_vm14, %v650_v63, %v658_v10  ;;  %v322_v43 = vsel %vm314_vm15, %v310_v8, %v318_v33 }
 0x134   :  { %v4649_v55 = vadd.f32 %v661_v52, %v4631_v25  ;;  %v4678_v42 = vadd.f32 %v662_v29, %v4672_v28  ;;  %v480_v52 = vadd.f32 %v4536_v31, %v474_v48 }
 0x136   :  { %v673_v56 = vsel %vm241_vm9, %v4649_v55, -inf  ;;  %v676_v26 = vsel %vm241_vm9, %v4678_v42, -inf  ;;  %vm484_vm3 = vcmp.gt.f32.partialorder %v480_v52, 0.0 }
 0x137   :  { %v213_v62 = vpop.permute.xlu1 %212  ;;  %674 = vmax.xlane.f32.xlu0 %v673_v56 }
 0x138   :  { %v223_v57 = vadd.f32 %v4534_v30, %v213_v62  ;;  %v218_v22 = vpop.permute.xlu0 %217  ;;  %v488_v62 = vmul.f32 0.2, %v480_v52 }
 0x139   :  { %v224_v27 = vadd.f32 %v4534_v30, %v218_v22  ;;  %v4681_v30 = vadd.f32 %v322_v43, %v4672_v28 }
 0x13a   :  { %v231_v0 = vmul.f32 0.2, %v223_v57  ;;  %vm227_vm13 = vcmp.gt.f32.partialorder %v223_v57, 0.0 }
 0x13b   :  { %504 = vmax.xlane.f32.xlu2 %v503_v5  ;;  %v232_v44 = vmul.f32 0.2, %v224_v27  ;;  %vm228_vm2 = vcmp.gt.f32.partialorder %v224_v27, 0.0  ;;  %v492_v5 = vsel %vm484_vm3, %v480_v52, %v488_v62 }
 0x13c   :  { %v235_v17 = vsel %vm227_vm13, %v223_v57, %v231_v0  ;;  %v4700_v8 = vadd.f32 %v492_v5, %v4672_v28 }
 0x13d   :  { %v4662_v24 = vadd.f32 %v235_v17, %v4631_v25  ;;  %v236_v50 = vsel %vm228_vm2, %v224_v27, %v232_v44 }
 0x13e   :  { %v4689_v54 = vadd.f32 %v236_v50, %v4672_v28  ;;  %v506_v10 = vsel %vm241_vm9, %v4700_v8, -inf }
 0x13f   :  { %v248_v35 = vsel %vm241_vm9, %v4662_v24, -inf }
 0x140   :  { %249 = vmax.xlane.f32.xlu1 %v248_v35  ;;  %v389_v32 = vpop.permute.xlu1 %388  ;;  %v251_v63 = vsel %vm241_vm9, %v4689_v54, -inf }
 0x141   :  { %v395_v39 = vadd.f32 %v4560_v51, %v389_v32  ;;  %v336_v51 = vsel %vm241_vm9, %v4681_v30, -inf }
 0x143   :  { %589 = vmax.xlane.f32.xlu2 %v588_v38  ;;  %v403_v46 = vmul.f32 0.2, %v395_v39  ;;  %vm399_vm5 = vcmp.gt.f32.partialorder %v395_v39, 0.0 }
 0x145   :  { %v407_v56 = vsel %vm399_vm5, %v395_v39, %v403_v46 }
 0x146   :  { %v4692_v59 = vadd.f32 %v407_v56, %v4672_v28 }
 0x148   :  { %677 = vmax.xlane.f32.xlu1 %v676_v26  ;;  %v421_v0 = vsel %vm241_vm9, %v4692_v59, -inf }
 0x149   :  { %v559_v57 = vpop.permute.xlu1 %558 }
 0x14a   :  { %v565_v31 = vadd.f32 %v4586_v21, %v559_v57 }
 0x14b   :  { %337 = vmax.xlane.f32.xlu2 %v336_v51 }
 0x14c   :  { %v573_v9 = vmul.f32 0.2, %v565_v31  ;;  %vm569_vm4 = vcmp.gt.f32.partialorder %v565_v31, 0.0 }
 0x14e   :  { %v577_v17 = vsel %vm569_vm4, %v565_v31, %v573_v9 }
 0x14f   :  { %v4705_v22 = vadd.f32 %v577_v17, %v4672_v28 }
 0x150   :  { %252 = vmax.xlane.f32.xlu1 %v251_v63 }
 0x151   :  { %v591_v33 = vsel %vm241_vm9, %v4705_v22, -inf }
 0x153   :  { %422 = vmax.xlane.f32.xlu2 %v421_v0 }
 0x15b   :  { %507 = vmax.xlane.f32.xlu2 %v506_v10 }
 0x163   :  { %592 = vmax.xlane.f32.xlu2 %v591_v33 }
 0x17a   :  { %v499_v21 = vpop.xlane.xlu2 %498 }
 0x17b   :  { %v329_v35 = vpop.xlane.xlu0 %328  ;;  %v509_v32 = vsub.f32 %v4548_v45, %v499_v21 }
 0x17c   :  { %v339_v27 = vsub.f32 %v4551_v47, %v329_v35 }
 0x17d   :  { %v513_v38 = vmul.f32 1.442695, %v509_v32 }
 0x17e   :  { %v343_v29 = vmul.f32 1.442695, %v339_v27 }
 0x180   :  { %3966 = vpow2.f32 %v343_v29 }
 0x181   :  { %3968 = vpow2.f32 %v513_v38 }
 0x182   :  { %v244_v39 = vpop.xlane.xlu2 %243 }
 0x183   :  { %v669_v43 = vpop.xlane.xlu0 %668  ;;  %v254_v48 = vsub.f32 %v4569_v61, %v244_v39 }
 0x184   :  { %v414_v44 = vpop.xlane.xlu1 %413  ;;  %v679_v51 = vsub.f32 %v4573_v11, %v669_v43 }
 0x185   :  { %v424_v46 = vsub.f32 %v4578_v15, %v414_v44  ;;  %v258_v45 = vmul.f32 1.442695, %v254_v48 }
 0x186   :  { %v4712_v26 = vpop.eup %3966  ;;  %v683_v52 = vmul.f32 1.442695, %v679_v51 }
 0x187   :  { %v428_v50 = vmul.f32 1.442695, %v424_v46  ;;  %v351_v47 = vsel %vm241_vm9, %v4712_v26, 0.0  ;;  %v4718_v62 = vpop.eup %3968 }
 0x188   :  { %352 = vadd.xlane.f32.xlu2 %v351_v47  ;;  %v521_v11 = vsel %vm241_vm9, %v4718_v62, 0.0 }
 0x189   :  { %3970 = vpow2.f32 %v428_v50 }
 0x18a   :  { %3972 = vpow2.f32 %v258_v45 }
 0x18b   :  { %v332_v56 = vpop.xlane.xlu0 %331  ;;  %3974 = vpow2.f32 %v683_v52 }
 0x18c   :  { %v672_v27 = vpop.xlane.xlu1 %671 }
 0x18d   :  { %v584_v63 = vpop.xlane.xlu2 %583  ;;  %v680_v46 = vsub.f32 %v4595_v37, %v672_v27 }
 0x18e   :  { %v594_v61 = vsub.f32 %v4600_v40, %v584_v63  ;;  %v340_v40 = vsub.f32 %v4592_v34, %v332_v56 }
 0x18f   :  { %v4720_v15 = vpop.eup %3970  ;;  %v685_v56 = vmul.f32 1.442695, %v680_v46 }
 0x190   :  { %522 = vadd.xlane.f32.xlu2 %v521_v11  ;;  %v436_v57 = vsel %vm241_vm9, %v4720_v15, 0.0  ;;  %v598_v0 = vmul.f32 1.442695, %v594_v61  ;;  %v4727_v5 = vpop.eup %3972 }
 0x191   :  { %437 = vadd.xlane.f32.xlu0 %v436_v57  ;;  %v4730_v10 = vpop.eup %3974  ;;  %v266_v35 = vsel %vm241_vm9, %v4727_v5, 0.0 }
 0x192   :  { %3976 = vpow2.f32 %v598_v0  ;;  %v691_v32 = vsel %vm241_vm9, %v4730_v10, 0.0 }
 0x193   :  { %v417_v31 = vpop.xlane.xlu0 %416 }
 0x194   :  { %v425_v9 = vsub.f32 %v4610_v53, %v417_v31  ;;  %v345_v53 = vmul.f32 1.442695, %v340_v40 }
 0x196   :  { %v430_v17 = vmul.f32 1.442695, %v425_v9  ;;  %v502_v33 = vpop.xlane.xlu2 %501  ;;  %v94_v9 = vld [vmem:[%s6616_s2] sm:$0xff] }
 0x197   :  { %v510_v21 = vsub.f32 %v4615_v60, %v502_v33 }
 0x198   :  { %3978 = vpow2.f32 %v430_v17  ;;  %267 = vadd.xlane.f32.xlu2 %v266_v35  ;;  %v4739_v34 = vpop.eup %3976 }
 0x199   :  { %v515_v29 = vmul.f32 1.442695, %v510_v21  ;;  %692 = vadd.xlane.f32.xlu0 %v691_v32  ;;  %v606_v47 = vsel %vm241_vm9, %v4739_v34, 0.0 }
 0x19b   :  { %3980 = vpow2.f32 %v515_v29  ;;  %v587_v38 = vpop.xlane.xlu0 %586 }
 0x19c   :  { %v595_v39 = vsub.f32 %v4621_v4, %v587_v38  ;;  %3982 = vpow2.f32 %v345_v53 }
 0x19e   :  { %v4741_v43 = vpop.eup %3978  ;;  %v600_v60 = vmul.f32 1.442695, %v595_v39  ;;  %v247_v44 = vpop.xlane.xlu2 %246 }
 0x19f   :  { %v255_v48 = vsub.f32 %v4625_v13, %v247_v44  ;;  %v439_v50 = vsel %vm241_vm9, %v4741_v43, 0.0 }
 0x1a0   :  { %v420_v51 = vpop.xlane.xlu1 %419  ;;  %440 = vadd.xlane.f32.xlu1 %v439_v50  ;;  %3984 = vpow2.f32 %v600_v60 }
 0x1a1   :  { %v4749_v4 = vpop.eup %3980  ;;  %v260_v45 = vmul.f32 1.442695, %v255_v48  ;;  %v426_v52 = vsub.f32 %v4636_v36, %v420_v51  ;;  %607 = vadd.xlane.f32.xlu0 %v606_v47  ;;  %v95_v36 = vld [vmem:[%s6616_s2 + $0x8] sm:$0x7]  ;;  %s4367_s2 = smov 32  }
 0x1a2   :  { %v524_v37 = vsel %vm241_vm9, %v4749_v4, 0.0  ;;  %v4754_v13 = vpop.eup %3982  ;;  %3537 = vmatpush.msk.msra.mxu0 %vm112_vm0, %v95_v36 }
 0x1a3   :  { %3986 = vpow2.f32 %v260_v45  ;;  %525 = vadd.xlane.f32.xlu2 %v524_v37  ;;  %v432_v63 = vmul.f32 1.442695, %v426_v52  ;;  %v354_v0 = vsel %vm241_vm9, %v4754_v13, 0.0 }
 0x1a4   :  { %3988 = vpow2.f32 %v685_v56  ;;  %131 = vmatpush.msra.mxu0 %v94_v9 }
 0x1a5   :  { %3990 = vpow2.f32 %v432_v63  ;;  %3538 = vmatmul.msk.f32.vlgmr.msra.gmra.mxu0 %vm99_vm1, %v4460_v6 }
 0x1a6   :  { %v335_v61 = vpop.xlane.xlu2 %334  ;;  %v4756_v11 = vpop.eup %3984 }
 0x1a7   :  { %v341_v57 = vsub.f32 %v4642_v23, %v335_v61  ;;  %v609_v17 = vsel %vm241_vm9, %v4756_v11, 0.0 }
 0x1a9   :  { %v4765_v31 = vpop.eup %3986  ;;  %355 = vadd.xlane.f32.xlu0 %v354_v0  ;;  %v347_v33 = vmul.f32 1.442695, %v341_v57 }
 0x1aa   :  { %v269_v23 = vsel %vm241_vm9, %v4765_v31, 0.0  ;;  %v675_v40 = vpop.xlane.xlu0 %674  ;;  %v4776_v21 = vpop.eup %3988 }
 0x1ab   :  { %270 = vadd.xlane.f32.xlu1 %v269_v23  ;;  %610 = vadd.xlane.f32.xlu2 %v609_v17  ;;  %v4778_v27 = vpop.eup %3990  ;;  %3992 = vpow2.f32 %v347_v33  ;;  %v681_v32 = vsub.f32 %v4649_v55, %v675_v40  ;;  %v694_v53 = vsel %vm241_vm9, %v4776_v21, 0.0 }
 0x1ac   :  { %v442_v39 = vsel %vm241_vm9, %v4778_v27, 0.0 }
 0x1ad   :  { %v687_v60 = vmul.f32 1.442695, %v681_v32  ;;  %3539 = vmatmul.msk.f32.gmra.mxu0 %vm99_vm1, %v4489_v14 }
 0x1ae   :  { %v505_v35 = vpop.xlane.xlu2 %504 }
 0x1af   :  { %v511_v29 = vsub.f32 %v4654_v58, %v505_v35 }
 0x1b1   :  { %v517_v38 = vmul.f32 1.442695, %v511_v29  ;;  %695 = vadd.xlane.f32.xlu0 %v694_v53  ;;  %v4788_v44 = vpop.eup %3992 }
 0x1b2   :  { %v357_v46 = vsel %vm241_vm9, %v4788_v44, 0.0 }
 0x1b3   :  { %3994 = vpow2.f32 %v517_v38  ;;  %v250_v6 = vpop.xlane.xlu1 %249  ;;  %443 = vadd.xlane.f32.xlu1 %v442_v39 }
 0x1b4   :  { %3996 = vpow2.f32 %v687_v60  ;;  %v256_v58 = vsub.f32 %v4662_v24, %v250_v6 }
 0x1b5   :  { %3540 = vmatmul.msk.f32.gmra.mxu0 %vm99_vm1, %v4481_v12 }
 0x1b6   :  { %v4790_v55 = vpop.xlane.xlu2 %589  ;;  %v262_v51 = vmul.f32 1.442695, %v256_v58 }
 0x1b8   :  { %3998 = vpow2.f32 %v262_v51 }
 0x1b9   :  { %v4795_v48 = vpop.eup %3994  ;;  %358 = vadd.xlane.f32.xlu0 %v357_v46 }
 0x1ba   :  { %v527_v50 = vsel %vm241_vm9, %v4795_v48, 0.0  ;;  %v4801_v14 = vpop.eup %3996 }
 0x1bb   :  { %528 = vadd.xlane.f32.xlu2 %v527_v50  ;;  %v678_v47 = vpop.xlane.xlu1 %677  ;;  %v697_v52 = vsel %vm241_vm9, %v4801_v14, 0.0 }
 0x1bc   :  { %v682_v37 = vsub.f32 %v4678_v42, %v678_v47 }
 0x1bd   :  { %3541 = vmatmul.msk.f32.gmra.mxu0 %vm99_vm1, %v4465_v7 }
 0x1be   :  { %v338_v45 = vpop.xlane.xlu2 %337  ;;  %v4809_v63 = vpop.eup %3998  ;;  %v689_v12 = vmul.f32 1.442695, %v682_v37 }
 0x1bf   :  { %v342_v24 = vsub.f32 %v4681_v30, %v338_v45  ;;  %v272_v30 = vsel %vm241_vm9, %v4809_v63, 0.0 }
 0x1c1   :  { %v349_v56 = vmul.f32 1.442695, %v342_v24  ;;  %698 = vadd.xlane.f32.xlu0 %v697_v52 }
 0x1c3   :  { %4000 = vpow2.f32 %v349_v56  ;;  %v253_v61 = vpop.xlane.xlu1 %252 }
 0x1c4   :  { %4002 = vpow2.f32 %v689_v12  ;;  %v257_v42 = vsub.f32 %v4689_v54, %v253_v61 }
 0x1c6   :  { %v423_v57 = vpop.xlane.xlu2 %422  ;;  %v264_v23 = vmul.f32 1.442695, %v257_v42 }
 0x1c7   :  { %v427_v36 = vsub.f32 %v4692_v59, %v423_v57 }
 0x1c9   :  { %v4814_v0 = vpop.eup %4000  ;;  %v434_v9 = vmul.f32 1.442695, %v427_v36  ;;  %273 = vadd.xlane.f32.xlu0 %v272_v30 }
 0x1ca   :  { %v360_v7 = vsel %vm241_vm9, %v4814_v0, 0.0  ;;  %v4819_v33 = vpop.eup %4002 }
 0x1cb   :  { %4004 = vpow2.f32 %v434_v9  ;;  %361 = vadd.xlane.f32.xlu1 %v360_v7  ;;  %v700_v54 = vsel %vm241_vm9, %v4819_v33, 0.0 }
 0x1cc   :  { %4006 = vpow2.f32 %v264_v23 }
 0x1ce   :  { %v508_v17 = vpop.xlane.xlu2 %507 }
 0x1cf   :  { %v512_v59 = vsub.f32 %v4700_v8, %v508_v17 }
 0x1d1   :  { %v4822_v40 = vpop.eup %4004  ;;  %v519_v35 = vmul.f32 1.442695, %v512_v59 }
 0x1d2   :  { %v445_v32 = vsel %vm241_vm9, %v4822_v40, 0.0  ;;  %v4828_v29 = vpop.eup %4006 }
 0x1d3   :  { %4008 = vpow2.f32 %v519_v35  ;;  %701 = vadd.xlane.f32.xlu1 %v700_v54  ;;  %446 = vadd.xlane.f32.xlu2 %v445_v32  ;;  %v275_v8 = vsel %vm241_vm9, %v4828_v29, 0.0 }
 0x1d6   :  { %v4836_v39 = vpop.xlane.xlu2 %592 }
 0x1d9   :  { %v4830_v53 = vpop.eup %4008 }
 0x1da   :  { %v530_v38 = vsel %vm241_vm9, %v4830_v53, 0.0 }
 0x1db   :  { %276 = vadd.xlane.f32.xlu2 %v275_v8  ;;  %531 = vadd.xlane.f32.xlu0 %v530_v38 }
 0x1fb   :  { %v353_v60 = vpop.xlane.xlu2 %352 }
 0x1fc   :  { %v363_v36 = vmax.f32 %v353_v60, 1e-20 }
 0x203   :  { %v523_v6 = vpop.xlane.xlu2 %522 }
 0x204   :  { %v438_v58 = vpop.xlane.xlu0 %437  ;;  %v533_v45 = vmax.f32 %v523_v6, 1e-20 }
 0x205   :  { %v448_v47 = vmax.f32 %v438_v58, 1e-20 }
 0x20b   :  { %v4838_v51 = vpop.xlane.xlu2 %267 }
 0x20c   :  { %v693_v46 = vpop.xlane.xlu0 %692 }
 0x20d   :  { %v703_v50 = vmax.f32 %v693_v46, 1e-20 }
 0x20f   :  { %4010 = vrcp.f32 %v703_v50 }
 0x210   :  { %4012 = vrcp.f32 %v448_v47 }
 0x213   :  { %v441_v24 = vpop.xlane.xlu1 %440 }
 0x214   :  { %v449_v52 = vmax.f32 %v441_v24, 1e-20  ;;  %v4840_v37 = vpop.xlane.xlu0 %607 }
 0x215   :  { %v4011_v56 = vpop.eup %4010 }
 0x216   :  { %4014 = vrcp.f32 %v449_v52  ;;  %v526_v12 = vpop.xlane.xlu2 %525  ;;  %v711_v61 = vmul.f32 %v4011_v56, %v4730_v10  ;;  %v4013_v30 = vpop.eup %4012 }
 0x217   :  { %4016 = vrcp.f32 %v533_v45  ;;  %v534_v57 = vmax.f32 %v526_v12, 1e-20  ;;  %v456_v17 = vmul.f32 %v4013_v30, %v4720_v15 }
 0x218   :  { %767 = vrot.lane.b32.xlu0 %v711_v61, %s4367_s2  ;;  %v797_v61 = vlaneseq }
 0x219   :  { %4018 = vrcp.f32 %v534_v57  ;;  %v596_v57 = vsub.f32 %v4665_v49, %v4790_v55  ;;  %v597_v55 = vsub.f32 %v4705_v22, %v4836_v39 }
 0x21a   :  { %4020 = vrcp.f32 %v363_v36  ;;  %v4873_v30 = vand.u32 127, %v797_v61 }
 0x21c   :  { %v4015_v42 = vpop.eup %4014  ;;  %v356_v9 = vpop.xlane.xlu0 %355 }
 0x21d   :  { %v4017_v7 = vpop.eup %4016  ;;  %v364_v23 = vmax.f32 %v356_v9, 1e-20  ;;  %v457_v59 = vmul.f32 %v4015_v42, %v4741_v43  ;;  %v4877_v9 = vshra.s32 %v4873_v30, 4 }
 0x21e   :  { %v541_v54 = vmul.f32 %v4017_v7, %v4718_v62  ;;  %v4850_v58 = vpop.xlane.xlu2 %610  ;;  %v4857_v50 = vpop.xlane.xlu1 %270 }
 0x21f   :  { %v4019_v35 = vpop.eup %4018  ;;  %4022 = vrcp.f32 %v364_v23  ;;  %v3858_v10 = vpack.i.bf16 %v457_v59, %v456_v17  ;;  %v602_v23 = vmul.f32 1.442695, %v596_v57 }
 0x220   :  { %v542_v32 = vmul.f32 %v4019_v35, %v4749_v4  ;;  %v4021_v38 = vpop.eup %4020 }
 0x221   :  { %3859 = vrot.lane.b32.xlu1 %v3858_v10, %s4368_s19  ;;  %v371_v43 = vmul.f32 %v4021_v38, %v4712_v26 }
 0x222   :  { %v3863_v8 = vpack.i.bf16 %v542_v32, %v541_v54  ;;  %v4854_v4 = vpop.f32.mrf.mxu0 }
 0x224   :  { %3864 = vrot.lane.b32.xlu2 %v3863_v8, %s4369_s20  ;;  %v696_v60 = vpop.xlane.xlu0 %695  ;;  %v604_v8 = vmul.f32 1.442695, %v597_v55 }
 0x225   :  { %v4023_v6 = vpop.eup %4022  ;;  %v704_v15 = vmax.f32 %v696_v60, 1e-20 }
 0x226   :  { %v372_v46 = vmul.f32 %v4023_v6, %v4754_v13  ;;  %v4863_v26 = vpop.xlane.xlu1 %443 }
 0x227   :  { %4024 = vrcp.f32 %v704_v15 }
 0x228   :  { %v3853_v62 = vpack.i.bf16 %v372_v46, %v371_v43 }
 0x22a   :  { %3854 = vrot.lane.b32.xlu0 %v3853_v62, %s4367_s2  ;;  %v4861_v56 = vpop.f32.mrf.mxu0 }
 0x22c   :  { %v359_v22 = vpop.xlane.xlu0 %358 }
 0x22d   :  { %v4025_v47 = vpop.eup %4024 }
 0x22e   :  { %v529_v45 = vpop.xlane.xlu2 %528  ;;  %v712_v24 = vmul.f32 %v4025_v47, %v4776_v21  ;;  %v4871_v21 = vshrl.u32 %v797_v61, 7 }
 0x22f   :  { %v535_v52 = vmax.f32 %v529_v45, 1e-20 }
 0x230   :  { %769 = vrot.lane.b32.xlu2 %v712_v24, %s4367_s2  ;;  %v813_v42 = vadd.s32 120, %v4871_v21  ;;  %v812_v7 = vadd.s32 112, %v4871_v21  ;;  %v810_v49 = vadd.s32 96, %v4871_v21  ;;  %v809_v39 = vadd.s32 88, %v4871_v21 }
 0x231   :  { %4026 = vrcp.f32 %v535_v52  ;;  %v808_v6 = vadd.s32 80, %v4871_v21  ;;  %v807_v62 = vadd.s32 72, %v4871_v21  ;;  %v806_v47 = vadd.s32 64, %v4871_v21 }
 0x232   :  { %v4868_v36 = vpop.f32.mrf.mxu0  ;;  %v4884_v59 = vshra.s32 %v813_v42, 5  ;;  %v4886_v35 = vshra.s32 %v812_v7, 5  ;;  %4028 = vpow2.f32 %v602_v23  ;;  %v4896_v32 = vshra.s32 %v810_v49, 5 }
 0x233   :  { %4030 = vpow2.f32 %v604_v8  ;;  %v4906_v60 = vshra.s32 %v809_v39, 5  ;;  %v4914_v46 = vshra.s32 %v808_v6, 5  ;;  %v4923_v24 = vshra.s32 %v807_v62, 5 }
 0x234   :  { %vm864_vm0 = vcmp.eq.s32.totalorder %v4884_v59, %v4877_v9  ;;  %vm863_vm1 = vcmp.eq.s32.totalorder %v4886_v35, %v4877_v9  ;;  %vm861_vm7 = vcmp.eq.s32.totalorder %v4896_v32, %v4877_v9  ;;  %v4925_v52 = vshra.s32 %v806_v47, 5 }
 0x235   :  { %vm860_vm8 = vcmp.eq.s32.totalorder %v4906_v60, %v4877_v9  ;;  %vm859_vm10 = vcmp.eq.s32.totalorder %v4914_v46, %v4877_v9  ;;  %vm858_vm11 = vcmp.eq.s32.totalorder %v4923_v24, %v4877_v9  ;;  %v805_v61 = vadd.s32 56, %v4871_v21 }
 0x236   :  { %v821_v57 = vadd.s32 184, %v4871_v21  ;;  %v365_v42 = vmax.f32 %v359_v22, 1e-20  ;;  %vm857_vm12 = vcmp.eq.s32.totalorder %v4925_v52, %v4877_v9  ;;  %v804_v49 = vadd.s32 48, %v4871_v21 }
 0x237   :  { %v4027_v13 = vpop.eup %4026  ;;  %v820_v55 = vadd.s32 176, %v4871_v21  ;;  %v450_v6 = vmax.f32 %v4863_v26, 1e-20  ;;  %v803_v62 = vadd.s32 40, %v4871_v21  ;;  %v802_v47 = vadd.s32 32, %v4871_v21 }
 0x238   :  { %v543_v12 = vmul.f32 %v4027_v13, %v4795_v48  ;;  %v811_v48 = vadd.s32 104, %v4871_v21  ;;  %v4909_v15 = vpop.eup %4028  ;;  %v4941_v23 = vshra.s32 %v821_v57, 5  ;;  %v4953_v22 = vshra.s32 %v804_v49, 5 }
 0x239   :  { %v612_v45 = vsel %vm241_vm9, %v4909_v15, 0.0  ;;  %v4927_v13 = vpop.eup %4030  ;;  %v817_v49 = vadd.s32 152, %v4871_v21  ;;  %v799_v19 = vadd.s32 8, %v4871_v21  ;;  %v814_v2 = vadd.s32 128, %v4871_v21 }
 0x23a   :  { %755 = vrot.lane.b32.xlu2 %v543_v12, %s4369_s20  ;;  %v4888_v10 = vshra.s32 %v811_v48, 5  ;;  %v4892_v54 = vpop.f32.mrf.mxu0  ;;  %v4929_v12 = vpop.xlane.xlu0 %698  ;;  %v4939_v48 = vshra.s32 %v805_v61, 5  ;;  %v615_v39 = vsel %vm241_vm9, %v4927_v13, 0.0  ;;  %vm872_vm14 = vcmp.eq.s32.totalorder %v4941_v23, %v4877_v9 }
 0x23b   :  { %3552 = vmatpush.msk.msra.mxu3 %vm864_vm0, %v4892_v54  ;;  %3568 = vmatpush.msk.msrb.mxu2 %vm872_vm14, %v4892_v54  ;;  %vm855_vm15 = vcmp.eq.s32.totalorder %v4953_v22, %v4877_v9  ;;  %v818_v61 = vadd.s32 160, %v4871_v21  ;;  %vm783_vm14 = vcmask 523264  }
 0x23c   :  { %vm862_vm6 = vcmp.eq.s32.totalorder %v4888_v10, %v4877_v9  ;;  %vm856_vm13 = vcmp.eq.s32.totalorder %v4939_v48, %v4877_v9 }
 0x23d   :  { %3553 = vmatpush.msk.msra.mxu3 %vm863_vm1, %v4868_v36 }
 0x23e   :  { %v362_v17 = vpop.xlane.xlu1 %361 }
 0x23f   :  { %3554 = vmatpush.msk.msra.mxu3 %vm862_vm6, %v4861_v56  ;;  %v366_v7 = vmax.f32 %v362_v17, 1e-20 }
 0x241   :  { %3555 = vmatpush.msk.msra.mxu3 %vm861_vm7, %v4854_v4 }
 0x243   :  { %3556 = vmatpush.msk.msra.mxu3 %vm860_vm8, %v4892_v54 }
 0x245   :  { %3557 = vmatpush.msk.msra.mxu3 %vm859_vm10, %v4868_v36 }
 0x246   :  { %v702_v38 = vpop.xlane.xlu1 %701 }
 0x247   :  { %v706_v43 = vmax.f32 %v702_v38, 1e-20  ;;  %3558 = vmatpush.msk.msra.mxu3 %vm858_vm11, %v4861_v56  ;;  %v447_v38 = vpop.xlane.xlu2 %446 }
 0x248   :  { %v451_v26 = vmax.f32 %v447_v38, 1e-20  ;;  %v4985_v38 = vpop.xlane.xlu0 %273 }
 0x249   :  { %4032 = vrcp.f32 %v706_v43  ;;  %3559 = vmatpush.msk.msra.mxu3 %vm857_vm12, %v4854_v4  ;;  %v4957_v43 = vshra.s32 %v820_v55, 5  ;;  %v4981_v55 = vshra.s32 %v818_v61, 5 }
 0x24a   :  { %4034 = vrcp.f32 %v365_v42  ;;  %v4974_v42 = vshra.s32 %v802_v47, 5 }
 0x24b   :  { %613 = vadd.xlane.f32.xlu1 %v612_v45  ;;  %4036 = vrcp.f32 %v366_v7  ;;  %3560 = vmatpush.msk.msra.mxu3 %vm856_vm13, %v4892_v54  ;;  %vm871_vm2 = vcmp.eq.s32.totalorder %v4957_v43, %v4877_v9  ;;  %v4968_v45 = vshra.s32 %v803_v62, 5  ;;  %v801_v7 = vadd.s32 24, %v4871_v21 }
 0x24c   :  { %6669 = vst [vmem:[#allocation14_spill] sm:$0xff] %v4974_v42  ;;  %3569 = vmatpush.msk.msrb.mxu2 %vm871_vm2, %v4868_v36  ;;  %vm853_vm4 = vcmp.eq.s32.totalorder %v4974_v42, %v4877_v9  ;;  %v4994_v62 = vshra.s32 %v817_v49, 5  ;;  %vm869_vm0 = vcmp.eq.s32.totalorder %v4981_v55, %v4877_v9  ;;  %4038 = vrcp.f32 %v451_v26 }
 0x24d   :  { %6668 = vst [vmem:[#allocation13_spill] sm:$0xff] %v4968_v45  ;;  %3561 = vmatpush.msk.msra.mxu3 %vm855_vm15, %v4868_v36  ;;  %vm854_vm5 = vcmp.eq.s32.totalorder %v4968_v45, %v4877_v9  ;;  %v5013_v49 = vshra.s32 %v799_v19, 5  ;;  %4040 = vrcp.f32 %v450_v6  ;;  %v5030_v19 = vshra.s32 %v814_v2, 5 }
 0x24e   :  { %vm868_vm6 = vcmp.eq.s32.totalorder %v4994_v62, %v4877_v9  ;;  %v705_v26 = vmax.f32 %v4929_v12, 1e-20  ;;  %vm788_vm15 = vcmask 785408  }
 0x24f   :  { %v4033_v8 = vpop.eup %4032  ;;  %3562 = vmatpush.msk.msra.mxu3 %vm854_vm5, %v4861_v56  ;;  %6672 = vst [vmem:[#allocation17_spill] sm:$0xff] %v5013_v49  ;;  %vm850_vm10 = vcmp.eq.s32.totalorder %v5013_v49, %v4877_v9  ;;  %vm865_vm13 = vcmp.eq.s32.totalorder %v5030_v19, %v4877_v9 }
 0x250   :  { %v714_v17 = vmul.f32 %v4033_v8, %v4819_v33  ;;  %v819_v33 = vadd.s32 168, %v4871_v21  ;;  %v800_v8 = vadd.s32 16, %v4871_v21  ;;  %4042 = vrcp.f32 %v705_v26 }
 0x251   :  { %3563 = vmatpush.msk.msra.mxu3 %vm853_vm4, %v4854_v4 }
 0x252   :  { %773 = vrot.lane.b32.xlu2 %v714_v17, %s4367_s2  ;;  %v4972_v57 = vshra.s32 %v819_v33, 5  ;;  %v4992_v17 = vshra.s32 %v801_v7, 5  ;;  %v4035_v33 = vpop.eup %4034  ;;  %v4999_v47 = vshra.s32 %v800_v8, 5  ;;  %v815_v7 = vadd.s32 136, %v4871_v21 }
 0x253   :  { %v4037_v1 = vpop.eup %4036  ;;  %v373_v2 = vmul.f32 %v4035_v33, %v4788_v44 }
 0x254   :  { %616 = vadd.xlane.f32.xlu0 %v615_v39  ;;  %v816_v39 = vadd.s32 144, %v4871_v21  ;;  %vm870_vm3 = vcmp.eq.s32.totalorder %v4972_v57, %v4877_v9  ;;  %6670 = vst [vmem:[#allocation15_spill] sm:$0xff] %v4992_v17  ;;  %vm852_vm1 = vcmp.eq.s32.totalorder %v4992_v17, %v4877_v9  ;;  %vm851_vm7 = vcmp.eq.s32.totalorder %v4999_v47, %v4877_v9  ;;  %v4039_v6 = vpop.eup %4038 }
 0x255   :  { %3570 = vmatpush.msk.msrb.mxu2 %vm870_vm3, %v4861_v56  ;;  %6671 = vst [vmem:[#allocation16_spill] sm:$0xff] %v4999_v47  ;;  %3564 = vmatpush.msk.msra.mxu3 %vm852_vm1, %v4892_v54  ;;  %v5018_v8 = vshra.s32 %v815_v7, 5  ;;  %v4041_v12 = vpop.eup %4040 }
 0x256   :  { %v5001_v61 = vshra.s32 %v816_v39, 5  ;;  %v5021_v39 = vshra.s32 %v4871_v21, 5  ;;  %v532_v21 = vpop.xlane.xlu0 %531  ;;  %v4043_v18 = vpop.eup %4042 }
 0x257   :  { %3571 = vmatpush.msk.msrb.mxu2 %vm869_vm0, %v4854_v4  ;;  %3565 = vmatpush.msk.msra.mxu3 %vm851_vm7, %v4868_v36  ;;  %vm866_vm11 = vcmp.eq.s32.totalorder %v5018_v8, %v4877_v9  ;;  %v713_v44 = vmul.f32 %v4043_v18, %v4801_v14 }
 0x258   :  { %vm867_vm8 = vcmp.eq.s32.totalorder %v5001_v61, %v4877_v9  ;;  %6673 = vst [vmem:[#allocation18_spill] sm:$0xff] %v5021_v39  ;;  %vm849_vm12 = vcmp.eq.s32.totalorder %v5021_v39, %v4877_v9 }
 0x259   :  { %3572 = vmatpush.msk.msrb.mxu2 %vm868_vm6, %v4892_v54  ;;  %v374_v54 = vmul.f32 %v4037_v1, %v4814_v0  ;;  %3566 = vmatpush.msk.msra.mxu3 %vm850_vm10, %v4861_v56  ;;  %v459_v1 = vmul.f32 %v4039_v6, %v4822_v40  ;;  %v458_v0 = vmul.f32 %v4041_v12, %v4778_v27  ;;  %v618_v40 = vmax.f32 %v4840_v37, 1e-20 }
 0x25a   :  { %v619_v27 = vmax.f32 %v4850_v58, 1e-20  ;;  %v278_v6 = vmax.f32 %v4838_v51, 1e-20  ;;  %v279_v58 = vmax.f32 %v4857_v50, 1e-20 }
 0x25b   :  { %3573 = vmatpush.msk.msrb.mxu2 %vm867_vm8, %v4868_v36  ;;  %3567 = vmatpush.msk.msra.mxu3 %vm849_vm12, %v4854_v4  ;;  %v536_v36 = vmax.f32 %v532_v21, 1e-20  ;;  %v3868_v7 = vpack.i.bf16 %v374_v54, %v373_v2  ;;  %v3873_v9 = vpack.i.bf16 %v459_v1, %v458_v0 }
 0x25d   :  { %3574 = vmatpush.msk.msrb.mxu2 %vm866_vm11, %v4861_v56  ;;  %4044 = vrcp.f32 %v536_v36 }
 0x25e   :  { %4046 = vrcp.f32 %v618_v40 }
 0x25f   :  { %3575 = vmatpush.msk.msrb.mxu2 %vm865_vm13, %v4854_v4  ;;  %v277_v4 = vpop.xlane.xlu2 %276  ;;  %4048 = vrcp.f32 %v619_v27 }
 0x260   :  { %4050 = vrcp.f32 %v278_v6 }
 0x261   :  { %4052 = vrcp.f32 %v279_v58 }
 0x263   :  { %v4045_v56 = vpop.eup %4044 }
 0x264   :  { %3869 = vrot.lane.b32.xlu1 %v3868_v7, %s4367_s2  ;;  %v544_v33 = vmul.f32 %v4045_v56, %v4830_v53  ;;  %v4047_v26 = vpop.eup %4046 }
 0x265   :  { %v626_v54 = vmul.f32 %v4047_v26, %v4739_v34  ;;  %v4049_v53 = vpop.eup %4048 }
 0x266   :  { %v627_v37 = vmul.f32 %v4049_v53, %v4756_v11  ;;  %v4051_v34 = vpop.eup %4050 }
 0x267   :  { %v286_v1 = vmul.f32 %v4051_v34, %v4727_v5 }
 0x268   :  { %3874 = vrot.lane.b32.xlu0 %v3873_v9, %s4368_s19  ;;  %v4053_v9 = vpop.eup %4052 }
 0x269   :  { %v287_v50 = vmul.f32 %v4053_v9, %v4765_v31  ;;  %v281_v31 = vmax.f32 %v277_v4, 1e-20 }
 0x26c   :  { %771 = vrot.lane.b32.xlu1 %v713_v44, %s4367_s2 }
 0x270   :  { %757 = vrot.lane.b32.xlu0 %v544_v33, %s4369_s20 }
 0x27e   :  { %v3865_v21 = vpop.permute.xlu2 %3864 }
 0x27f   :  { %v3866_v51 = vunpack.i.l.bf16 %v3865_v21 }
 0x28a   :  { %v768_v18 = vpop.permute.xlu0 %767  ;;  %v770_v2 = vpop.permute.xlu2 %769 }
 0x28b   :  { %v793_v14 = vsel %vm241_vm9, %v626_v54, %v768_v18  ;;  %v794_v12 = vsel %vm241_vm9, %v627_v37, %v770_v2  ;;  %v3867_v54 = vunpack.i.h.bf16 %v3865_v21 }
 0x28c   :  { %3576 = vmatmul.msk.f32.vlgmr.msrb.gmra.mxu2 %vm783_vm14, %v793_v14  ;;  %v280_v14 = vmax.f32 %v4985_v38, 1e-20 }
 0x28e   :  { %4054 = vrcp.f32 %v280_v14 }
 0x293   :  { %v3860_v36 = vpop.permute.xlu1 %3859 }
 0x294   :  { %3577 = vmatmul.msk.f32.gmra.mxu2 %vm783_vm14, %v794_v12  ;;  %v3861_v44 = vunpack.i.l.bf16 %v3860_v36  ;;  %v3862_v26 = vunpack.i.h.bf16 %v3860_v36  ;;  %v4055_v58 = vpop.eup %4054  ;;  %v756_v38 = vpop.permute.xlu2 %755 }
 0x29c   :  { %v3855_v7 = vpop.permute.xlu0 %3854 }
 0x29d   :  { %v3856_v0 = vunpack.i.l.bf16 %v3855_v7  ;;  %v3857_v56 = vunpack.i.h.bf16 %v3855_v7  ;;  %v288_v7 = vmul.f32 %v4055_v58, %v4809_v63  ;;  %v1024_v58 = vld [vmem:[%s6620_s6 + $0x48] sm:$0xff] }
 0x29f   :  { %v779_v11 = vsel %vm241_vm9, %v286_v1, %v3856_v0  ;;  %v780_v27 = vsel %vm241_vm9, %v287_v50, %v3857_v56 }
 0x2a0   :  { %v784_v33 = vsel %vm783_vm14, %v779_v11, %v3861_v44  ;;  %v785_v5 = vsel %vm783_vm14, %v780_v27, %v3862_v26 }
 0x2a1   :  { %v789_v40 = vsel %vm788_vm15, %v784_v33, %v3866_v51  ;;  %v790_v18 = vsel %vm788_vm15, %v785_v5, %v3867_v54 }
 0x2a2   :  { %925 = vmatmul.f32.vlgmr.msra.gmra.mxu3 %v789_v40 }
 0x2aa   :  { %928 = vmatmul.f32.gmra.mxu3 %v790_v18 }
 0x2ac   :  { %v774_v54 = vpop.permute.xlu2 %773 }
 0x2be   :  { %v614_v53 = vpop.xlane.xlu1 %613 }
 0x2bf   :  { %v620_v6 = vmax.f32 %v614_v53, 1e-20  ;;  %v1013_v53 = vld [vmem:[%s6619_s5 + $0xb0] sm:$0xff] }
 0x2c0   :  { %1044 = vmatpush.msrb.mxu0 %v1013_v53  ;;  %v991_v53 = vld [vmem:[%s6619_s5] sm:$0xff] }
 0x2c1   :  { %4056 = vrcp.f32 %v620_v6  ;;  %v1011_v6 = vld [vmem:[%s6619_s5 + $0xa0] sm:$0xff] }
 0x2c2   :  { %4058 = vrcp.f32 %v281_v31  ;;  %v1025_v31 = vld [vmem:[%s6620_s6 + $0x50] sm:$0xff]  ;;  %1045 = vmatpush.msrb.mxu0 %v1011_v6 }
 0x2c7   :  { %v617_v2 = vpop.xlane.xlu0 %616  ;;  %v4057_v36 = vpop.eup %4056 }
 0x2c8   :  { %v621_v37 = vmax.f32 %v617_v2, 1e-20  ;;  %v628_v44 = vmul.f32 %v4057_v36, %v4909_v15  ;;  %v4059_v56 = vpop.eup %4058  ;;  %v1012_v2 = vld [vmem:[%s6619_s5 + $0xa8] sm:$0xff] }
 0x2c9   :  { %v289_v40 = vmul.f32 %v4059_v56, %v4828_v29  ;;  %v1014_v29 = vld [vmem:[%s6619_s5 + $0xb8] sm:$0xff]  ;;  %v1008_v36 = vld [vmem:[%s6619_s5 + $0x88] sm:$0xff] }
 0x2ca   :  { %4060 = vrcp.f32 %v621_v37  ;;  %1073 = vmatpush.msrb.mxu1 %v1014_v29  ;;  %v1009_v37 = vld [vmem:[%s6619_s5 + $0x90] sm:$0xff]  ;;  %v1020_v56 = vld [vmem:[%s6620_s6 + $0x28] sm:$0xff] }
 0x2cb   :  { %1046 = vmatpush.msrb.mxu0 %v1009_v37  ;;  %v992_v29 = vld [vmem:[%s6619_s5 + $0x8] sm:$0xff] }
 0x2cc   :  { %1074 = vmatpush.msrb.mxu1 %v1012_v2 }
 0x2d0   :  { %v4061_v33 = vpop.eup %4060 }
 0x2d1   :  { %v629_v26 = vmul.f32 %v4061_v33, %v4927_v13  ;;  %v1026_v13 = vld [vmem:[%s6620_s6 + $0x58] sm:$0xff]  ;;  %v1000_v33 = vld [vmem:[%s6619_s5 + $0x48] sm:$0xff] }
 0x2d2   :  { %1102 = vmatpush.msra.mxu2 %v1026_v13  ;;  %v1015_v13 = vld [vmem:[%s6620_s6] sm:$0xff] }
 0x2d3   :  { %v796_v14 = vsel %vm241_vm9, %v629_v26, %v774_v54  ;;  %v995_v26 = vld [vmem:[%s6619_s5 + $0x20] sm:$0xff]  ;;  %v993_v54 = vld [vmem:[%s6619_s5 + $0x10] sm:$0xff] }
 0x2d4   :  { %1103 = vmatpush.msra.mxu2 %v1025_v31 }
 0x2d6   :  { %v3870_v12 = vpop.permute.xlu1 %3869  ;;  %1104 = vmatpush.msra.mxu2 %v1024_v58 }
 0x2d7   :  { %v3871_v34 = vunpack.i.l.bf16 %v3870_v12  ;;  %v3872_v50 = vunpack.i.h.bf16 %v3870_v12  ;;  %v1010_v12 = vld [vmem:[%s6619_s5 + $0x98] sm:$0xff] }
 0x2d8   :  { %1075 = vmatpush.msrb.mxu1 %v1010_v12 }
 0x2d9   :  { %v781_v0 = vsel %vm241_vm9, %v288_v7, %v3871_v34  ;;  %v782_v5 = vsel %vm241_vm9, %v289_v40, %v3872_v50  ;;  %v1007_v34 = vld [vmem:[%s6619_s5 + $0x80] sm:$0xff]  ;;  %v998_v40 = vld [vmem:[%s6619_s5 + $0x38] sm:$0xff] }
 0x2da   :  { %v3875_v21 = vpop.permute.xlu0 %3874  ;;  %v1023_v7 = vld [vmem:[%s6620_s6 + $0x40] sm:$0xff]  ;;  %1047 = vmatpush.msrb.mxu0 %v1007_v34  ;;  %1076 = vmatpush.msrb.mxu1 %v1008_v36 }
 0x2db   :  { %v3876_v1 = vunpack.i.l.bf16 %v3875_v21  ;;  %v3877_v63 = vunpack.i.h.bf16 %v3875_v21  ;;  %1105 = vmatpush.msra.mxu2 %v1023_v7  ;;  %v1005_v21 = vld [vmem:[%s6619_s5 + $0x70] sm:$0xff]  ;;  %v1019_v50 = vld [vmem:[%s6620_s6 + $0x20] sm:$0xff] }
 0x2dc   :  { %1048 = vmatpush.msrb.mxu0 %v1005_v21 }
 0x2dd   :  { %v786_v9 = vsel %vm783_vm14, %v781_v0, %v3876_v1  ;;  %v787_v15 = vsel %vm783_vm14, %v782_v5, %v3877_v63  ;;  %v1006_v1 = vld [vmem:[%s6619_s5 + $0x78] sm:$0xff]  ;;  %v997_v63 = vld [vmem:[%s6619_s5 + $0x30] sm:$0xff]  ;;  %v996_v5 = vld [vmem:[%s6619_s5 + $0x28] sm:$0xff] }
 0x2de   :  { %v772_v51 = vpop.permute.xlu1 %771  ;;  %v791_v4 = vsel %vm788_vm15, %v786_v9, %v756_v38  ;;  %v1022_v0 = vld [vmem:[%s6620_s6 + $0x38] sm:$0xff]  ;;  %1077 = vmatpush.msrb.mxu1 %v1006_v1  ;;  %v1003_v38 = vld [vmem:[%s6619_s5 + $0x60] sm:$0xff]  ;;  %v1004_v9 = vld [vmem:[%s6619_s5 + $0x68] sm:$0xff] }
 0x2df   :  { %931 = vmatmul.f32.gmra.mxu3 %v791_v4  ;;  %v795_v11 = vsel %vm241_vm9, %v628_v44, %v772_v51  ;;  %1106 = vmatpush.msra.mxu2 %v1022_v0  ;;  %v1021_v44 = vld [vmem:[%s6620_s6 + $0x30] sm:$0xff]  ;;  %v1002_v4 = vld [vmem:[%s6619_s5 + $0x58] sm:$0xff] }
 0x2e0   :  { %3578 = vmatmul.msk.f32.gmra.mxu2 %vm783_vm14, %v795_v11  ;;  %1049 = vmatpush.msrb.mxu0 %v1003_v38  ;;  %v1001_v51 = vld [vmem:[%s6619_s5 + $0x50] sm:$0xff]  ;;  %v999_v11 = vld [vmem:[%s6619_s5 + $0x40] sm:$0xff] }
 0x2e1   :  { %1078 = vmatpush.msrb.mxu1 %v1004_v9  ;;  %1107 = vmatpush.msra.mxu2 %v1021_v44 }
 0x2e2   :  { %v758_v27 = vpop.permute.xlu0 %757  ;;  %1050 = vmatpush.msrb.mxu0 %v1001_v51 }
 0x2e3   :  { %v792_v18 = vsel %vm788_vm15, %v787_v15, %v758_v27  ;;  %1079 = vmatpush.msrb.mxu1 %v1002_v4  ;;  %1108 = vmatpush.msra.mxu2 %v1020_v56  ;;  %v1018_v27 = vld [vmem:[%s6620_s6 + $0x18] sm:$0xff]  ;;  %v1017_v15 = vld [vmem:[%s6620_s6 + $0x10] sm:$0xff] }
 0x2e4   :  { %1051 = vmatpush.msrb.mxu0 %v999_v11 }
 0x2e5   :  { %1080 = vmatpush.msrb.mxu1 %v1000_v33  ;;  %1109 = vmatpush.msra.mxu2 %v1019_v50 }
 0x2e6   :  { %1052 = vmatpush.msrb.mxu0 %v997_v63 }
 0x2e7   :  { %934 = vmatmul.f32.gmra.mxu3 %v792_v18  ;;  %1081 = vmatpush.msrb.mxu1 %v998_v40  ;;  %v994_v18 = vld [vmem:[%s6619_s5 + $0x18] sm:$0xff] }
 0x2e8   :  { %3579 = vmatmul.msk.f32.gmra.mxu2 %vm783_vm14, %v796_v14  ;;  %1053 = vmatpush.msrb.mxu0 %v995_v26  ;;  %v1016_v14 = vld [vmem:[%s6620_s6 + $0x8] sm:$0xff] }
 0x2e9   :  { %1110 = vmatpush.msra.mxu2 %v1018_v27  ;;  %1082 = vmatpush.msrb.mxu1 %v996_v5 }
 0x2ea   :  { %1054 = vmatpush.msrb.mxu0 %v993_v54 }
 0x2eb   :  { %1111 = vmatpush.msra.mxu2 %v1017_v15  ;;  %1083 = vmatpush.msrb.mxu1 %v994_v18 }
 0x2ec   :  { %1055 = vmatpush.msrb.mxu0 %v991_v53 }
 0x2ed   :  { %1112 = vmatpush.msra.mxu2 %v1016_v14  ;;  %1084 = vmatpush.msrb.mxu1 %v992_v29 }
 0x2ef   :  { %1113 = vmatpush.msra.mxu2 %v1015_v13  ;;  %v1027_v13 = vld [vmem:[%s6621_s7] sm:$0x3f] }
 0x30f   :  { %v955_v6 = vpop.f32.mrf.mxu2 }
 0x317   :  { %v958_v58 = vpop.f32.mrf.mxu2 }
 0x325   :  { %v926_v2 = vpop.f32.mrf.mxu3 }
 0x326   :  { %v956_v31 = vadd.f32 %v955_v6, %v926_v2  ;;  %v6674_v2 = vmov 5  }
 0x328   :  { %v971_v37 = vmin.f32 %v956_v31, 0.0  ;;  %vm967_vm2 = vcmp.gt.f32.partialorder %v956_v31, 0.0 }
 0x32a   :  { %v975_v12 = vmul.f32 1.442695, %v971_v37 }
 0x32c   :  { %4062 = vpow2.f32 %v975_v12  ;;  %v6676_v12 = vmov 3  }
 0x32d   :  { %v929_v34 = vpop.f32.mrf.mxu3 }
 0x32e   :  { %v959_v36 = vadd.f32 %v958_v58, %v929_v34  ;;  %v6677_v58 = vmov 2  }
 0x330   :  { %v972_v7 = vmin.f32 %v959_v36, 0.0  ;;  %vm968_vm5 = vcmp.gt.f32.partialorder %v959_v36, 0.0 }
 0x332   :  { %v4063_v21 = vpop.eup %4062  ;;  %v977_v1 = vmul.f32 1.442695, %v972_v7 }
 0x333   :  { %v3580_v0 = vadd.f32 -1.0, %v4063_v21 }
 0x334   :  { %4064 = vpow2.f32 %v977_v1  ;;  %v5234_v1 = vadd.s32 128, %v4873_v30 }
 0x335   :  { %v987_v38 = vsel %vm967_vm2, %v956_v31, %v3580_v0  ;;  %v6675_v31 = vmov 1  }
 0x336   :  { %3584 = vmatmul.msk.f32.vlgmr.msrb.gmra.mxu0 %vm788_vm15, %v987_v38  ;;  %3588 = vmatmul.msk.f32.vlgmr.msrb.gmra.mxu1 %vm788_vm15, %v987_v38 }
 0x337   :  { %3592 = vmatmul.msk.f32.vlgmr.msra.gmra.mxu2 %vm788_vm15, %v987_v38 }
 0x33a   :  { %v4065_v9 = vpop.eup %4064 }
 0x33b   :  { %v3581_v44 = vadd.f32 -1.0, %v4065_v9  ;;  %v5241_v9 = vshra.s32 %v4873_v30, 5 }
 0x33d   :  { %v988_v51 = vsel %vm968_vm5, %v959_v36, %v3581_v44  ;;  %v5244_v44 = vshra.s32 %v5234_v1, 5  ;;  %vm1777_vm0 = vcmp.eq.s32.totalorder %v4884_v59, %v5241_v9  ;;  %vm1793_vm1 = vcmp.eq.s32.totalorder %v4941_v23, %v5241_v9 }
 0x33e   :  { %3585 = vmatmul.msk.f32.gmra.mxu0 %vm788_vm15, %v988_v51  ;;  %3589 = vmatmul.msk.f32.gmra.mxu1 %vm788_vm15, %v988_v51  ;;  %vm1775_vm8 = vcmp.eq.s32.totalorder %v4886_v35, %v5241_v9  ;;  %vm1791_vm10 = vcmp.eq.s32.totalorder %v4957_v43, %v5241_v9  ;;  %vm1773_vm13 = vcmp.eq.s32.totalorder %v4888_v10, %v5241_v9 }
 0x33f   :  { %3593 = vmatmul.msk.f32.gmra.mxu2 %vm788_vm15, %v988_v51  ;;  %vm1778_vm6 = vcmp.eq.s32.totalorder %v4884_v59, %v5244_v44  ;;  %vm1794_vm7 = vcmp.eq.s32.totalorder %v4941_v23, %v5244_v44  ;;  %vm1776_vm11 = vcmp.eq.s32.totalorder %v4886_v35, %v5244_v44  ;;  %vm1792_vm12 = vcmp.eq.s32.totalorder %v4957_v43, %v5244_v44 }
 0x340   :  { %vm1789_vm2 = vcmp.eq.s32.totalorder %v4972_v57, %v5241_v9  ;;  %vm1774_vm5 = vcmp.eq.s32.totalorder %v4888_v10, %v5244_v44 }
 0x362   :  { %v932_v4 = vpop.f32.mrf.mxu3 }
 0x363   :  { %v961_v56 = vpop.f32.mrf.mxu2 }
 0x364   :  { %v962_v11 = vadd.f32 %v961_v56, %v932_v4 }
 0x366   :  { %v973_v33 = vmin.f32 %v962_v11, 0.0  ;;  %vm969_vm3 = vcmp.gt.f32.partialorder %v962_v11, 0.0 }
 0x368   :  { %v979_v50 = vmul.f32 1.442695, %v973_v33 }
 0x36a   :  { %4066 = vpow2.f32 %v979_v50  ;;  %v935_v63 = vpop.f32.mrf.mxu3 }
 0x36b   :  { %v964_v40 = vpop.f32.mrf.mxu2 }
 0x36c   :  { %v965_v27 = vadd.f32 %v964_v40, %v935_v63 }
 0x36e   :  { %v974_v26 = vmin.f32 %v965_v27, 0.0  ;;  %vm970_vm4 = vcmp.gt.f32.partialorder %v965_v27, 0.0 }
 0x370   :  { %v4067_v5 = vpop.eup %4066  ;;  %v981_v15 = vmul.f32 1.442695, %v974_v26 }
 0x371   :  { %v3582_v54 = vadd.f32 -1.0, %v4067_v5 }
 0x372   :  { %4068 = vpow2.f32 %v981_v15 }
 0x373   :  { %v989_v18 = vsel %vm969_vm3, %v962_v11, %v3582_v54  ;;  %vm1790_vm3 = vcmp.eq.s32.totalorder %v4972_v57, %v5244_v44 }
 0x374   :  { %3586 = vmatmul.msk.f32.gmra.mxu0 %vm788_vm15, %v989_v18  ;;  %3590 = vmatmul.msk.f32.gmra.mxu1 %vm788_vm15, %v989_v18 }
 0x375   :  { %3594 = vmatmul.msk.f32.gmra.mxu2 %vm788_vm15, %v989_v18 }
 0x378   :  { %v4069_v14 = vpop.eup %4068 }
 0x379   :  { %v3583_v53 = vadd.f32 -1.0, %v4069_v14 }
 0x37b   :  { %v990_v29 = vsel %vm970_vm4, %v965_v27, %v3583_v53  ;;  %vm1771_vm4 = vcmp.eq.s32.totalorder %v4896_v32, %v5241_v9 }
 0x37c   :  { %3587 = vmatmul.msk.f32.gmra.mxu0 %vm788_vm15, %v990_v29  ;;  %3591 = vmatmul.msk.f32.gmra.mxu1 %vm788_vm15, %v990_v29 }
 0x37d   :  { %3595 = vmatmul.msk.f32.gmra.mxu2 %vm788_vm15, %v990_v29  ;;  %3596 = vmatpush.xpose.msk.msrb.mxu3 %vm788_vm15, %v990_v29 }
 0x381   :  { %3597 = vmatpush.xpose.msk.msrb.mxu3 %vm788_vm15, %v989_v18 }
 0x385   :  { %3598 = vmatpush.xpose.msk.msrb.mxu3 %vm788_vm15, %v988_v51 }
 0x389   :  { %3599 = vmatpush.xpose.msk.msrb.mxu3 %vm788_vm15, %v987_v38 }
 0x38c   :  { %3600 = vmatmul.msk.f32.vlgmr.msrb.gmra.mxu3 %vm788_vm15, %v1027_v13 }
 0x3b3   :  { %v5222_v34 = vpop.f32.mrf.mxu0  ;;  %v5224_v36 = vpop.f32.mrf.mxu1 }
 0x3ba   :  { %v1115_v6 = vpop.f32.mrf.mxu2 }
 0x3bb   :  { %1410 = vperm.xlu2 %3844, %v1115_v6   ;;  %1325 = vperm.xlu0 %3879, %v1115_v6   ;;  %v5228_v7 = vpop.f32.mrf.mxu0  ;;  %v5230_v21 = vpop.f32.mrf.mxu1 }
 0x3bc   :  { %1240 = vperm.xlu1 %3878, %v1115_v6  }
 0x3c2   :  { %v1118_v37 = vpop.f32.mrf.mxu2 }
 0x3c3   :  { %3882 = vset.pattern.permute.xlu2 %v6638_v20  ;;  %3881 = vset.pattern.permute.xlu0 %v6636_v3 }
 0x3c4   :  { %3880 = vset.pattern.permute.xlu1 %v6674_v2  ;;  %1495 = vperm.xlu2 %3882, %v1115_v6  }
 0x3c5   :  { %1152 = vperm.xlu0 %3881, %v1115_v6   ;;  %1580 = vperm.xlu1 %3880, %v1115_v6  }
 0x3cc   :  { %3883 = vset.pattern.permute.xlu2 %v6675_v31 }
 0x3cd   :  { %3885 = vset.pattern.permute.xlu0 %v6676_v12  ;;  %3884 = vset.pattern.permute.xlu1 %v6677_v58 }
 0x3ce   :  { %1414 = vperm.xlu0 %3885, %v1118_v37   ;;  %1329 = vperm.xlu1 %3884, %v1118_v37  }
 0x3cf   :  { %1244 = vperm.xlu2 %3883, %v1118_v37  }
 0x3d6   :  { %3887 = vset.pattern.permute.xlu1 %v6636_v3  ;;  %3892 = vset.pattern.permute.xlu0 %v6674_v2 }
 0x3d7   :  { %3886 = vset.pattern.permute.xlu2 %v6674_v2  ;;  %1157 = vperm.xlu1 %3887, %v1118_v37  }
 0x3d8   :  { %1584 = vperm.xlu2 %3886, %v1118_v37  }
 0x3df   :  { %3889 = vset.pattern.permute.xlu1 %v6675_v31 }
 0x3e0   :  { %3888 = vset.pattern.permute.xlu2 %v6638_v20 }
 0x3e1   :  { %1499 = vperm.xlu2 %3888, %v1118_v37  }
 0x3e9   :  { %3890 = vset.pattern.permute.xlu2 %v6677_v58 }
 0x3f1   :  { %v5236_v0 = vpop.f32.mrf.mxu0  ;;  %v5238_v38 = vpop.f32.mrf.mxu1 }
 0x3f8   :  { %v1121_v51 = vpop.f32.mrf.mxu2 }
 0x3f9   :  { %1588 = vperm.xlu0 %3892, %v1121_v51   ;;  %1333 = vperm.xlu2 %3890, %v1121_v51   ;;  %v5252_v4 = vpop.f32.mrf.mxu0  ;;  %v5254_v56 = vpop.f32.mrf.mxu1 }
 0x3fa   :  { %1248 = vperm.xlu1 %3889, %v1121_v51   ;;  %3601 = vmatpush.msk.msra.mxu0 %vm1777_vm0, %v5252_v4  ;;  %vm1787_vm0 = vcmp.eq.s32.totalorder %v4981_v55, %v5241_v9 }
 0x3fb   :  { %3617 = vmatpush.msk.msra.mxu1 %vm1793_vm1, %v5252_v4  ;;  %3629 = vmatpush.msk.msrb.mxu2 %vm1778_vm6, %v5254_v56  ;;  %vm1772_vm1 = vcmp.eq.s32.totalorder %v4896_v32, %v5244_v44  ;;  %vm1788_vm6 = vcmp.eq.s32.totalorder %v4981_v55, %v5244_v44 }
 0x3fc   :  { %3645 = vmatpush.msk.msra.mxu3 %vm1794_vm7, %v5254_v56  ;;  %3602 = vmatpush.msk.msra.mxu0 %vm1775_vm8, %v5236_v0  ;;  %vm1769_vm7 = vcmp.eq.s32.totalorder %v4906_v60, %v5241_v9  ;;  %vm1785_vm8 = vcmp.eq.s32.totalorder %v4994_v62, %v5241_v9 }
 0x3fd   :  { %3618 = vmatpush.msk.msra.mxu1 %vm1791_vm10, %v5236_v0  ;;  %3630 = vmatpush.msk.msrb.mxu2 %vm1776_vm11, %v5238_v38  ;;  %vm1770_vm10 = vcmp.eq.s32.totalorder %v4906_v60, %v5244_v44  ;;  %vm1786_vm11 = vcmp.eq.s32.totalorder %v4994_v62, %v5244_v44 }
 0x3fe   :  { %3646 = vmatpush.msk.msra.mxu3 %vm1792_vm12, %v5238_v38  ;;  %3603 = vmatpush.msk.msra.mxu0 %vm1773_vm13, %v5228_v7  ;;  %vm1767_vm12 = vcmp.eq.s32.totalorder %v4914_v46, %v5241_v9  ;;  %vm1783_vm13 = vcmp.eq.s32.totalorder %v5001_v61, %v5241_v9 }
 0x3ff   :  { %3619 = vmatpush.msk.msra.mxu1 %vm1789_vm2, %v5228_v7  ;;  %3631 = vmatpush.msk.msrb.mxu2 %vm1774_vm5, %v5230_v21  ;;  %vm1768_vm2 = vcmp.eq.s32.totalorder %v4914_v46, %v5244_v44  ;;  %vm1784_vm5 = vcmp.eq.s32.totalorder %v5001_v61, %v5244_v44 }
 0x400   :  { %3647 = vmatpush.msk.msra.mxu3 %vm1790_vm3, %v5230_v21  ;;  %3604 = vmatpush.msk.msra.mxu0 %vm1771_vm4, %v5222_v34  ;;  %vm1765_vm3 = vcmp.eq.s32.totalorder %v4923_v24, %v5241_v9  ;;  %vm1781_vm4 = vcmp.eq.s32.totalorder %v5018_v8, %v5241_v9  ;;  %v1124_v11 = vpop.f32.mrf.mxu2 }
 0x401   :  { %3893 = vset.pattern.permute.xlu0 %v6636_v3  ;;  %3894 = vset.pattern.permute.xlu2 %v6638_v20 }
 0x402   :  { %3891 = vset.pattern.permute.xlu1 %v6676_v12  ;;  %3620 = vmatpush.msk.msra.mxu1 %vm1787_vm0, %v5222_v34  ;;  %vm1766_vm0 = vcmp.eq.s32.totalorder %v4923_v24, %v5244_v44 }
 0x403   :  { %3632 = vmatpush.msk.msrb.mxu2 %vm1772_vm1, %v5224_v36  ;;  %3648 = vmatpush.msk.msra.mxu3 %vm1788_vm6, %v5224_v36  ;;  %vm1782_vm1 = vcmp.eq.s32.totalorder %v5018_v8, %v5244_v44  ;;  %vm1763_vm6 = vcmp.eq.s32.totalorder %v4925_v52, %v5241_v9 }
 0x404   :  { %1162 = vperm.xlu0 %3893, %v1121_v51   ;;  %1503 = vperm.xlu2 %3894, %v1121_v51  }
 0x405   :  { %1418 = vperm.xlu1 %3891, %v1121_v51   ;;  %3605 = vmatpush.msk.msra.mxu0 %vm1769_vm7, %v5252_v4  ;;  %vm1779_vm7 = vcmp.eq.s32.totalorder %v5030_v19, %v5241_v9 }
 0x406   :  { %3621 = vmatpush.msk.msra.mxu1 %vm1785_vm8, %v5252_v4  ;;  %3633 = vmatpush.msk.msrb.mxu2 %vm1770_vm10, %v5254_v56  ;;  %vm1764_vm8 = vcmp.eq.s32.totalorder %v4925_v52, %v5244_v44  ;;  %vm1780_vm10 = vcmp.eq.s32.totalorder %v5030_v19, %v5244_v44 }
 0x407   :  { %3649 = vmatpush.msk.msra.mxu3 %vm1786_vm11, %v5254_v56  ;;  %3606 = vmatpush.msk.msra.mxu0 %vm1767_vm12, %v5236_v0  ;;  %vm1761_vm11 = vcmp.eq.s32.totalorder %v4939_v48, %v5241_v9  ;;  %vm1762_vm12 = vcmp.eq.s32.totalorder %v4939_v48, %v5244_v44 }
 0x408   :  { %3622 = vmatpush.msk.msra.mxu1 %vm1783_vm13, %v5236_v0  ;;  %3634 = vmatpush.msk.msrb.mxu2 %vm1768_vm2, %v5238_v38  ;;  %vm1759_vm13 = vcmp.eq.s32.totalorder %v4953_v22, %v5241_v9  ;;  %vm1760_vm2 = vcmp.eq.s32.totalorder %v4953_v22, %v5244_v44 }
 0x409   :  { %3650 = vmatpush.msk.msra.mxu3 %vm1784_vm5, %v5238_v38  ;;  %3607 = vmatpush.msk.msra.mxu0 %vm1765_vm3, %v5228_v7  ;;  %vm1757_vm5 = vcmp.eq.s32.totalorder %v4968_v45, %v5241_v9  ;;  %vm1758_vm3 = vcmp.eq.s32.totalorder %v4968_v45, %v5244_v44 }
 0x40a   :  { %3623 = vmatpush.msk.msra.mxu1 %vm1781_vm4, %v5228_v7  ;;  %3635 = vmatpush.msk.msrb.mxu2 %vm1766_vm0, %v5230_v21  ;;  %vm1755_vm4 = vcmp.eq.s32.totalorder %v4974_v42, %v5241_v9  ;;  %vm1756_vm0 = vcmp.eq.s32.totalorder %v4974_v42, %v5244_v44 }
 0x40b   :  { %3651 = vmatpush.msk.msra.mxu3 %vm1782_vm1, %v5230_v21  ;;  %3608 = vmatpush.msk.msra.mxu0 %vm1763_vm6, %v5222_v34  ;;  %vm1753_vm1 = vcmp.eq.s32.totalorder %v4992_v17, %v5241_v9  ;;  %vm1754_vm6 = vcmp.eq.s32.totalorder %v4992_v17, %v5244_v44 }
 0x40c   :  { %3624 = vmatpush.msk.msra.mxu1 %vm1779_vm7, %v5222_v34  ;;  %3636 = vmatpush.msk.msrb.mxu2 %vm1764_vm8, %v5224_v36  ;;  %vm1751_vm7 = vcmp.eq.s32.totalorder %v4999_v47, %v5241_v9  ;;  %vm1752_vm8 = vcmp.eq.s32.totalorder %v4999_v47, %v5244_v44 }
 0x40d   :  { %3652 = vmatpush.msk.msra.mxu3 %vm1780_vm10, %v5224_v36  ;;  %3895 = vset.pattern.permute.xlu2 %v6675_v31  ;;  %vm1749_vm10 = vcmp.eq.s32.totalorder %v5013_v49, %v5241_v9 }
 0x40e   :  { %3896 = vset.pattern.permute.xlu1 %v6677_v58  ;;  %1252 = vperm.xlu2 %3895, %v1124_v11  }
 0x40f   :  { %1337 = vperm.xlu1 %3896, %v1124_v11   ;;  %3609 = vmatpush.msk.msra.mxu0 %vm1761_vm11, %v5252_v4  ;;  %v1147_v50 = vpop.f32.mrf.mxu3  ;;  %vm1750_vm11 = vcmp.eq.s32.totalorder %v5013_v49, %v5244_v44 }
 0x410   :  { %3637 = vmatpush.msk.msrb.mxu2 %vm1762_vm12, %v5254_v56  ;;  %3921 = vset.pattern.permute.xlu0 %v6675_v31  ;;  %v5393_v63 = vperm.slane %v1147_v50, 3  ;;  %vm1747_vm12 = vcmp.eq.s32.totalorder %v5021_v39, %v5241_v9  ;;  %v5407_v5 = vperm.slane %v1147_v50, 4  ;;  %v5426_v9 = vperm.slane %v1147_v50, 1 }
 0x411   :  { %3610 = vmatpush.msk.msra.mxu0 %vm1759_vm13, %v5236_v0  ;;  %vm1748_vm13 = vcmp.eq.s32.totalorder %v5021_v39, %v5244_v44 }
 0x412   :  { %3638 = vmatpush.msk.msrb.mxu2 %vm1760_vm2, %v5238_v38 }
 0x413   :  { %3611 = vmatpush.msk.msra.mxu0 %vm1757_vm5, %v5228_v7 }
 0x414   :  { %3639 = vmatpush.msk.msrb.mxu2 %vm1758_vm3, %v5230_v21 }
 0x415   :  { %3612 = vmatpush.msk.msra.mxu0 %vm1755_vm4, %v5222_v34  ;;  %v1411_v33 = vpop.permute.xlu2 %1410 }
 0x416   :  { %3640 = vmatpush.msk.msrb.mxu2 %vm1756_vm0, %v5224_v36  ;;  %3897 = vset.pattern.permute.xlu2 %v6676_v12  ;;  %v1426_v40 = vadd.f32 %v5393_v63, %v1411_v33  ;;  %v5430_v33 = vperm.slane %v1147_v50, 0 }
 0x417   :  { %3898 = vset.pattern.permute.xlu1 %v6674_v2  ;;  %3613 = vmatpush.msk.msra.mxu0 %vm1753_vm1, %v5252_v4 }
 0x418   :  { %3641 = vmatpush.msk.msrb.mxu2 %vm1754_vm6, %v5254_v56  ;;  %1592 = vperm.xlu1 %3898, %v1124_v11   ;;  %v1434_v26 = vmul.f32 0.2, %v1426_v40  ;;  %vm1430_vm2 = vcmp.gt.f32.partialorder %v1426_v40, 0.0 }
 0x419   :  { %1422 = vperm.xlu2 %3897, %v1124_v11   ;;  %3614 = vmatpush.msk.msra.mxu0 %vm1751_vm7, %v5236_v0 }
 0x41a   :  { %3642 = vmatpush.msk.msrb.mxu2 %vm1752_vm8, %v5238_v38  ;;  %v1438_v54 = vsel %vm1430_vm2, %v1426_v40, %v1434_v26  ;;  %v5432_v26 = vperm.slane %v1147_v50, 5 }
 0x41b   :  { %3615 = vmatpush.msk.msra.mxu0 %vm1749_vm10, %v5228_v7  ;;  %v5411_v18 = vadd.f32 %v1438_v54, %v4545_v41 }
 0x41c   :  { %3643 = vmatpush.msk.msrb.mxu2 %vm1750_vm11, %v5230_v21  ;;  %v5424_v21 = vperm.slane %v1147_v50, 2 }
 0x41d   :  { %3616 = vmatpush.msk.msra.mxu0 %vm1747_vm12, %v5222_v34  ;;  %v1446_v13 = vsel %vm241_vm9, %v5411_v18, -inf }
 0x41e   :  { %3644 = vmatpush.msk.msrb.mxu2 %vm1748_vm13, %v5224_v36  ;;  %v1496_v27 = vpop.permute.xlu2 %1495 }
 0x41f   :  { %v1511_v15 = vadd.f32 %v5407_v5, %v1496_v27 }
 0x420   :  { %3900 = vset.pattern.permute.xlu1 %v6638_v20 }
 0x421   :  { %3899 = vset.pattern.permute.xlu2 %v6636_v3  ;;  %1507 = vperm.xlu1 %3900, %v1124_v11   ;;  %v1519_v14 = vmul.f32 0.2, %v1511_v15  ;;  %vm1515_vm5 = vcmp.gt.f32.partialorder %v1511_v15, 0.0 }
 0x422   :  { %1167 = vperm.xlu2 %3899, %v1124_v11  }
 0x423   :  { %v1523_v37 = vsel %vm1515_vm5, %v1511_v15, %v1519_v14 }
 0x424   :  { %v5418_v34 = vadd.f32 %v1523_v37, %v4545_v41 }
 0x426   :  { %v1531_v7 = vsel %vm241_vm9, %v5418_v34, -inf }
 0x429   :  { %3922 = vset.pattern.permute.xlu1 %v6674_v2  ;;  %v1245_v53 = vpop.permute.xlu2 %1244 }
 0x42a   :  { %3923 = vset.pattern.permute.xlu2 %v6677_v58 }
 0x42d   :  { %v1326_v29 = vpop.permute.xlu0 %1325 }
 0x42e   :  { %v1241_v6 = vpop.permute.xlu1 %1240  ;;  %1447 = vmax.xlane.f32.xlu0 %v1446_v13  ;;  %v1341_v44 = vadd.f32 %v5424_v21, %v1326_v29 }
 0x42f   :  { %v1256_v51 = vadd.f32 %v5426_v9, %v1241_v6 }
 0x430   :  { %v1349_v4 = vmul.f32 0.2, %v1341_v44  ;;  %vm1345_vm4 = vcmp.gt.f32.partialorder %v1341_v44, 0.0 }
 0x431   :  { %v1264_v56 = vmul.f32 0.2, %v1256_v51  ;;  %vm1260_vm3 = vcmp.gt.f32.partialorder %v1256_v51, 0.0 }
 0x432   :  { %v5420_v36 = vpop.permute.xlu2 %1584  ;;  %v1353_v13 = vsel %vm1345_vm4, %v1341_v44, %v1349_v4 }
 0x433   :  { %v1268_v14 = vsel %vm1260_vm3, %v1256_v51, %v1264_v56  ;;  %v1257_v56 = vadd.f32 %v5426_v9, %v1245_v53 }
 0x434   :  { %v5439_v20 = vadd.f32 %v1268_v14, %v4545_v41 }
 0x435   :  { %vm1261_vm10 = vcmp.gt.f32.partialorder %v1257_v56, 0.0 }
 0x436   :  { %1532 = vmax.xlane.f32.xlu0 %v1531_v7 }
 0x437   :  { %v1153_v0 = vpop.permute.xlu0 %1152  ;;  %v1581_v38 = vpop.permute.xlu1 %1580 }
 0x438   :  { %v1171_v29 = vadd.f32 %v5430_v33, %v1153_v0  ;;  %v1596_v6 = vadd.f32 %v5432_v26, %v1581_v38 }
 0x43a   :  { %v1179_v51 = vmul.f32 0.2, %v1171_v29  ;;  %v1604_v44 = vmul.f32 0.2, %v1596_v6  ;;  %vm1175_vm6 = vcmp.gt.f32.partialorder %v1171_v29, 0.0  ;;  %vm1600_vm7 = vcmp.gt.f32.partialorder %v1596_v6, 0.0 }
 0x43b   :  { %v1500_v11 = vpop.permute.xlu2 %1499 }
 0x43c   :  { %v1512_v15 = vadd.f32 %v5407_v5, %v1500_v11  ;;  %v5445_v11 = vadd.f32 %v1353_v13, %v4545_v41  ;;  %v1183_v14 = vsel %vm1175_vm6, %v1171_v29, %v1179_v51  ;;  %v1608_v13 = vsel %vm1600_vm7, %v1596_v6, %v1604_v44 }
 0x43d   :  { %v5462_v53 = vadd.f32 %v1608_v13, %v4545_v41 }
 0x43e   :  { %v1520_v7 = vmul.f32 0.2, %v1512_v15  ;;  %vm1516_vm1 = vcmp.gt.f32.partialorder %v1512_v15, 0.0 }
 0x43f   :  { %v1616_v6 = vsel %vm241_vm9, %v5462_v53, -inf }
 0x440   :  { %v1415_v40 = vpop.permute.xlu0 %1414  ;;  %v1330_v27 = vpop.permute.xlu1 %1329  ;;  %v1524_v4 = vsel %vm1516_vm1, %v1512_v15, %v1520_v7  ;;  %v1265_v15 = vmul.f32 0.2, %v1257_v56 }
 0x441   :  { %v1427_v54 = vadd.f32 %v5393_v63, %v1415_v40  ;;  %v1361_v40 = vsel %vm241_vm9, %v5445_v11, -inf  ;;  %v1342_v51 = vadd.f32 %v5424_v21, %v1330_v27 }
 0x443   :  { %vm1431_vm0 = vcmp.gt.f32.partialorder %v1427_v54, 0.0  ;;  %v1435_v37 = vmul.f32 0.2, %v1427_v54  ;;  %vm1346_vm12 = vcmp.gt.f32.partialorder %v1342_v51, 0.0 }
 0x445   :  { %v1439_v3 = vsel %vm1431_vm0, %v1427_v54, %v1435_v37  ;;  %v5456_v37 = vadd.f32 %v1524_v4, %v4581_v16  ;;  %v1269_v4 = vsel %vm1261_vm10, %v1257_v56, %v1265_v15  ;;  %v1597_v56 = vadd.f32 %v5432_v26, %v5420_v36 }
 0x446   :  { %v5442_v50 = vadd.f32 %v1439_v3, %v4581_v16  ;;  %v1276_v3 = vsel %vm241_vm9, %v5439_v20, -inf }
 0x447   :  { %v1534_v58 = vsel %vm241_vm9, %v5456_v37, -inf  ;;  %vm1601_vm13 = vcmp.gt.f32.partialorder %v1597_v56, 0.0 }
 0x448   :  { %v1449_v0 = vsel %vm241_vm9, %v5442_v50, -inf }
 0x449   :  { %v1158_v38 = vpop.permute.xlu1 %1157  ;;  %1450 = vmax.xlane.f32.xlu0 %v1449_v0  ;;  %v5459_v0 = vadd.f32 %v1183_v14, %v4545_v41  ;;  %v1350_v14 = vmul.f32 0.2, %v1342_v51 }
 0x44a   :  { %v1172_v54 = vadd.f32 %v5430_v33, %v1158_v38 }
 0x44b   :  { %1277 = vmax.xlane.f32.xlu2 %v1276_v3  ;;  %1362 = vmax.xlane.f32.xlu1 %v1361_v40  ;;  %v1191_v29 = vsel %vm241_vm9, %v5459_v0, -inf  ;;  %v1354_v15 = vsel %vm1346_vm12, %v1342_v51, %v1350_v14 }
 0x44c   :  { %v1180_v7 = vmul.f32 0.2, %v1172_v54  ;;  %vm1176_vm8 = vcmp.gt.f32.partialorder %v1172_v54, 0.0 }
 0x44e   :  { %v1184_v38 = vsel %vm1176_vm8, %v1172_v54, %v1180_v7 }
 0x44f   :  { %v5473_v40 = vadd.f32 %v1184_v38, %v4581_v16  ;;  %v1605_v38 = vmul.f32 0.2, %v1597_v56 }
 0x451   :  { %1535 = vmax.xlane.f32.xlu0 %v1534_v58  ;;  %v5476_v58 = vadd.f32 %v1269_v4, %v4581_v16  ;;  %v1194_v27 = vsel %vm241_vm9, %v5473_v40, -inf  ;;  %v1609_v14 = vsel %vm1601_vm13, %v1597_v56, %v1605_v38 }
 0x453   :  { %1192 = vmax.xlane.f32.xlu2 %v1191_v29  ;;  %1617 = vmax.xlane.f32.xlu1 %v1616_v6  ;;  %v1334_v44 = vpop.permute.xlu2 %1333  ;;  %v1279_v29 = vsel %vm241_vm9, %v5476_v58, -inf }
 0x454   :  { %v1343_v3 = vadd.f32 %v5424_v21, %v1334_v44  ;;  %v5488_v44 = vadd.f32 %v1354_v15, %v4581_v16 }
 0x456   :  { %v1351_v13 = vmul.f32 0.2, %v1343_v3  ;;  %vm1347_vm11 = vcmp.gt.f32.partialorder %v1343_v3, 0.0 }
 0x458   :  { %v1355_v54 = vsel %vm1347_vm11, %v1343_v3, %v1351_v13  ;;  %v1364_v3 = vsel %vm241_vm9, %v5488_v44, -inf }
 0x459   :  { %v5485_v6 = vadd.f32 %v1355_v54, %v4631_v25 }
 0x45b   :  { %1195 = vmax.xlane.f32.xlu2 %v1194_v27  ;;  %1280 = vmax.xlane.f32.xlu1 %v1279_v29  ;;  %v1367_v36 = vsel %vm241_vm9, %v5485_v6, -inf  ;;  %v5499_v27 = vadd.f32 %v1609_v14, %v4581_v16 }
 0x45d   :  { %v1619_v15 = vsel %vm241_vm9, %v5499_v27, -inf }
 0x45e   :  { %v1504_v7 = vpop.permute.xlu2 %1503 }
 0x45f   :  { %v1513_v4 = vadd.f32 %v5407_v5, %v1504_v7 }
 0x461   :  { %v1521_v41 = vmul.f32 0.2, %v1513_v4  ;;  %vm1517_vm2 = vcmp.gt.f32.partialorder %v1513_v4, 0.0 }
 0x463   :  { %1368 = vmax.xlane.f32.xlu2 %v1367_v36  ;;  %1365 = vmax.xlane.f32.xlu1 %v1364_v3  ;;  %v1525_v51 = vsel %vm1517_vm2, %v1513_v4, %v1521_v41 }
 0x464   :  { %v5496_v13 = vadd.f32 %v1525_v51, %v4631_v25 }
 0x466   :  { %v1537_v29 = vsel %vm241_vm9, %v5496_v13, -inf }
 0x468   :  { %v1253_v54 = vpop.permute.xlu2 %1252 }
 0x469   :  { %v1259_v36 = vadd.f32 %v5426_v9, %v1253_v54 }
 0x46b   :  { %1538 = vmax.xlane.f32.xlu2 %v1537_v29  ;;  %1620 = vmax.xlane.f32.xlu1 %v1619_v15  ;;  %v1589_v7 = vpop.permute.xlu0 %1588  ;;  %v1267_v51 = vmul.f32 0.2, %v1259_v36  ;;  %vm1263_vm4 = vcmp.gt.f32.partialorder %v1259_v36, 0.0 }
 0x46c   :  { %v1598_v41 = vadd.f32 %v5432_v26, %v1589_v7  ;;  %v1249_v56 = vpop.permute.xlu1 %1248 }
 0x46d   :  { %v1258_v38 = vadd.f32 %v5426_v9, %v1249_v56  ;;  %v1271_v56 = vsel %vm1263_vm4, %v1259_v36, %v1267_v51 }
 0x46e   :  { %vm1602_vm5 = vcmp.gt.f32.partialorder %v1598_v41, 0.0  ;;  %v1606_v4 = vmul.f32 0.2, %v1598_v41 }
 0x46f   :  { %v1266_v3 = vmul.f32 0.2, %v1258_v38  ;;  %vm1262_vm3 = vcmp.gt.f32.partialorder %v1258_v38, 0.0 }
 0x470   :  { %v1610_v14 = vsel %vm1602_vm5, %v1598_v41, %v1606_v4 }
 0x471   :  { %v5509_v16 = vadd.f32 %v1610_v14, %v4631_v25  ;;  %v1270_v31 = vsel %vm1262_vm3, %v1258_v38, %v1266_v3  ;;  %v5520_v3 = vadd.f32 %v1271_v56, %v4672_v28 }
 0x472   :  { %v5512_v29 = vadd.f32 %v1270_v31, %v4631_v25 }
 0x473   :  { %v1423_v54 = vpop.permute.xlu2 %1422  ;;  %v1622_v15 = vsel %vm241_vm9, %v5509_v16, -inf  ;;  %v1285_v51 = vsel %vm241_vm9, %v5520_v3, -inf }
 0x474   :  { %v1429_v9 = vadd.f32 %v5393_v63, %v1423_v54  ;;  %1623 = vmax.xlane.f32.xlu0 %v1622_v15  ;;  %v1282_v7 = vsel %vm241_vm9, %v5512_v29, -inf }
 0x475   :  { %1283 = vmax.xlane.f32.xlu1 %v1282_v7 }
 0x476   :  { %v1437_v41 = vmul.f32 0.2, %v1429_v9  ;;  %v1163_v4 = vpop.permute.xlu0 %1162  ;;  %vm1433_vm0 = vcmp.gt.f32.partialorder %v1429_v9, 0.0 }
 0x477   :  { %v1419_v38 = vpop.permute.xlu1 %1418  ;;  %v1173_v31 = vadd.f32 %v5430_v33, %v1163_v4 }
 0x478   :  { %v1428_v14 = vadd.f32 %v5393_v63, %v1419_v38  ;;  %v1441_v39 = vsel %vm1433_vm0, %v1429_v9, %v1437_v41 }
 0x479   :  { %v5525_v54 = vadd.f32 %v1441_v39, %v4672_v28  ;;  %v1181_v7 = vmul.f32 0.2, %v1173_v31  ;;  %vm1177_vm6 = vcmp.gt.f32.partialorder %v1173_v31, 0.0 }
 0x47a   :  { %v1436_v15 = vmul.f32 0.2, %v1428_v14  ;;  %vm1432_vm1 = vcmp.gt.f32.partialorder %v1428_v14, 0.0 }
 0x47b   :  { %v1455_v36 = vsel %vm241_vm9, %v5525_v54, -inf  ;;  %v1185_v63 = vsel %vm1177_vm6, %v1173_v31, %v1181_v7 }
 0x47c   :  { %1456 = vmax.xlane.f32.xlu2 %v1455_v36  ;;  %1286 = vmax.xlane.f32.xlu0 %v1285_v51  ;;  %v1440_v56 = vsel %vm1432_vm1, %v1428_v14, %v1436_v15  ;;  %v5538_v38 = vadd.f32 %v1185_v63, %v4631_v25  ;;  %v1168_v47 = vpop.permute.xlu2 %1167 }
 0x47d   :  { %v5532_v4 = vadd.f32 %v1440_v56, %v4631_v25  ;;  %v1174_v15 = vadd.f32 %v5430_v33, %v1168_v47 }
 0x47e   :  { %v1197_v14 = vsel %vm241_vm9, %v5538_v38, -inf }
 0x47f   :  { %v1452_v39 = vsel %vm241_vm9, %v5532_v4, -inf  ;;  %vm1178_vm10 = vcmp.gt.f32.partialorder %v1174_v15, 0.0 }
 0x480   :  { %1453 = vmax.xlane.f32.xlu1 %v1452_v39 }
 0x481   :  { %v1338_v9 = vpop.permute.xlu1 %1337 }
 0x482   :  { %v1344_v41 = vadd.f32 %v5424_v21, %v1338_v9  ;;  %v1182_v21 = vmul.f32 0.2, %v1174_v15 }
 0x484   :  { %v1352_v49 = vmul.f32 0.2, %v1344_v41  ;;  %vm1348_vm7 = vcmp.gt.f32.partialorder %v1344_v41, 0.0  ;;  %v1186_v47 = vsel %vm1178_vm10, %v1174_v15, %v1182_v21 }
 0x486   :  { %v1356_v36 = vsel %vm1348_vm7, %v1344_v41, %v1352_v49 }
 0x487   :  { %v5545_v31 = vadd.f32 %v1356_v36, %v4672_v28 }
 0x488   :  { %1198 = vmax.xlane.f32.xlu1 %v1197_v14 }
 0x489   :  { %v1370_v39 = vsel %vm241_vm9, %v5545_v31, -inf }
 0x48a   :  { %v1593_v51 = vpop.permute.xlu1 %1592 }
 0x48b   :  { %v1599_v56 = vadd.f32 %v5432_v26, %v1593_v51  ;;  %v5555_v26 = vadd.f32 %v1186_v47, %v4672_v28 }
 0x48d   :  { %v1607_v7 = vmul.f32 0.2, %v1599_v56  ;;  %vm1603_vm8 = vcmp.gt.f32.partialorder %v1599_v56, 0.0  ;;  %v1200_v36 = vsel %vm241_vm9, %v5555_v26, -inf }
 0x48f   :  { %v1611_v63 = vsel %vm1603_vm8, %v1599_v56, %v1607_v7 }
 0x490   :  { %1371 = vmax.xlane.f32.xlu1 %v1370_v39  ;;  %v5550_v9 = vadd.f32 %v1611_v63, %v4672_v28 }
 0x492   :  { %v1625_v49 = vsel %vm241_vm9, %v5550_v9, -inf }
 0x493   :  { %v1508_v33 = vpop.permute.xlu1 %1507  ;;  %1626 = vmax.xlane.f32.xlu0 %v1625_v49 }
 0x494   :  { %v1514_v41 = vadd.f32 %v5407_v5, %v1508_v33 }
 0x496   :  { %vm1518_vm11 = vcmp.gt.f32.partialorder %v1514_v41, 0.0  ;;  %v1522_v14 = vmul.f32 0.2, %v1514_v41 }
 0x498   :  { %1201 = vmax.xlane.f32.xlu1 %v1200_v36  ;;  %v1526_v51 = vsel %vm1518_vm11, %v1514_v41, %v1522_v14 }
 0x499   :  { %v5561_v56 = vadd.f32 %v1526_v51, %v4672_v28 }
 0x49b   :  { %v1540_v15 = vsel %vm241_vm9, %v5561_v56, -inf }
 0x49c   :  { %1541 = vmax.xlane.f32.xlu2 %v1540_v15 }
 0x4a1   :  { %v1448_v21 = vpop.xlane.xlu0 %1447 }
 0x4a2   :  { %v1458_v47 = vsub.f32 %v5411_v18, %v1448_v21 }
 0x4a4   :  { %v1462_v14 = vmul.f32 1.442695, %v1458_v47 }
 0x4a9   :  { %v1533_v41 = vpop.xlane.xlu0 %1532 }
 0x4aa   :  { %v1543_v18 = vsub.f32 %v5418_v34, %v1533_v41 }
 0x4be   :  { %v1278_v7 = vpop.xlane.xlu2 %1277  ;;  %v1363_v39 = vpop.xlane.xlu1 %1362 }
 0x4bf   :  { %v1288_v63 = vsub.f32 %v5439_v20, %v1278_v7  ;;  %v1373_v5 = vsub.f32 %v5445_v11, %v1363_v39  ;;  %v1451_v39 = vpop.xlane.xlu0 %1450 }
 0x4c1   :  { %v1292_v49 = vmul.f32 1.442695, %v1288_v63  ;;  %v1377_v33 = vmul.f32 1.442695, %v1373_v5  ;;  %v1547_v63 = vmul.f32 1.442695, %v1543_v18 }
 0x4c3   :  { %4070 = vpow2.f32 %v1292_v49 }
 0x4c4   :  { %4072 = vpow2.f32 %v1377_v33 }
 0x4c5   :  { %4074 = vpow2.f32 %v1462_v14 }
 0x4c6   :  { %v1193_v36 = vpop.xlane.xlu2 %1192  ;;  %v1618_v51 = vpop.xlane.xlu1 %1617 }
 0x4c7   :  { %v1628_v28 = vsub.f32 %v5462_v53, %v1618_v51  ;;  %v1203_v25 = vsub.f32 %v5459_v0, %v1193_v36  ;;  %v1536_v14 = vpop.xlane.xlu0 %1535 }
 0x4c9   :  { %v5569_v15 = vpop.eup %4070  ;;  %v1632_v20 = vmul.f32 1.442695, %v1628_v28  ;;  %v1207_v53 = vmul.f32 1.442695, %v1203_v25  ;;  %v1459_v28 = vsub.f32 %v5442_v50, %v1451_v39 }
 0x4ca   :  { %v5572_v7 = vpop.eup %4072  ;;  %v1300_v11 = vsel %vm241_vm9, %v5569_v15, 0.0 }
 0x4cb   :  { %1301 = vadd.xlane.f32.xlu2 %v1300_v11  ;;  %v1385_v21 = vsel %vm241_vm9, %v5572_v7, 0.0  ;;  %4076 = vpow2.f32 %v1632_v20  ;;  %v5579_v47 = vpop.eup %4074  ;;  %v1464_v25 = vmul.f32 1.442695, %v1459_v28 }
 0x4cc   :  { %1386 = vadd.xlane.f32.xlu0 %v1385_v21  ;;  %4078 = vpow2.f32 %v1207_v53  ;;  %v1470_v49 = vsel %vm241_vm9, %v5579_v47, 0.0 }
 0x4cd   :  { %4080 = vpow2.f32 %v1547_v63 }
 0x4ce   :  { %v1281_v5 = vpop.xlane.xlu1 %1280  ;;  %v1196_v41 = vpop.xlane.xlu2 %1195  ;;  %4082 = vpow2.f32 %v1464_v25 }
 0x4cf   :  { %v1289_v34 = vsub.f32 %v5476_v58, %v1281_v5  ;;  %v1544_v58 = vsub.f32 %v5456_v37, %v1536_v14  ;;  %v1204_v21 = vsub.f32 %v5473_v40, %v1196_v41 }
 0x4d1   :  { %v5582_v0 = vpop.eup %4076  ;;  %v1294_v36 = vmul.f32 1.442695, %v1289_v34  ;;  %v1549_v63 = vmul.f32 1.442695, %v1544_v58 }
 0x4d2   :  { %v1640_v33 = vsel %vm241_vm9, %v5582_v0, 0.0  ;;  %v5589_v50 = vpop.eup %4078 }
 0x4d3   :  { %1471 = vadd.xlane.f32.xlu2 %v1470_v49  ;;  %v5592_v18 = vpop.eup %4080  ;;  %4084 = vpow2.f32 %v1294_v36  ;;  %v1215_v39 = vsel %vm241_vm9, %v5589_v50, 0.0 }
 0x4d4   :  { %1641 = vadd.xlane.f32.xlu0 %v1640_v33  ;;  %v1555_v53 = vsel %vm241_vm9, %v5592_v18, 0.0  ;;  %v5600_v28 = vpop.eup %4082 }
 0x4d5   :  { %v1473_v41 = vsel %vm241_vm9, %v5600_v28, 0.0 }
 0x4d6   :  { %v1366_v51 = vpop.xlane.xlu1 %1365  ;;  %v1369_v34 = vpop.xlane.xlu2 %1368 }
 0x4d7   :  { %v1374_v20 = vsub.f32 %v5488_v44, %v1366_v51  ;;  %v1209_v44 = vmul.f32 1.442695, %v1204_v21  ;;  %v1375_v25 = vsub.f32 %v5485_v6, %v1369_v34 }
 0x4d9   :  { %v1379_v11 = vmul.f32 1.442695, %v1374_v20  ;;  %v5603_v49 = vpop.eup %4084 }
 0x4da   :  { %v1303_v14 = vsel %vm241_vm9, %v5603_v49, 0.0 }
 0x4db   :  { %1216 = vadd.xlane.f32.xlu2 %v1215_v39  ;;  %4086 = vpow2.f32 %v1379_v11 }
 0x4dc   :  { %1556 = vadd.xlane.f32.xlu0 %v1555_v53  ;;  %4088 = vpow2.f32 %v1549_v63 }
 0x4dd   :  { %4090 = vpow2.f32 %v1209_v44 }
 0x4de   :  { %v1621_v5 = vpop.xlane.xlu1 %1620 }
 0x4df   :  { %v1629_v37 = vsub.f32 %v5499_v27, %v1621_v5  ;;  %v1381_v27 = vmul.f32 1.442695, %v1375_v25 }
 0x4e1   :  { %v1634_v40 = vmul.f32 1.442695, %v1629_v37  ;;  %v5605_v33 = vpop.eup %4086 }
 0x4e2   :  { %v1388_v36 = vsel %vm241_vm9, %v5605_v33, 0.0  ;;  %v5614_v51 = vpop.eup %4088 }
 0x4e3   :  { %1474 = vadd.xlane.f32.xlu2 %v1473_v41  ;;  %4092 = vpow2.f32 %v1634_v40  ;;  %1389 = vadd.xlane.f32.xlu1 %v1388_v36  ;;  %v5616_v58 = vpop.eup %4090  ;;  %v1558_v39 = vsel %vm241_vm9, %v5614_v51, 0.0 }
 0x4e4   :  { %1304 = vadd.xlane.f32.xlu0 %v1303_v14  ;;  %4094 = vpow2.f32 %v1381_v27  ;;  %v1218_v5 = vsel %vm241_vm9, %v5616_v58, 0.0 }
 0x4e7   :  { %v1624_v20 = vpop.xlane.xlu0 %1623 }
 0x4e8   :  { %v1284_v6 = vpop.xlane.xlu1 %1283  ;;  %v1630_v53 = vsub.f32 %v5509_v16, %v1624_v20  ;;  %v5633_v16 = vpop.xlane.xlu2 %1538 }
 0x4e9   :  { %v1290_v11 = vsub.f32 %v5512_v29, %v1284_v6  ;;  %v5619_v21 = vpop.eup %4092 }
 0x4ea   :  { %v1643_v44 = vsel %vm241_vm9, %v5619_v21, 0.0  ;;  %v1636_v29 = vmul.f32 1.442695, %v1630_v53  ;;  %v5628_v37 = vpop.eup %4094 }
 0x4eb   :  { %1559 = vadd.xlane.f32.xlu2 %v1558_v39  ;;  %v1296_v63 = vmul.f32 1.442695, %v1290_v11  ;;  %1219 = vadd.xlane.f32.xlu1 %v1218_v5  ;;  %v1391_v14 = vsel %vm241_vm9, %v5628_v37, 0.0 }
 0x4ec   :  { %1644 = vadd.xlane.f32.xlu0 %v1643_v44 }
 0x4ed   :  { %4096 = vpow2.f32 %v1296_v63 }
 0x4ee   :  { %4098 = vpow2.f32 %v1636_v29 }
 0x4ef   :  { %v1287_v34 = vpop.xlane.xlu0 %1286 }
 0x4f0   :  { %v1291_v40 = vsub.f32 %v5520_v3, %v1287_v34  ;;  %v1457_v39 = vpop.xlane.xlu2 %1456 }
 0x4f1   :  { %v1461_v29 = vsub.f32 %v5525_v54, %v1457_v39 }
 0x4f2   :  { %v1298_v25 = vmul.f32 1.442695, %v1291_v40 }
 0x4f3   :  { %v5631_v41 = vpop.eup %4096  ;;  %v1454_v36 = vpop.xlane.xlu1 %1453  ;;  %1392 = vadd.xlane.f32.xlu1 %v1391_v14 }
 0x4f4   :  { %v1460_v27 = vsub.f32 %v5532_v4, %v1454_v36  ;;  %v1306_v20 = vsel %vm241_vm9, %v5631_v41, 0.0  ;;  %4100 = vpow2.f32 %v1298_v25  ;;  %v5640_v3 = vpop.eup %4098  ;;  %v1468_v25 = vmul.f32 1.442695, %v1461_v29 }
 0x4f5   :  { %1307 = vadd.xlane.f32.xlu0 %v1306_v20  ;;  %v1646_v44 = vsel %vm241_vm9, %v5640_v3, 0.0 }
 0x4f6   :  { %v1466_v6 = vmul.f32 1.442695, %v1460_v27 }
 0x4f8   :  { %4102 = vpow2.f32 %v1466_v6 }
 0x4fa   :  { %v5642_v11 = vpop.eup %4100 }
 0x4fb   :  { %v1199_v53 = vpop.xlane.xlu1 %1198  ;;  %v1309_v4 = vsel %vm241_vm9, %v5642_v11, 0.0 }
 0x4fc   :  { %v1205_v63 = vsub.f32 %v5538_v38, %v1199_v53  ;;  %1310 = vadd.xlane.f32.xlu1 %v1309_v4 }
 0x4fd   :  { %1647 = vadd.xlane.f32.xlu0 %v1646_v44 }
 0x4fe   :  { %v5649_v5 = vpop.eup %4102  ;;  %v1211_v34 = vmul.f32 1.442695, %v1205_v63 }
 0x4ff   :  { %v1476_v40 = vsel %vm241_vm9, %v5649_v5, 0.0 }
 0x500   :  { %4104 = vpow2.f32 %v1211_v34  ;;  %1477 = vadd.xlane.f32.xlu2 %v1476_v40 }
 0x501   :  { %4106 = vpow2.f32 %v1468_v25 }
 0x503   :  { %v1372_v38 = vpop.xlane.xlu1 %1371 }
 0x504   :  { %v1376_v14 = vsub.f32 %v5545_v31, %v1372_v38 }
 0x506   :  { %v5655_v36 = vpop.eup %4104  ;;  %v1383_v27 = vmul.f32 1.442695, %v1376_v14  ;;  %v1627_v20 = vpop.xlane.xlu0 %1626 }
 0x507   :  { %v1631_v6 = vsub.f32 %v5550_v9, %v1627_v20  ;;  %v1221_v54 = vsel %vm241_vm9, %v5655_v36, 0.0  ;;  %v5660_v63 = vpop.eup %4106 }
 0x508   :  { %4108 = vpow2.f32 %v1383_v27  ;;  %1222 = vadd.xlane.f32.xlu0 %v1221_v54  ;;  %v1479_v9 = vsel %vm241_vm9, %v5660_v63, 0.0 }
 0x509   :  { %v1638_v39 = vmul.f32 1.442695, %v1631_v6 }
 0x50b   :  { %4110 = vpow2.f32 %v1638_v39  ;;  %v1202_v53 = vpop.xlane.xlu1 %1201 }
 0x50c   :  { %v1206_v44 = vsub.f32 %v5555_v26, %v1202_v53 }
 0x50e   :  { %v5663_v31 = vpop.eup %4108  ;;  %v1213_v4 = vmul.f32 1.442695, %v1206_v44 }
 0x50f   :  { %v1394_v29 = vsel %vm241_vm9, %v5663_v31, 0.0  ;;  %v5677_v38 = vpop.xlane.xlu2 %1541 }
 0x510   :  { %4112 = vpow2.f32 %v1213_v4  ;;  %1395 = vadd.xlane.f32.xlu2 %v1394_v29  ;;  %1480 = vadd.xlane.f32.xlu0 %v1479_v9 }
 0x511   :  { %v5669_v34 = vpop.eup %4110 }
 0x512   :  { %v1649_v40 = vsel %vm241_vm9, %v5669_v34, 0.0 }
 0x513   :  { %1650 = vadd.xlane.f32.xlu1 %v1649_v40 }
 0x516   :  { %v5673_v25 = vpop.eup %4112 }
 0x517   :  { %v1224_v26 = vsel %vm241_vm9, %v5673_v25, 0.0 }
 0x518   :  { %1225 = vadd.xlane.f32.xlu2 %v1224_v26 }
 0x53e   :  { %v1302_v14 = vpop.xlane.xlu2 %1301 }
 0x53f   :  { %v1387_v27 = vpop.xlane.xlu0 %1386  ;;  %v1312_v29 = vmax.f32 %v1302_v14, 1e-20 }
 0x540   :  { %v1397_v40 = vmax.f32 %v1387_v27, 1e-20 }
 0x546   :  { %v1472_v20 = vpop.xlane.xlu2 %1471 }
 0x547   :  { %v1642_v6 = vpop.xlane.xlu0 %1641  ;;  %v1482_v9 = vmax.f32 %v1472_v20, 1e-20 }
 0x548   :  { %v1652_v54 = vmax.f32 %v1642_v6, 1e-20 }
 0x54a   :  { %4114 = vrcp.f32 %v1652_v54 }
 0x54b   :  { %4116 = vrcp.f32 %v1312_v29 }
 0x54c   :  { %4118 = vrcp.f32 %v1482_v9 }
 0x54d   :  { %4120 = vrcp.f32 %v1397_v40 }
 0x54e   :  { %v5679_v39 = vpop.xlane.xlu2 %1216 }
 0x54f   :  { %v5681_v53 = vpop.xlane.xlu0 %1556 }
 0x550   :  { %v4115_v44 = vpop.eup %4114 }
 0x551   :  { %v1660_v4 = vmul.f32 %v4115_v44, %v5582_v0  ;;  %v4117_v42 = vpop.eup %4116 }
 0x552   :  { %v4119_v45 = vpop.eup %4118 }
 0x553   :  { %1716 = vrot.lane.b32.xlu0 %v1660_v4, %s4367_s2  ;;  %v4121_v0 = vpop.eup %4120  ;;  %v1490_v27 = vmul.f32 %v4119_v45, %v5579_v47 }
 0x556   :  { %v1475_v26 = vpop.xlane.xlu2 %1474  ;;  %v1390_v12 = vpop.xlane.xlu1 %1389 }
 0x557   :  { %v1483_v17 = vmax.f32 %v1475_v26, 1e-20  ;;  %v1305_v2 = vpop.xlane.xlu0 %1304  ;;  %v1398_v54 = vmax.f32 %v1390_v12, 1e-20  ;;  %v1320_v26 = vmul.f32 %v4117_v42, %v5569_v15 }
 0x558   :  { %v1313_v6 = vmax.f32 %v1305_v2, 1e-20 }
 0x559   :  { %4122 = vrcp.f32 %v1483_v17  ;;  %v1405_v17 = vmul.f32 %v4121_v0, %v5572_v7  ;;  %v1546_v0 = vsub.f32 %v5561_v56, %v5677_v38 }
 0x55a   :  { %4124 = vrcp.f32 %v1313_v6 }
 0x55b   :  { %4126 = vrcp.f32 %v1398_v54 }
 0x55e   :  { %v5695_v42 = vpop.xlane.xlu2 %1559  ;;  %v5697_v15 = vpop.xlane.xlu1 %1219 }
 0x55f   :  { %v4123_v14 = vpop.eup %4122  ;;  %v1645_v20 = vpop.xlane.xlu0 %1644 }
 0x560   :  { %v4125_v44 = vpop.eup %4124  ;;  %v1491_v4 = vmul.f32 %v4123_v14, %v5600_v28  ;;  %v1653_v29 = vmax.f32 %v1645_v20, 1e-20  ;;  %v1545_v20 = vsub.f32 %v5496_v13, %v5633_v16 }
 0x561   :  { %v4127_v9 = vpop.eup %4126  ;;  %v1321_v2 = vmul.f32 %v4125_v44, %v5603_v49  ;;  %v1553_v44 = vmul.f32 1.442695, %v1546_v0 }
 0x562   :  { %v1406_v12 = vmul.f32 %v4127_v9, %v5605_v33  ;;  %4128 = vrcp.f32 %v1653_v29  ;;  %v3911_v40 = vpack.i.bf16 %v1491_v4, %v1490_v27  ;;  %v1551_v27 = vmul.f32 1.442695, %v1545_v20 }
 0x563   :  { %v3901_v6 = vpack.i.bf16 %v1321_v2, %v1320_v26 }
 0x564   :  { %3912 = vrot.lane.b32.xlu2 %v3911_v40, %s4369_s20  ;;  %v3906_v54 = vpack.i.bf16 %v1406_v12, %v1405_v17 }
 0x565   :  { %3902 = vrot.lane.b32.xlu0 %v3901_v6, %s4367_s2 }
 0x566   :  { %3907 = vrot.lane.b32.xlu1 %v3906_v54, %s4368_s19  ;;  %v1393_v49 = vpop.xlane.xlu1 %1392 }
 0x567   :  { %v1399_v17 = vmax.f32 %v1393_v49, 1e-20 }
 0x568   :  { %v4129_v45 = vpop.eup %4128  ;;  %v1308_v9 = vpop.xlane.xlu0 %1307 }
 0x569   :  { %v1661_v47 = vmul.f32 %v4129_v45, %v5619_v21  ;;  %v1314_v40 = vmax.f32 %v1308_v9, 1e-20 }
 0x56c   :  { %1718 = vrot.lane.b32.xlu2 %v1661_v47, %s4367_s2 }
 0x56f   :  { %v1311_v21 = vpop.xlane.xlu1 %1310 }
 0x570   :  { %v1648_v38 = vpop.xlane.xlu0 %1647  ;;  %v1315_v12 = vmax.f32 %v1311_v21, 1e-20 }
 0x573   :  { %v1478_v7 = vpop.xlane.xlu2 %1477 }
 0x574   :  { %v1484_v28 = vmax.f32 %v1478_v7, 1e-20 }
 0x576   :  { %4130 = vrcp.f32 %v1484_v28 }
 0x577   :  { %4132 = vpow2.f32 %v1553_v44 }
 0x578   :  { %4134 = vpow2.f32 %v1551_v27 }
 0x57b   :  { %v5716_v45 = vpop.xlane.xlu0 %1222 }
 0x57c   :  { %v4131_v33 = vpop.eup %4130 }
 0x57d   :  { %v1492_v14 = vmul.f32 %v4131_v33, %v5649_v5  ;;  %v5706_v26 = vpop.eup %4132 }
 0x57e   :  { %v5708_v2 = vpop.eup %4134  ;;  %v1564_v56 = vsel %vm241_vm9, %v5706_v26, 0.0 }
 0x57f   :  { %1704 = vrot.lane.b32.xlu2 %v1492_v14, %s4369_s20  ;;  %v1561_v13 = vsel %vm241_vm9, %v5708_v2, 0.0 }
 0x583   :  { %v1396_v6 = vpop.xlane.xlu2 %1395  ;;  %v1481_v20 = vpop.xlane.xlu0 %1480 }
 0x584   :  { %v1400_v54 = vmax.f32 %v1396_v6, 1e-20  ;;  %v1485_v27 = vmax.f32 %v1481_v20, 1e-20 }
 0x586   :  { %v1651_v4 = vpop.xlane.xlu1 %1650 }
 0x587   :  { %v1655_v29 = vmax.f32 %v1651_v4, 1e-20 }
 0x589   :  { %4136 = vrcp.f32 %v1655_v29 }
 0x58a   :  { %4138 = vrcp.f32 %v1399_v17 }
 0x58b   :  { %4140 = vrcp.f32 %v1315_v12  ;;  %v1226_v9 = vpop.xlane.xlu2 %1225  ;;  %v1228_v12 = vmax.f32 %v5697_v15, 1e-20 }
 0x58c   :  { %4142 = vrcp.f32 %v1314_v40 }
 0x58d   :  { %4144 = vrcp.f32 %v1400_v54 }
 0x58f   :  { %v4137_v5 = vpop.eup %4136  ;;  %1565 = vadd.xlane.f32.xlu0 %v1564_v56 }
 0x590   :  { %1562 = vadd.xlane.f32.xlu1 %v1561_v13  ;;  %v1663_v16 = vmul.f32 %v4137_v5, %v5669_v34  ;;  %v4139_v47 = vpop.eup %4138  ;;  %v1654_v34 = vmax.f32 %v1648_v38, 1e-20 }
 0x591   :  { %v4141_v7 = vpop.eup %4140  ;;  %v1407_v28 = vmul.f32 %v4139_v47, %v5628_v37 }
 0x592   :  { %1722 = vrot.lane.b32.xlu2 %v1663_v16, %s4367_s2  ;;  %v4143_v33 = vpop.eup %4142  ;;  %v1323_v0 = vmul.f32 %v4141_v7, %v5642_v11  ;;  %4146 = vrcp.f32 %v1654_v34 }
 0x593   :  { %v1322_v49 = vmul.f32 %v4143_v33, %v5631_v41  ;;  %v4145_v14 = vpop.eup %4144  ;;  %4148 = vrcp.f32 %v1485_v27  ;;  %v1567_v41 = vmax.f32 %v5681_v53, 1e-20 }
 0x594   :  { %v1408_v44 = vmul.f32 %v4145_v14, %v5663_v31  ;;  %v1568_v31 = vmax.f32 %v5695_v42, 1e-20 }
 0x595   :  { %v3916_v21 = vpack.i.bf16 %v1323_v0, %v1322_v49  ;;  %4150 = vrcp.f32 %v1567_v41 }
 0x596   :  { %4152 = vrcp.f32 %v1568_v31 }
 0x598   :  { %v4147_v37 = vpop.eup %4146 }
 0x599   :  { %v1662_v4 = vmul.f32 %v4147_v37, %v5640_v3  ;;  %v4149_v11 = vpop.eup %4148 }
 0x59a   :  { %v1493_v29 = vmul.f32 %v4149_v11, %v5660_v63  ;;  %v1227_v63 = vmax.f32 %v5679_v39, 1e-20  ;;  %v1230_v11 = vmax.f32 %v1226_v9, 1e-20 }
 0x59b   :  { %v4151_v56 = vpop.eup %4150 }
 0x59c   :  { %v1575_v13 = vmul.f32 %v4151_v56, %v5592_v18  ;;  %v4153_v53 = vpop.eup %4152  ;;  %4154 = vrcp.f32 %v1227_v63 }
 0x59d   :  { %v1576_v17 = vmul.f32 %v4153_v53, %v5614_v51  ;;  %4156 = vrcp.f32 %v1228_v12 }
 0x5a2   :  { %v4155_v18 = vpop.eup %4154 }
 0x5a3   :  { %1688 = vrot.lane.b32.xlu0 %v1407_v28, %s4368_s19  ;;  %v1235_v6 = vmul.f32 %v4155_v18, %v5589_v50  ;;  %v4157_v39 = vpop.eup %4156 }
 0x5a4   :  { %v1236_v15 = vmul.f32 %v4157_v39, %v5616_v58 }
 0x5a9   :  { %3917 = vrot.lane.b32.xlu1 %v3916_v21, %s4367_s2 }
 0x5ab   :  { %1690 = vrot.lane.b32.xlu0 %v1408_v44, %s4368_s19  ;;  %v1229_v44 = vmax.f32 %v5716_v45, 1e-20 }
 0x5ad   :  { %4158 = vrcp.f32 %v1229_v44  ;;  %v2047_v44 = vld [vmem:[#allocation3 + $0xe0] sm:$0xff] }
 0x5b1   :  { %1720 = vrot.lane.b32.xlu1 %v1662_v4, %s4367_s2 }
 0x5b3   :  { %v4159_v4 = vpop.eup %4158 }
 0x5b4   :  { %v1237_v31 = vmul.f32 %v4159_v4, %v5655_v36  ;;  %v2041_v4 = vld [vmem:[#allocation3 + $0xb0] sm:$0xff] }
 0x5b9   :  { %1706 = vrot.lane.b32.xlu1 %v1493_v29, %s4369_s20 }
 0x5be   :  { %v3913_v5 = vpop.permute.xlu2 %3912 }
 0x5bf   :  { %v3914_v28 = vunpack.i.l.bf16 %v3913_v5  ;;  %v3915_v20 = vunpack.i.h.bf16 %v3913_v5 }
 0x5c5   :  { %v1717_v16 = vpop.permute.xlu0 %1716 }
 0x5c6   :  { %v1740_v3 = vsel %vm241_vm9, %v1575_v13, %v1717_v16  ;;  %v1719_v38 = vpop.permute.xlu2 %1718 }
 0x5c7   :  { %3625 = vmatmul.msk.f32.vlgmr.msra.gmra.mxu1 %vm783_vm14, %v1740_v3  ;;  %3653 = vmatmul.msk.f32.vlgmr.msra.gmra.mxu3 %vm783_vm14, %v1740_v3  ;;  %v1741_v42 = vsel %vm241_vm9, %v1576_v17, %v1719_v38 }
 0x5cf   :  { %3626 = vmatmul.msk.f32.gmra.mxu1 %vm783_vm14, %v1741_v42  ;;  %3654 = vmatmul.msk.f32.gmra.mxu3 %vm783_vm14, %v1741_v42 }
 0x5d7   :  { %v3903_v40 = vpop.permute.xlu0 %3902 }
 0x5d8   :  { %v3908_v54 = vpop.permute.xlu1 %3907  ;;  %v3904_v47 = vunpack.i.l.bf16 %v3903_v40  ;;  %v3905_v51 = vunpack.i.h.bf16 %v3903_v40 }
 0x5d9   :  { %v3909_v7 = vunpack.i.l.bf16 %v3908_v54  ;;  %v3910_v49 = vunpack.i.h.bf16 %v3908_v54  ;;  %v1705_v3 = vpop.permute.xlu2 %1704 }
 0x5da   :  { %v1728_v33 = vsel %vm241_vm9, %v1235_v6, %v3904_v47  ;;  %v1729_v14 = vsel %vm241_vm9, %v1236_v15, %v3905_v51  ;;  %v2065_v51 = vld [vmem:[#allocation3 + $0x170] sm:$0xff]  ;;  %v2055_v15 = vld [vmem:[#allocation3 + $0x120] sm:$0xff] }
 0x5db   :  { %v1732_v34 = vsel %vm783_vm14, %v1728_v33, %v3909_v7  ;;  %v1733_v50 = vsel %vm783_vm14, %v1729_v14, %v3910_v49  ;;  %v2062_v33 = vld [vmem:[#allocation3 + $0x158] sm:$0xff]  ;;  %2187 = vmatpush.msrb.mxu3 %v2065_v51  ;;  %v2052_v49 = vld [vmem:[#allocation3 + $0x108] sm:$0xff]  ;;  %v2053_v14 = vld [vmem:[#allocation3 + $0x110] sm:$0xff] }
 0x5dc   :  { %v1736_v0 = vsel %vm788_vm15, %v1732_v34, %v3914_v28  ;;  %v1737_v21 = vsel %vm788_vm15, %v1733_v50, %v3915_v20  ;;  %v2064_v28 = vld [vmem:[#allocation3 + $0x168] sm:$0xff]  ;;  %v2059_v34 = vld [vmem:[#allocation3 + $0x140] sm:$0xff]  ;;  %v2049_v50 = vld [vmem:[#allocation3 + $0xf0] sm:$0xff] }
 0x5dd   :  { %1871 = vmatmul.f32.vlgmr.msra.gmra.mxu0 %v1736_v0  ;;  %1929 = vmatmul.f32.vlgmr.msrb.gmra.mxu2 %v1736_v0  ;;  %v2056_v0 = vld [vmem:[#allocation3 + $0x128] sm:$0xff]  ;;  %v2050_v20 = vld [vmem:[#allocation3 + $0xf8] sm:$0xff]  ;;  %v2071_v51 = vld [vmem:[#allocation3 + $0x1a0] sm:$0xff] }
 0x5de   :  { %2129 = vmatpush.msrb.mxu0 %v2064_v28  ;;  %2188 = vmatpush.msrb.mxu3 %v2062_v33  ;;  %v2070_v28 = vld [vmem:[#allocation3 + $0x198] sm:$0xff]  ;;  %v2068_v33 = vld [vmem:[#allocation3 + $0x188] sm:$0xff] }
 0x5e0   :  { %2189 = vmatpush.msrb.mxu3 %v2059_v34  ;;  %v2066_v34 = vld [vmem:[#allocation3 + $0x178] sm:$0xff] }
 0x5e2   :  { %2190 = vmatpush.msrb.mxu3 %v2056_v0 }
 0x5e4   :  { %2191 = vmatpush.msrb.mxu3 %v2053_v14 }
 0x5e5   :  { %1874 = vmatmul.f32.gmra.mxu0 %v1737_v21  ;;  %1932 = vmatmul.f32.gmra.mxu2 %v1737_v21  ;;  %v2046_v21 = vld [vmem:[#allocation3 + $0xd8] sm:$0xff] }
 0x5e6   :  { %2192 = vmatpush.msrb.mxu3 %v2050_v20 }
 0x5e8   :  { %2193 = vmatpush.msrb.mxu3 %v2047_v44 }
 0x5ec   :  { %v1723_v54 = vpop.permute.xlu2 %1722 }
 0x602   :  { %v1566_v58 = vpop.xlane.xlu0 %1565 }
 0x603   :  { %v1563_v27 = vpop.xlane.xlu1 %1562  ;;  %v1570_v41 = vmax.f32 %v1566_v58, 1e-20  ;;  %v2040_v58 = vld [vmem:[#allocation3 + $0xa8] sm:$0xff] }
 0x604   :  { %v1569_v37 = vmax.f32 %v1563_v27, 1e-20  ;;  %v2043_v27 = vld [vmem:[#allocation3 + $0xc0] sm:$0xff] }
 0x606   :  { %4160 = vrcp.f32 %v1569_v37  ;;  %v2044_v37 = vld [vmem:[#allocation3 + $0xc8] sm:$0xff] }
 0x607   :  { %4162 = vrcp.f32 %v1230_v11  ;;  %2194 = vmatpush.msrb.mxu3 %v2044_v37  ;;  %v2037_v11 = vld [vmem:[#allocation3 + $0x90] sm:$0xff] }
 0x608   :  { %4164 = vrcp.f32 %v1570_v41  ;;  %v2038_v41 = vld [vmem:[#allocation3 + $0x98] sm:$0xff] }
 0x609   :  { %2195 = vmatpush.msrb.mxu3 %v2041_v4 }
 0x60b   :  { %2196 = vmatpush.msrb.mxu3 %v2038_v41 }
 0x60c   :  { %v4161_v16 = vpop.eup %4160 }
 0x60d   :  { %v1577_v9 = vmul.f32 %v4161_v16, %v5708_v2  ;;  %v4163_v63 = vpop.eup %4162  ;;  %v2089_v16 = vld [vmem:[#allocation3 + $0x230] sm:$0xff] }
 0x60e   :  { %v4165_v42 = vpop.eup %4164  ;;  %v1238_v12 = vmul.f32 %v4163_v63, %v5673_v25  ;;  %v2061_v25 = vld [vmem:[#allocation3 + $0x150] sm:$0xff]  ;;  %2224 = vmatpush.msra.mxu2 %v2089_v16 }
 0x60f   :  { %v1578_v6 = vmul.f32 %v4165_v42, %v5706_v26  ;;  %v2058_v26 = vld [vmem:[#allocation3 + $0x138] sm:$0xff]  ;;  %2130 = vmatpush.msrb.mxu0 %v2061_v25  ;;  %v2025_v63 = vld [vmem:[#allocation3 + $0x30] sm:$0xff]  ;;  %v2067_v25 = vld [vmem:[#allocation3 + $0x180] sm:$0xff] }
 0x610   :  { %v2022_v42 = vld [vmem:[#allocation3 + $0x18] sm:$0xff] }
 0x611   :  { %v1743_v7 = vsel %vm241_vm9, %v1578_v6, %v1723_v54  ;;  %2131 = vmatpush.msrb.mxu0 %v2058_v26  ;;  %v2019_v6 = vld [vmem:[#allocation3] sm:$0xff]  ;;  %v2076_v54 = vld [vmem:[#allocation3 + $0x1c8] sm:$0xff] }
 0x613   :  { %2132 = vmatpush.msrb.mxu0 %v2055_v15  ;;  %v2063_v15 = vld [vmem:[#allocation3 + $0x160] sm:$0xff] }
 0x615   :  { %v1689_v5 = vpop.permute.xlu0 %1688  ;;  %2133 = vmatpush.msrb.mxu0 %v2052_v49 }
 0x617   :  { %2134 = vmatpush.msrb.mxu0 %v2049_v50 }
 0x619   :  { %2135 = vmatpush.msrb.mxu0 %v2046_v21 }
 0x61b   :  { %v3918_v29 = vpop.permute.xlu1 %3917  ;;  %2136 = vmatpush.msrb.mxu0 %v2043_v27 }
 0x61c   :  { %v3919_v56 = vunpack.i.l.bf16 %v3918_v29  ;;  %v3920_v17 = vunpack.i.h.bf16 %v3918_v29  ;;  %v2034_v29 = vld [vmem:[#allocation3 + $0x78] sm:$0xff] }
 0x61d   :  { %v1691_v18 = vpop.permute.xlu0 %1690  ;;  %2137 = vmatpush.msrb.mxu0 %v2040_v58 }
 0x61e   :  { %v1730_v13 = vsel %vm241_vm9, %v1237_v31, %v3919_v56  ;;  %v1731_v40 = vsel %vm241_vm9, %v1238_v12, %v3920_v17  ;;  %v2035_v31 = vld [vmem:[#allocation3 + $0x80] sm:$0xff]  ;;  %v2026_v17 = vld [vmem:[#allocation3 + $0x38] sm:$0xff] }
 0x61f   :  { %v1734_v45 = vsel %vm783_vm14, %v1730_v13, %v1689_v5  ;;  %v1735_v2 = vsel %vm783_vm14, %v1731_v40, %v1691_v18  ;;  %2138 = vmatpush.msrb.mxu0 %v2037_v11  ;;  %2197 = vmatpush.msrb.mxu3 %v2035_v31  ;;  %v2031_v56 = vld [vmem:[#allocation3 + $0x60] sm:$0xff]  ;;  %v2088_v5 = vld [vmem:[#allocation3 + $0x228] sm:$0xff] }
 0x620   :  { %v1738_v53 = vsel %vm788_vm15, %v1734_v45, %v1705_v3  ;;  %v2032_v13 = vld [vmem:[#allocation3 + $0x68] sm:$0xff]  ;;  %2166 = vmatpush.msrb.mxu1 %v2088_v5  ;;  %v2085_v45 = vld [vmem:[#allocation3 + $0x210] sm:$0xff]  ;;  %v2079_v12 = vld [vmem:[#allocation3 + $0x1e0] sm:$0xff] }
 0x621   :  { %1877 = vmatmul.f32.gmra.mxu0 %v1738_v53  ;;  %1935 = vmatmul.f32.gmra.mxu2 %v1738_v53  ;;  %v2028_v3 = vld [vmem:[#allocation3 + $0x48] sm:$0xff]  ;;  %v2029_v53 = vld [vmem:[#allocation3 + $0x50] sm:$0xff]  ;;  %v2023_v18 = vld [vmem:[#allocation3 + $0x20] sm:$0xff] }
 0x622   :  { %2139 = vmatpush.msrb.mxu0 %v2034_v29  ;;  %2198 = vmatpush.msrb.mxu3 %v2032_v13  ;;  %v2080_v40 = vld [vmem:[#allocation3 + $0x1e8] sm:$0xff] }
 0x623   :  { %v1721_v38 = vpop.permute.xlu1 %1720  ;;  %2167 = vmatpush.msrb.mxu1 %v2085_v45 }
 0x624   :  { %v1742_v36 = vsel %vm241_vm9, %v1577_v9, %v1721_v38  ;;  %2140 = vmatpush.msrb.mxu0 %v2031_v56  ;;  %v2086_v9 = vld [vmem:[#allocation3 + $0x218] sm:$0xff]  ;;  %2199 = vmatpush.msrb.mxu3 %v2029_v53 }
 0x625   :  { %3627 = vmatmul.msk.f32.gmra.mxu1 %vm783_vm14, %v1742_v36  ;;  %3655 = vmatmul.msk.f32.gmra.mxu3 %vm783_vm14, %v1742_v36  ;;  %v2082_v38 = vld [vmem:[#allocation3 + $0x1f8] sm:$0xff]  ;;  %v2083_v36 = vld [vmem:[#allocation3 + $0x200] sm:$0xff] }
 0x626   :  { %2141 = vmatpush.msrb.mxu0 %v2028_v3  ;;  %2225 = vmatpush.msra.mxu2 %v2086_v9 }
 0x627   :  { %2168 = vmatpush.msrb.mxu1 %v2082_v38  ;;  %2200 = vmatpush.msrb.mxu3 %v2026_v17 }
 0x628   :  { %2142 = vmatpush.msrb.mxu0 %v2025_v63  ;;  %2226 = vmatpush.msra.mxu2 %v2083_v36 }
 0x629   :  { %2169 = vmatpush.msrb.mxu1 %v2079_v12  ;;  %2201 = vmatpush.msrb.mxu3 %v2023_v18 }
 0x62a   :  { %2143 = vmatpush.msrb.mxu0 %v2022_v42  ;;  %2227 = vmatpush.msra.mxu2 %v2080_v40 }
 0x62b   :  { %v1707_v47 = vpop.permute.xlu1 %1706  ;;  %2170 = vmatpush.msrb.mxu1 %v2076_v54  ;;  %v2057_v54 = vld [vmem:[#allocation3 + $0x130] sm:$0xff] }
 0x62c   :  { %v1739_v39 = vsel %vm788_vm15, %v1735_v2, %v1707_v47  ;;  %v2020_v2 = vld [vmem:[#allocation3 + $0x8] sm:$0xff]  ;;  %v2077_v47 = vld [vmem:[#allocation3 + $0x1d0] sm:$0xff]  ;;  %2144 = vmatpush.msrb.mxu0 %v2019_v6 }
 0x62d   :  { %1880 = vmatmul.f32.gmra.mxu0 %v1739_v39  ;;  %3628 = vmatmul.msk.f32.gmra.mxu1 %vm783_vm14, %v1743_v7  ;;  %v2060_v6 = vld [vmem:[#allocation3 + $0x148] sm:$0xff] }
 0x62e   :  { %1938 = vmatmul.f32.gmra.mxu2 %v1739_v39  ;;  %3656 = vmatmul.msk.f32.gmra.mxu3 %vm783_vm14, %v1743_v7  ;;  %v2073_v39 = vld [vmem:[#allocation3 + $0x1b0] sm:$0xff]  ;;  %v2074_v7 = vld [vmem:[#allocation3 + $0x1b8] sm:$0xff] }
 0x62f   :  { %2202 = vmatpush.msrb.mxu3 %v2020_v2  ;;  %2228 = vmatpush.msra.mxu2 %v2077_v47  ;;  %v2054_v2 = vld [vmem:[#allocation3 + $0x118] sm:$0xff] }
 0x630   :  { %2171 = vmatpush.msrb.mxu1 %v2073_v39  ;;  %2245 = vmatpush.msra.mxu0 %v2066_v34  ;;  %v2106_v47 = vld [vmem:[%s6623_s9 + $0x78] sm:$0xff]  ;;  %v2051_v39 = vld [vmem:[#allocation3 + $0x100] sm:$0xff] }
 0x631   :  { %2229 = vmatpush.msra.mxu2 %v2074_v7  ;;  %2303 = vmatpush.msra.mxu3 %v2106_v47  ;;  %v2105_v7 = vld [vmem:[%s6623_s9 + $0x70] sm:$0xff] }
 0x632   :  { %2172 = vmatpush.msrb.mxu1 %v2070_v28  ;;  %2246 = vmatpush.msra.mxu0 %v2063_v15  ;;  %v2048_v28 = vld [vmem:[#allocation3 + $0xe8] sm:$0xff] }
 0x633   :  { %2230 = vmatpush.msra.mxu2 %v2071_v51  ;;  %2304 = vmatpush.msra.mxu3 %v2105_v7  ;;  %v2104_v51 = vld [vmem:[%s6623_s9 + $0x68] sm:$0xff] }
 0x634   :  { %2173 = vmatpush.msrb.mxu1 %v2067_v25  ;;  %2247 = vmatpush.msra.mxu0 %v2060_v6  ;;  %v2045_v25 = vld [vmem:[#allocation3 + $0xd0] sm:$0xff]  ;;  %v2075_v7 = vld [vmem:[#allocation3 + $0x1c0] sm:$0xff] }
 0x635   :  { %2231 = vmatpush.msra.mxu2 %v2068_v33  ;;  %2305 = vmatpush.msra.mxu3 %v2104_v51  ;;  %v2103_v33 = vld [vmem:[%s6623_s9 + $0x60] sm:$0xff] }
 0x636   :  { %3783 = vmatpush.msra.mxu1 %v2066_v34  ;;  %2248 = vmatpush.msra.mxu0 %v2057_v54  ;;  %v2102_v34 = vld [vmem:[%s6623_s9 + $0x58] sm:$0xff] }
 0x637   :  { %2306 = vmatpush.msra.mxu3 %v2103_v33 }
 0x638   :  { %3784 = vmatpush.msra.mxu1 %v2063_v15  ;;  %2249 = vmatpush.msra.mxu0 %v2054_v2  ;;  %v2039_v15 = vld [vmem:[#allocation3 + $0xa0] sm:$0xff] }
 0x639   :  { %2307 = vmatpush.msra.mxu3 %v2102_v34 }
 0x63a   :  { %3785 = vmatpush.msra.mxu1 %v2060_v6  ;;  %2250 = vmatpush.msra.mxu0 %v2051_v39  ;;  %v2109_v6 = vld [vmem:[%s6623_s9 + $0x90] sm:$0xff] }
 0x63c   :  { %3786 = vmatpush.msra.mxu1 %v2057_v54  ;;  %2251 = vmatpush.msra.mxu0 %v2048_v28  ;;  %v2078_v54 = vld [vmem:[#allocation3 + $0x1d8] sm:$0xff] }
 0x63e   :  { %3787 = vmatpush.msra.mxu1 %v2054_v2  ;;  %2252 = vmatpush.msra.mxu0 %v2045_v25  ;;  %v2091_v2 = vld [vmem:[%s6623_s9] sm:$0xff] }
 0x640   :  { %3788 = vmatpush.msra.mxu1 %v2051_v39  ;;  %v2108_v39 = vld [vmem:[%s6623_s9 + $0x88] sm:$0xff] }
 0x642   :  { %3789 = vmatpush.msra.mxu1 %v2048_v28  ;;  %v2072_v28 = vld [vmem:[#allocation3 + $0x1a8] sm:$0xff] }
 0x644   :  { %v1901_v26 = vpop.f32.mrf.mxu1  ;;  %3790 = vmatpush.msra.mxu1 %v2045_v25  ;;  %v2107_v25 = vld [vmem:[%s6623_s9 + $0x80] sm:$0xff] }
 0x64a   :  { %v1959_v50 = vpop.f32.mrf.mxu3 }
 0x64c   :  { %v1904_v27 = vpop.f32.mrf.mxu1 }
 0x652   :  { %v1962_v56 = vpop.f32.mrf.mxu3 }
 0x65a   :  { %v1872_v0 = vpop.f32.mrf.mxu0 }
 0x65b   :  { %v1902_v49 = vadd.f32 %v1901_v26, %v1872_v0  ;;  %v2042_v26 = vld [vmem:[#allocation3 + $0xb8] sm:$0xff]  ;;  %v2101_v0 = vld [vmem:[%s6623_s9 + $0x50] sm:$0xff] }
 0x65c   :  { %3791 = vmatpush.msra.mxu1 %v2042_v26  ;;  %2253 = vmatpush.msra.mxu0 %v2042_v26 }
 0x65d   :  { %v1979_v14 = vmin.f32 %v1902_v49, 0.0  ;;  %vm1971_vm12 = vcmp.gt.f32.partialorder %v1902_v49, 0.0  ;;  %2308 = vmatpush.msra.mxu3 %v2101_v0 }
 0x65e   :  { %3792 = vmatpush.msra.mxu1 %v2039_v15  ;;  %2254 = vmatpush.msra.mxu0 %v2039_v15  ;;  %v2069_v15 = vld [vmem:[#allocation3 + $0x190] sm:$0xff] }
 0x65f   :  { %v1987_v20 = vmul.f32 1.442695, %v1979_v14  ;;  %v2100_v14 = vld [vmem:[%s6623_s9 + $0x48] sm:$0xff] }
 0x660   :  { %v1930_v21 = vpop.f32.mrf.mxu2  ;;  %2309 = vmatpush.msra.mxu3 %v2100_v14 }
 0x661   :  { %4166 = vpow2.f32 %v1987_v20  ;;  %v1960_v44 = vadd.f32 %v1959_v50, %v1930_v21  ;;  %v2033_v50 = vld [vmem:[#allocation3 + $0x70] sm:$0xff]  ;;  %v2099_v20 = vld [vmem:[%s6623_s9 + $0x40] sm:$0xff] }
 0x662   :  { %v1875_v37 = vpop.f32.mrf.mxu0  ;;  %2310 = vmatpush.msra.mxu3 %v2099_v20  ;;  %v2030_v21 = vld [vmem:[#allocation3 + $0x58] sm:$0xff] }
 0x663   :  { %v1980_v58 = vmin.f32 %v1960_v44, 0.0  ;;  %v1905_v4 = vadd.f32 %v1904_v27, %v1875_v37  ;;  %vm1972_vm13 = vcmp.gt.f32.partialorder %v1960_v44, 0.0  ;;  %v2027_v27 = vld [vmem:[#allocation3 + $0x40] sm:$0xff]  ;;  %v2097_v37 = vld [vmem:[%s6623_s9 + $0x30] sm:$0xff] }
 0x665   :  { %v1989_v11 = vmul.f32 1.442695, %v1980_v58  ;;  %v1981_v41 = vmin.f32 %v1905_v4, 0.0  ;;  %vm1973_vm2 = vcmp.gt.f32.partialorder %v1905_v4, 0.0  ;;  %v2024_v58 = vld [vmem:[#allocation3 + $0x28] sm:$0xff] }
 0x667   :  { %v4167_v29 = vpop.eup %4166  ;;  %4168 = vpow2.f32 %v1989_v11  ;;  %v1991_v31 = vmul.f32 1.442695, %v1981_v41  ;;  %v2096_v11 = vld [vmem:[%s6623_s9 + $0x28] sm:$0xff]  ;;  %v2021_v41 = vld [vmem:[#allocation3 + $0x10] sm:$0xff] }
 0x668   :  { %v3657_v5 = vadd.f32 -1.0, %v4167_v29  ;;  %v1933_v13 = vpop.f32.mrf.mxu2  ;;  %v2113_v29 = vld [vmem:[%s6623_s9 + $0xb0] sm:$0xff] }
 0x669   :  { %4170 = vpow2.f32 %v1991_v31  ;;  %v1963_v16 = vadd.f32 %v1962_v56, %v1933_v13  ;;  %v2090_v31 = vld [vmem:[#allocation3 + $0x238] sm:$0xff] }
 0x66a   :  { %v5766_v3 = vsel %vm1971_vm12, %v1902_v49, %v3657_v5  ;;  %v2036_v49 = vld [vmem:[#allocation3 + $0x88] sm:$0xff]  ;;  %v2095_v56 = vld [vmem:[%s6623_s9 + $0x20] sm:$0xff]  ;;  %v2094_v13 = vld [vmem:[%s6623_s9 + $0x18] sm:$0xff] }
 0x66b   :  { %v1982_v45 = vmin.f32 %v1963_v16, 0.0  ;;  %2145 = vmatmul.f32.vlgmr.msrb.gmra.mxu0 %v5766_v3  ;;  %2203 = vmatmul.f32.vlgmr.msrb.gmra.mxu3 %v5766_v3  ;;  %vm1974_vm5 = vcmp.gt.f32.partialorder %v1963_v16, 0.0  ;;  %v2087_v5 = vld [vmem:[#allocation3 + $0x220] sm:$0xff] }
 0x66c   :  { %3793 = vmatpush.msra.mxu1 %v2036_v49  ;;  %2255 = vmatpush.msra.mxu0 %v2036_v49 }
 0x66d   :  { %v4169_v53 = vpop.eup %4168  ;;  %v1993_v9 = vmul.f32 1.442695, %v1982_v45  ;;  %v2084_v45 = vld [vmem:[#allocation3 + $0x208] sm:$0xff] }
 0x66e   :  { %v3658_v63 = vadd.f32 -1.0, %v4169_v53  ;;  %3794 = vmatpush.msra.mxu1 %v2033_v50  ;;  %2256 = vmatpush.msra.mxu0 %v2033_v50  ;;  %v2093_v53 = vld [vmem:[%s6623_s9 + $0x10] sm:$0xff] }
 0x66f   :  { %v4171_v38 = vpop.eup %4170  ;;  %4172 = vpow2.f32 %v1993_v9  ;;  %v2111_v9 = vld [vmem:[%s6623_s9 + $0xa0] sm:$0xff] }
 0x670   :  { %v5770_v17 = vsel %vm1972_vm13, %v1960_v44, %v3658_v63  ;;  %v3659_v36 = vadd.f32 -1.0, %v4171_v38  ;;  %3795 = vmatpush.msra.mxu1 %v2030_v21  ;;  %2257 = vmatpush.msra.mxu0 %v2030_v21  ;;  %v2098_v44 = vld [vmem:[%s6623_s9 + $0x38] sm:$0xff]  ;;  %v2092_v38 = vld [vmem:[%s6623_s9 + $0x8] sm:$0xff] }
 0x671   :  { %3665 = vmatmul.msk.f32.vlgmr.msrb.gmra.mxu1 %vm783_vm14, %v5770_v17  ;;  %3669 = vmatmul.msk.f32.vlgmr.msra.gmra.mxu2 %vm783_vm14, %v5770_v17  ;;  %v2081_v63 = vld [vmem:[#allocation3 + $0x1f0] sm:$0xff] }
 0x672   :  { %v5776_v42 = vsel %vm1973_vm2, %v1905_v4, %v3659_v36  ;;  %2311 = vmatpush.msra.mxu3 %v2098_v44  ;;  %3796 = vmatpush.msra.mxu1 %v2027_v27  ;;  %v2114_v4 = vld [vmem:[%s6623_s9 + $0xb8] sm:$0xff] }
 0x673   :  { %2148 = vmatmul.f32.gmra.mxu0 %v5776_v42  ;;  %2206 = vmatmul.f32.gmra.mxu3 %v5776_v42  ;;  %v2110_v36 = vld [vmem:[%s6623_s9 + $0x98] sm:$0xff] }
 0x674   :  { %2258 = vmatpush.msra.mxu0 %v2027_v27  ;;  %2312 = vmatpush.msra.mxu3 %v2097_v37 }
 0x675   :  { %v4173_v12 = vpop.eup %4172  ;;  %3797 = vmatpush.msra.mxu1 %v2024_v58  ;;  %2340 = vmatpush.msrb.mxu2 %v2114_v4 }
 0x676   :  { %v3660_v18 = vadd.f32 -1.0, %v4173_v12  ;;  %2259 = vmatpush.msra.mxu0 %v2024_v58  ;;  %2313 = vmatpush.msra.mxu3 %v2096_v11 }
 0x677   :  { %3798 = vmatpush.msra.mxu1 %v2021_v41  ;;  %2341 = vmatpush.msrb.mxu2 %v2113_v29 }
 0x678   :  { %v5780_v40 = vsel %vm1974_vm5, %v1963_v16, %v3660_v18  ;;  %2260 = vmatpush.msra.mxu0 %v2021_v41  ;;  %2314 = vmatpush.msra.mxu3 %v2095_v56  ;;  %v2112_v16 = vld [vmem:[%s6623_s9 + $0xa8] sm:$0xff] }
 0x679   :  { %3666 = vmatmul.msk.f32.gmra.mxu1 %vm783_vm14, %v5780_v40  ;;  %3670 = vmatmul.msk.f32.gmra.mxu2 %vm783_vm14, %v5780_v40 }
 0x67a   :  { %2282 = vmatpush.msrb.mxu1 %v2090_v31  ;;  %2315 = vmatpush.msra.mxu3 %v2094_v13 }
 0x67b   :  { %2342 = vmatpush.msrb.mxu2 %v2112_v16 }
 0x67c   :  { %2283 = vmatpush.msrb.mxu1 %v2087_v5  ;;  %2316 = vmatpush.msra.mxu3 %v2093_v53 }
 0x67d   :  { %2343 = vmatpush.msrb.mxu2 %v2111_v9 }
 0x67e   :  { %2284 = vmatpush.msrb.mxu1 %v2084_v45  ;;  %2317 = vmatpush.msra.mxu3 %v2092_v38 }
 0x67f   :  { %2344 = vmatpush.msrb.mxu2 %v2110_v36 }
 0x680   :  { %2285 = vmatpush.msrb.mxu1 %v2081_v63  ;;  %2318 = vmatpush.msra.mxu3 %v2091_v2 }
 0x681   :  { %2345 = vmatpush.msrb.mxu2 %v2109_v6 }
 0x682   :  { %2286 = vmatpush.msrb.mxu1 %v2078_v54 }
 0x683   :  { %2346 = vmatpush.msrb.mxu2 %v2108_v39 }
 0x684   :  { %2287 = vmatpush.msrb.mxu1 %v2075_v7 }
 0x685   :  { %2347 = vmatpush.msrb.mxu2 %v2107_v25 }
 0x686   :  { %2288 = vmatpush.msrb.mxu1 %v2072_v28 }
 0x688   :  { %2289 = vmatpush.msrb.mxu1 %v2069_v15 }
 0x69e   :  { %v1878_v12 = vpop.f32.mrf.mxu0 }
 0x6a2   :  { %v1907_v18 = vpop.f32.mrf.mxu1 }
 0x6a3   :  { %v1908_v47 = vadd.f32 %v1907_v18, %v1878_v12 }
 0x6a4   :  { %v1936_v26 = vpop.f32.mrf.mxu2 }
 0x6a5   :  { %v1983_v51 = vmin.f32 %v1908_v47, 0.0  ;;  %vm1975_vm3 = vcmp.gt.f32.partialorder %v1908_v47, 0.0 }
 0x6a7   :  { %v1995_v33 = vmul.f32 1.442695, %v1983_v51  ;;  %v5894_v51 = vshra.s32 %v4873_v30, 6 }
 0x6a8   :  { %v1965_v34 = vpop.f32.mrf.mxu3 }
 0x6a9   :  { %4174 = vpow2.f32 %v1995_v33  ;;  %v1966_v0 = vadd.f32 %v1965_v34, %v1936_v26  ;;  %vm3047_vm6 = vcmp.eq.s32.totalorder %v4884_v59, %v5894_v51  ;;  %vm3071_vm7 = vcmp.eq.s32.totalorder %v4941_v23, %v5894_v51 }
 0x6aa   :  { %v1881_v49 = vpop.f32.mrf.mxu0  ;;  %v1910_v14 = vpop.f32.mrf.mxu1  ;;  %vm3044_vm8 = vcmp.eq.s32.totalorder %v4886_v35, %v5894_v51  ;;  %vm3068_vm10 = vcmp.eq.s32.totalorder %v4957_v43, %v5894_v51  ;;  %vm3041_vm11 = vcmp.eq.s32.totalorder %v4888_v10, %v5894_v51  ;;  %vm3065_vm12 = vcmp.eq.s32.totalorder %v4972_v57, %v5894_v51 }
 0x6ab   :  { %v1984_v50 = vmin.f32 %v1966_v0, 0.0  ;;  %v1911_v20 = vadd.f32 %v1910_v14, %v1881_v49  ;;  %vm1976_vm4 = vcmp.gt.f32.partialorder %v1966_v0, 0.0  ;;  %vm3038_vm13 = vcmp.eq.s32.totalorder %v4896_v32, %v5894_v51 }
 0x6ac   :  { %vm3062_vm2 = vcmp.eq.s32.totalorder %v4981_v55, %v5894_v51 }
 0x6ad   :  { %v1997_v21 = vmul.f32 1.442695, %v1984_v50  ;;  %v1985_v44 = vmin.f32 %v1911_v20, 0.0  ;;  %vm1977_vm0 = vcmp.gt.f32.partialorder %v1911_v20, 0.0 }
 0x6af   :  { %v4175_v27 = vpop.eup %4174  ;;  %4176 = vpow2.f32 %v1997_v21  ;;  %v1999_v37 = vmul.f32 1.442695, %v1985_v44 }
 0x6b0   :  { %v3661_v58 = vadd.f32 -1.0, %v4175_v27 }
 0x6b1   :  { %4178 = vpow2.f32 %v1999_v37  ;;  %v1939_v4 = vpop.f32.mrf.mxu2  ;;  %v1968_v11 = vpop.f32.mrf.mxu3 }
 0x6b2   :  { %v2015_v41 = vsel %vm1975_vm3, %v1908_v47, %v3661_v58  ;;  %v1969_v29 = vadd.f32 %v1968_v11, %v1939_v4 }
 0x6b3   :  { %2151 = vmatmul.f32.gmra.mxu0 %v2015_v41  ;;  %2209 = vmatmul.f32.gmra.mxu3 %v2015_v41 }
 0x6b4   :  { %v1986_v31 = vmin.f32 %v1969_v29, 0.0  ;;  %vm1978_vm1 = vcmp.gt.f32.partialorder %v1969_v29, 0.0 }
 0x6b5   :  { %v4177_v56 = vpop.eup %4176 }
 0x6b6   :  { %v3662_v5 = vadd.f32 -1.0, %v4177_v56  ;;  %v2001_v13 = vmul.f32 1.442695, %v1986_v31 }
 0x6b7   :  { %v4179_v16 = vpop.eup %4178 }
 0x6b8   :  { %v2016_v45 = vsel %vm1976_vm4, %v1966_v0, %v3662_v5  ;;  %v3663_v53 = vadd.f32 -1.0, %v4179_v16  ;;  %4180 = vpow2.f32 %v2001_v13  ;;  %v5911_v0 = vshra.s32 %v5234_v1, 6  ;;  %v6679_v13 = vld [vmem:[#allocation14_spill] sm:$0xff] }
 0x6b9   :  { %3667 = vmatmul.msk.f32.gmra.mxu1 %vm783_vm14, %v2016_v45  ;;  %3671 = vmatmul.msk.f32.gmra.mxu2 %vm783_vm14, %v2016_v45  ;;  %vm3035_vm4 = vcmp.eq.s32.totalorder %v4906_v60, %v5894_v51 }
 0x6ba   :  { %v2017_v9 = vsel %vm1977_vm0, %v1911_v20, %v3663_v53  ;;  %vm3048_vm5 = vcmp.eq.s32.totalorder %v4884_v59, %v5911_v0  ;;  %vm3072_vm3 = vcmp.eq.s32.totalorder %v4941_v23, %v5911_v0  ;;  %vm3059_vm0 = vcmp.eq.s32.totalorder %v4994_v62, %v5894_v51 }
 0x6bb   :  { %2154 = vmatmul.f32.gmra.mxu0 %v2017_v9  ;;  %2212 = vmatmul.f32.gmra.mxu3 %v2017_v9  ;;  %v6681_v53 = vmov 3  }
 0x6bc   :  { %2376 = vmatpush.xpose.msrb.mxu0 %v2017_v9 }
 0x6be   :  { %v4181_v63 = vpop.eup %4180 }
 0x6bf   :  { %v3664_v38 = vadd.f32 -1.0, %v4181_v63  ;;  %v6683_v63 = vld [vmem:[#allocation15_spill] sm:$0xff] }
 0x6c0   :  { %2377 = vmatpush.xpose.msrb.mxu0 %v2015_v41 }
 0x6c1   :  { %v2018_v36 = vsel %vm1978_vm1, %v1969_v29, %v3664_v38  ;;  %vm3045_vm1 = vcmp.eq.s32.totalorder %v4886_v35, %v5911_v0  ;;  %v6678_v29 = vld [vmem:[#allocation13_spill] sm:$0xff]  ;;  %v6684_v38 = vld [vmem:[#allocation16_spill] sm:$0xff] }
 0x6c2   :  { %3668 = vmatmul.msk.f32.gmra.mxu1 %vm783_vm14, %v2018_v36  ;;  %3672 = vmatmul.msk.f32.gmra.mxu2 %vm783_vm14, %v2018_v36 }
 0x6c3   :  { %2261 = vmatmul.f32.vlgmr.msra.gmra.mxu0 %v5766_v3  ;;  %2319 = vmatmul.f32.vlgmr.msra.gmra.mxu3 %v5766_v3 }
 0x6c4   :  { %2378 = vmatpush.xpose.msrb.mxu0 %v5776_v42 }
 0x6c8   :  { %2379 = vmatpush.xpose.msrb.mxu0 %v5766_v3  ;;  %v2115_v3 = vld [vmem:[%s6624_s10] sm:$0x3f] }
 0x6ca   :  { %2267 = vmatmul.f32.vlgmr.msra.gmra.mxu1 %v2015_v41  ;;  %3677 = vmatmul.msk.f32.vlgmr.msrb.gmra.mxu2 %vm783_vm14, %v5770_v17 }
 0x6cb   :  { %3681 = vmatpush.xpose.msk.msra.mxu1 %vm783_vm14, %v2018_v36  ;;  %2264 = vmatmul.f32.gmra.mxu0 %v5776_v42 }
 0x6cc   :  { %2322 = vmatmul.f32.gmra.mxu3 %v5776_v42 }
 0x6cf   :  { %3682 = vmatpush.xpose.msk.msra.mxu1 %vm783_vm14, %v2016_v45 }
 0x6d2   :  { %2270 = vmatmul.f32.gmra.mxu1 %v2017_v9  ;;  %3678 = vmatmul.msk.f32.gmra.mxu2 %vm783_vm14, %v5780_v40 }
 0x6d3   :  { %3683 = vmatpush.xpose.msk.msra.mxu1 %vm783_vm14, %v5780_v40  ;;  %2380 = vmatmul.f32.vlgmr.msrb.gmra.mxu0 %v2115_v3 }
 0x6d4   :  { %2325 = vmatmul.f32.gmra.mxu3 %v2015_v41 }
 0x6d7   :  { %3684 = vmatpush.xpose.msk.msra.mxu1 %vm783_vm14, %v5770_v17 }
 0x6da   :  { %3673 = vmatmul.msk.f32.vlgmr.msrb.gmra.mxu1 %vm783_vm14, %v5770_v17  ;;  %3679 = vmatmul.msk.f32.gmra.mxu2 %vm783_vm14, %v2016_v45  ;;  %v2116_v17 = vld [vmem:[%s6624_s10 + $0x8] sm:$0x3f] }
 0x6dc   :  { %2328 = vmatmul.f32.gmra.mxu3 %v2017_v9  ;;  %v6682_v9 = vmov 5  }
 0x6e2   :  { %3674 = vmatmul.msk.f32.gmra.mxu1 %vm783_vm14, %v5780_v40  ;;  %3680 = vmatmul.msk.f32.gmra.mxu2 %vm783_vm14, %v2018_v36 }
 0x6e8   :  { %v2146_v42 = vpop.f32.mrf.mxu0 }
 0x6ea   :  { %3675 = vmatmul.msk.f32.gmra.mxu1 %vm783_vm14, %v2016_v45  ;;  %v6680_v45 = vmov 4  }
 0x6ee   :  { %v2175_v12 = vpop.f32.mrf.mxu1  ;;  %v2204_v18 = vpop.f32.mrf.mxu3 }
 0x6ef   :  { %v5921_v50 = vadd.f32 %v2175_v12, %v2146_v42  ;;  %v6687_v42 = vmov 1   ;;  %v6688_v12 = vmov 0  }
 0x6f0   :  { %v2149_v54 = vpop.f32.mrf.mxu0 }
 0x6f2   :  { %3676 = vmatmul.msk.f32.gmra.mxu1 %vm783_vm14, %v2018_v36  ;;  %v6685_v36 = vld [vmem:[#allocation17_spill] sm:$0xff] }
 0x6f4   :  { %v2233_v6 = vpop.f32.mrf.mxu2 }
 0x6f5   :  { %v5975_v37 = vadd.f32 %v2233_v6, %v2204_v18  ;;  %v2998_v6 = vadd.s32 256, %v4873_v30 }
 0x6f6   :  { %v2178_v2 = vpop.f32.mrf.mxu1  ;;  %v2207_v47 = vpop.f32.mrf.mxu3 }
 0x6f7   :  { %v5917_v14 = vadd.f32 %v2178_v2, %v2149_v54 }
 0x6fa   :  { %3685 = vmatmul.msk.f32.vlgmr.msra.gmra.mxu1 %vm783_vm14, %v2116_v17  ;;  %v6686_v17 = vld [vmem:[#allocation18_spill] sm:$0xff] }
 0x6fc   :  { %v2236_v40 = vpop.f32.mrf.mxu2 }
 0x6fd   :  { %v5961_v27 = vadd.f32 %v2236_v40, %v2207_v47  ;;  %v6085_v47 = vshra.s32 %v2998_v6, 6 }
 0x730   :  { %v2152_v39 = vpop.f32.mrf.mxu0 }
 0x736   :  { %v2181_v7 = vpop.f32.mrf.mxu1  ;;  %v2210_v28 = vpop.f32.mrf.mxu3 }
 0x737   :  { %v5906_v15 = vadd.f32 %v2181_v7, %v2152_v39  ;;  %v6689_v39 = vmov 2  }
 0x738   :  { %v2155_v33 = vpop.f32.mrf.mxu0 }
 0x73c   :  { %v2239_v25 = vpop.f32.mrf.mxu2 }
 0x73d   :  { %v5947_v44 = vadd.f32 %v2239_v25, %v2210_v28 }
 0x73e   :  { %v2213_v49 = vpop.f32.mrf.mxu3 }
 0x73f   :  { %v2184_v26 = vpop.f32.mrf.mxu1 }
 0x740   :  { %v5900_v34 = vadd.f32 %v2184_v26, %v2155_v33  ;;  %v2262_v54 = vpop.f32.mrf.mxu0 }
 0x742   :  { %3686 = vmatpush.msk.msrb.mxu3 %vm3047_vm6, %v5900_v34  ;;  %3702 = vmatpush.msk.msra.mxu0 %vm3071_vm7, %v5900_v34  ;;  %vm3069_vm6 = vcmp.eq.s32.totalorder %v4957_v43, %v5911_v0  ;;  %vm3032_vm7 = vcmp.eq.s32.totalorder %v4914_v46, %v5894_v51 }
 0x744   :  { %3687 = vmatpush.msk.msrb.mxu3 %vm3044_vm8, %v5906_v15  ;;  %3703 = vmatpush.msk.msra.mxu0 %vm3068_vm10, %v5906_v15  ;;  %vm3056_vm8 = vcmp.eq.s32.totalorder %v5001_v61, %v5894_v51  ;;  %vm3042_vm10 = vcmp.eq.s32.totalorder %v4888_v10, %v5911_v0 }
 0x745   :  { %v2242_v20 = vpop.f32.mrf.mxu2 }
 0x746   :  { %v5927_v1 = vadd.f32 %v2242_v20, %v2213_v49  ;;  %3688 = vmatpush.msk.msrb.mxu3 %vm3041_vm11, %v5917_v14  ;;  %3704 = vmatpush.msk.msra.mxu0 %vm3065_vm12, %v5917_v14  ;;  %vm3066_vm11 = vcmp.eq.s32.totalorder %v4972_v57, %v5911_v0  ;;  %vm3029_vm12 = vcmp.eq.s32.totalorder %v4923_v24, %v5894_v51  ;;  %v2320_v58 = vpop.f32.mrf.mxu3 }
 0x747   :  { %v5935_v21 = vpop.f32.mrf.mxu1 }
 0x748   :  { %3689 = vmatpush.msk.msrb.mxu3 %vm3038_vm13, %v5921_v50  ;;  %3705 = vmatpush.msk.msra.mxu0 %vm3062_vm2, %v5921_v50  ;;  %vm3053_vm13 = vcmp.eq.s32.totalorder %v5018_v8, %v5894_v51  ;;  %vm3039_vm2 = vcmp.eq.s32.totalorder %v4896_v32, %v5911_v0 }
 0x749   :  { %3714 = vmatpush.msk.msra.mxu2 %vm3048_vm5, %v5927_v1  ;;  %3730 = vmatpush.msk.msrb.mxu1 %vm3072_vm3, %v5927_v1  ;;  %vm3063_vm5 = vcmp.eq.s32.totalorder %v4981_v55, %v5911_v0  ;;  %vm3026_vm3 = vcmp.eq.s32.totalorder %v4925_v52, %v5894_v51 }
 0x74a   :  { %3690 = vmatpush.msk.msrb.mxu3 %vm3035_vm4, %v5900_v34  ;;  %3706 = vmatpush.msk.msra.mxu0 %vm3059_vm0, %v5900_v34  ;;  %vm3050_vm4 = vcmp.eq.s32.totalorder %v5030_v19, %v5894_v51  ;;  %vm3036_vm0 = vcmp.eq.s32.totalorder %v4906_v60, %v5911_v0 }
 0x74b   :  { %3715 = vmatpush.msk.msra.mxu2 %vm3045_vm1, %v5947_v44  ;;  %3731 = vmatpush.msk.msrb.mxu1 %vm3069_vm6, %v5947_v44  ;;  %vm3060_vm1 = vcmp.eq.s32.totalorder %v4994_v62, %v5911_v0  ;;  %vm3023_vm6 = vcmp.eq.s32.totalorder %v4939_v48, %v5894_v51 }
 0x74c   :  { %3691 = vmatpush.msk.msrb.mxu3 %vm3032_vm7, %v5906_v15  ;;  %3707 = vmatpush.msk.msra.mxu0 %vm3056_vm8, %v5906_v15  ;;  %vm3033_vm7 = vcmp.eq.s32.totalorder %v4914_v46, %v5911_v0  ;;  %vm3057_vm8 = vcmp.eq.s32.totalorder %v5001_v61, %v5911_v0 }
 0x74d   :  { %3716 = vmatpush.msk.msra.mxu2 %vm3042_vm10, %v5961_v27  ;;  %3732 = vmatpush.msk.msrb.mxu1 %vm3066_vm11, %v5961_v27  ;;  %v2349_v4 = vpop.f32.mrf.mxu2  ;;  %vm3020_vm10 = vcmp.eq.s32.totalorder %v4953_v22, %v5894_v51  ;;  %vm3030_vm11 = vcmp.eq.s32.totalorder %v4923_v24, %v5911_v0 }
 0x74e   :  { %v5979_v11 = vadd.f32 %v2349_v4, %v2320_v58  ;;  %3692 = vmatpush.msk.msrb.mxu3 %vm3029_vm12, %v5917_v14  ;;  %3708 = vmatpush.msk.msra.mxu0 %vm3053_vm13, %v5917_v14  ;;  %vm3054_vm12 = vcmp.eq.s32.totalorder %v5018_v8, %v5911_v0  ;;  %vm3017_vm13 = vcmp.eq.s32.totalorder %v6678_v29, %v5894_v51 }
 0x74f   :  { %3717 = vmatpush.msk.msra.mxu2 %vm3039_vm2, %v5975_v37  ;;  %3733 = vmatpush.msk.msrb.mxu1 %vm3063_vm5, %v5975_v37  ;;  %v5987_v41 = vpop.f32.mrf.mxu1  ;;  %vm3027_vm2 = vcmp.eq.s32.totalorder %v4925_v52, %v5911_v0  ;;  %vm3051_vm5 = vcmp.eq.s32.totalorder %v5030_v19, %v5911_v0  ;;  %v2323_v56 = vpop.f32.mrf.mxu3 }
 0x750   :  { %2579 = vperm.xlu2 %3923, %v5979_v11   ;;  %2834 = vperm.xlu1 %3922, %v5979_v11  }
 0x751   :  { %2494 = vperm.xlu0 %3921, %v5979_v11   ;;  %3693 = vmatpush.msk.msrb.mxu3 %vm3026_vm3, %v5921_v50  ;;  %vm3014_vm3 = vcmp.eq.s32.totalorder %v6679_v13, %v5894_v51 }
 0x752   :  { %3709 = vmatpush.msk.msra.mxu0 %vm3050_vm4, %v5921_v50  ;;  %3718 = vmatpush.msk.msra.mxu2 %vm3036_vm0, %v5927_v1  ;;  %vm3024_vm4 = vcmp.eq.s32.totalorder %v4939_v48, %v5911_v0  ;;  %vm3011_vm0 = vcmp.eq.s32.totalorder %v6683_v63, %v5894_v51 }
 0x753   :  { %3734 = vmatpush.msk.msrb.mxu1 %vm3060_vm1, %v5927_v1  ;;  %3694 = vmatpush.msk.msrb.mxu3 %vm3023_vm6, %v5900_v34  ;;  %vm3021_vm1 = vcmp.eq.s32.totalorder %v4953_v22, %v5911_v0  ;;  %vm3008_vm6 = vcmp.eq.s32.totalorder %v6684_v38, %v5894_v51 }
 0x754   :  { %3719 = vmatpush.msk.msra.mxu2 %vm3033_vm7, %v5947_v44  ;;  %vm3018_vm7 = vcmp.eq.s32.totalorder %v6678_v29, %v5911_v0 }
 0x755   :  { %3735 = vmatpush.msk.msrb.mxu1 %vm3057_vm8, %v5947_v44  ;;  %3695 = vmatpush.msk.msrb.mxu3 %vm3020_vm10, %v5906_v15  ;;  %v2352_v31 = vpop.f32.mrf.mxu2  ;;  %vm3005_vm8 = vcmp.eq.s32.totalorder %v6685_v36, %v5894_v51  ;;  %vm3015_vm10 = vcmp.eq.s32.totalorder %v6679_v13, %v5911_v0 }
 0x756   :  { %3720 = vmatpush.msk.msra.mxu2 %vm3030_vm11, %v5961_v27  ;;  %v6031_v16 = vadd.f32 %v2352_v31, %v2323_v56  ;;  %vm3002_vm11 = vcmp.eq.s32.totalorder %v6686_v17, %v5894_v51 }
 0x757   :  { %3736 = vmatpush.msk.msrb.mxu1 %vm3054_vm12, %v5961_v27  ;;  %3696 = vmatpush.msk.msrb.mxu3 %vm3017_vm13, %v5917_v14  ;;  %v6027_v5 = vpop.f32.mrf.mxu1  ;;  %vm3012_vm12 = vcmp.eq.s32.totalorder %v6683_v63, %v5911_v0  ;;  %vm3009_vm13 = vcmp.eq.s32.totalorder %v6684_v38, %v5911_v0  ;;  %v2326_v40 = vpop.f32.mrf.mxu3 }
 0x758   :  { %3721 = vmatpush.msk.msra.mxu2 %vm3027_vm2, %v5975_v37  ;;  %3926 = vset.pattern.permute.xlu2 %v6680_v45  ;;  %vm3006_vm2 = vcmp.eq.s32.totalorder %v6685_v36, %v5911_v0 }
 0x759   :  { %3737 = vmatpush.msk.msrb.mxu1 %vm3051_vm5, %v5975_v37  ;;  %3924 = vset.pattern.permute.xlu1 %v6681_v53  ;;  %vm3003_vm5 = vcmp.eq.s32.totalorder %v6686_v17, %v5911_v0 }
 0x75a   :  { %3928 = vset.pattern.permute.xlu0 %v6682_v9  ;;  %3697 = vmatpush.msk.msrb.mxu3 %vm3014_vm3, %v5921_v50  ;;  %vm3049_vm3 = vcmp.eq.s32.totalorder %v4884_v59, %v6085_v47  ;;  %v2265_v59 = vpop.f32.mrf.mxu0 }
 0x75b   :  { %3722 = vmatpush.msk.msra.mxu2 %vm3024_vm4, %v5927_v1  ;;  %2749 = vperm.xlu2 %3926, %v5979_v11   ;;  %vm3073_vm4 = vcmp.eq.s32.totalorder %v4941_v23, %v6085_v47 }
 0x75c   :  { %2664 = vperm.xlu1 %3924, %v5979_v11   ;;  %2838 = vperm.xlu0 %3928, %v6031_v16  }
 0x75d   :  { %3698 = vmatpush.msk.msrb.mxu3 %vm3011_vm0, %v5900_v34  ;;  %3723 = vmatpush.msk.msra.mxu2 %vm3021_vm1, %v5947_v44  ;;  %v2355_v2 = vpop.f32.mrf.mxu2  ;;  %vm3046_vm0 = vcmp.eq.s32.totalorder %v4886_v35, %v6085_v47  ;;  %vm3070_vm1 = vcmp.eq.s32.totalorder %v4957_v43, %v6085_v47 }
 0x75e   :  { %v6088_v7 = vadd.f32 %v2355_v2, %v2326_v40 }
 0x75f   :  { %3699 = vmatpush.msk.msrb.mxu3 %vm3008_vm6, %v5906_v15  ;;  %3724 = vmatpush.msk.msra.mxu2 %vm3018_vm7, %v5961_v27  ;;  %v2294_v3 = vpop.f32.mrf.mxu1  ;;  %vm3043_vm6 = vcmp.eq.s32.totalorder %v4888_v10, %v6085_v47  ;;  %v2329_v35 = vpop.f32.mrf.mxu3  ;;  %vm3067_vm7 = vcmp.eq.s32.totalorder %v4972_v57, %v6085_v47  ;;  %v6130_v10 = vadd.f32 %v6027_v5, %v2262_v54 }
 0x760   :  { %v6114_v23 = vadd.f32 %v2294_v3, %v2265_v59 }
 0x761   :  { %3700 = vmatpush.msk.msrb.mxu3 %vm3005_vm8, %v5917_v14  ;;  %3725 = vmatpush.msk.msra.mxu2 %vm3015_vm10, %v5975_v37  ;;  %vm3040_vm8 = vcmp.eq.s32.totalorder %v4896_v32, %v6085_v47  ;;  %vm3064_vm10 = vcmp.eq.s32.totalorder %v4981_v55, %v6085_v47  ;;  %v6690_v55 = vld [vmem:[#allocation9_spill] sm:$0xff] }
 0x762   :  { %v2381_v32 = vpop.f32.mrf.mxu0 }
 0x763   :  { %3701 = vmatpush.msk.msrb.mxu3 %vm3002_vm11, %v5921_v50  ;;  %3726 = vmatpush.msk.msra.mxu2 %vm3012_vm12, %v5927_v1  ;;  %vm3037_vm11 = vcmp.eq.s32.totalorder %v4906_v60, %v6085_v47  ;;  %vm3061_vm12 = vcmp.eq.s32.totalorder %v4994_v62, %v6085_v47 }
 0x764   :  { %3927 = vset.pattern.permute.xlu2 %v6687_v42  ;;  %3925 = vset.pattern.permute.xlu1 %v6688_v12 }
 0x765   :  { %3932 = vset.pattern.permute.xlu0 %v6680_v45  ;;  %2406 = vperm.xlu1 %3925, %v5979_v11   ;;  %v2358_v25 = vpop.f32.mrf.mxu2 }
 0x766   :  { %2753 = vperm.xlu0 %3932, %v6031_v16   ;;  %2498 = vperm.xlu2 %3927, %v6031_v16   ;;  %v6121_v43 = vadd.f32 %v2358_v25, %v2329_v35 }
 0x767   :  { %3727 = vmatpush.msk.msra.mxu2 %vm3009_vm13, %v5947_v44  ;;  %v2297_v18 = vpop.f32.mrf.mxu1  ;;  %vm3034_vm13 = vcmp.eq.s32.totalorder %v4914_v46, %v6085_v47 }
 0x768   :  { %v6105_v51 = vadd.f32 %v2297_v18, %v5935_v21 }
 0x769   :  { %3728 = vmatpush.msk.msra.mxu2 %vm3006_vm2, %v5961_v27  ;;  %vm3058_vm2 = vcmp.eq.s32.totalorder %v5001_v61, %v6085_v47 }
 0x76b   :  { %3729 = vmatpush.msk.msra.mxu2 %vm3003_vm5, %v5975_v37  ;;  %vm3031_vm5 = vcmp.eq.s32.totalorder %v4923_v24, %v6085_v47 }
 0x76d   :  { %3929 = vset.pattern.permute.xlu1 %v6689_v39 }
 0x76e   :  { %3935 = vset.pattern.permute.xlu0 %v6689_v39  ;;  %3930 = vset.pattern.permute.xlu2 %v6681_v53 }
 0x76f   :  { %2583 = vperm.xlu1 %3929, %v6031_v16   ;;  %2668 = vperm.xlu2 %3930, %v6031_v16   ;;  %v2300_v30 = vpop.f32.mrf.mxu1 }
 0x770   :  { %2587 = vperm.xlu0 %3935, %v6088_v7   ;;  %v6098_v28 = vadd.f32 %v2300_v30, %v5987_v41 }
 0x772   :  { %3742 = vmatpush.msk.msrb.mxu2 %vm3049_vm3, %v6098_v28  ;;  %3799 = vmatpush.msk.msra.mxu3 %vm3049_vm3, %v6098_v28  ;;  %vm3055_vm3 = vcmp.eq.s32.totalorder %v5018_v8, %v6085_v47 }
 0x773   :  { %3758 = vmatpush.msk.msrb.mxu0 %vm3073_vm4, %v6098_v28  ;;  %vm3028_vm4 = vcmp.eq.s32.totalorder %v4925_v52, %v6085_v47 }
 0x774   :  { %3743 = vmatpush.msk.msrb.mxu2 %vm3046_vm0, %v6105_v51  ;;  %3800 = vmatpush.msk.msra.mxu3 %vm3046_vm0, %v6105_v51  ;;  %vm3052_vm0 = vcmp.eq.s32.totalorder %v5030_v19, %v6085_v47 }
 0x775   :  { %3759 = vmatpush.msk.msrb.mxu0 %vm3070_vm1, %v6105_v51  ;;  %vm3025_vm1 = vcmp.eq.s32.totalorder %v4939_v48, %v6085_v47 }
 0x776   :  { %3744 = vmatpush.msk.msrb.mxu2 %vm3043_vm6, %v6114_v23  ;;  %3801 = vmatpush.msk.msra.mxu3 %vm3043_vm6, %v6114_v23  ;;  %vm3022_vm6 = vcmp.eq.s32.totalorder %v4953_v22, %v6085_v47 }
 0x777   :  { %3931 = vset.pattern.permute.xlu1 %v6688_v12  ;;  %3934 = vset.pattern.permute.xlu2 %v6682_v9  ;;  %v2401_v60 = vpop.f32.mrf.mxu1 }
 0x778   :  { %3942 = vset.pattern.permute.xlu0 %v6681_v53  ;;  %2411 = vperm.xlu1 %3931, %v6031_v16   ;;  %v2402_v46 = vadd.f32 %v2401_v60, %v2381_v32 }
 0x779   :  { %2842 = vperm.xlu2 %3934, %v6088_v7   ;;  %2676 = vperm.xlu0 %3942, %v6121_v43  }
 0x77a   :  { %3760 = vmatpush.msk.msrb.mxu0 %vm3067_vm7, %v6114_v23  ;;  %3745 = vmatpush.msk.msrb.mxu2 %vm3040_vm8, %v6130_v10  ;;  %vm3019_vm7 = vcmp.eq.s32.totalorder %v6678_v29, %v6085_v47  ;;  %v6221_v24 = vperm.slane %v2402_v46, 2  ;;  %v6229_v19 = vperm.slane %v2402_v46, 5  ;;  %v6231_v26 = vperm.slane %v2402_v46, 1 }
 0x77b   :  { %3802 = vmatpush.msk.msra.mxu3 %vm3040_vm8, %v6130_v10  ;;  %vm3016_vm8 = vcmp.eq.s32.totalorder %v6679_v13, %v6085_v47  ;;  %v6243_v37 = vperm.slane %v2402_v46, 4  ;;  %v6247_v11 = vperm.slane %v2402_v46, 3 }
 0x77c   :  { %3761 = vmatpush.msk.msrb.mxu0 %vm3064_vm10, %v6130_v10  ;;  %3746 = vmatpush.msk.msrb.mxu2 %vm3037_vm11, %v6098_v28  ;;  %vm3013_vm10 = vcmp.eq.s32.totalorder %v6683_v63, %v6085_v47  ;;  %v6691_v63 = vld [vmem:[#allocation10_spill] sm:$0xff] }
 0x77d   :  { %3803 = vmatpush.msk.msra.mxu3 %vm3037_vm11, %v6098_v28  ;;  %vm3010_vm11 = vcmp.eq.s32.totalorder %v6684_v38, %v6085_v47 }
 0x77e   :  { %3762 = vmatpush.msk.msrb.mxu0 %vm3061_vm12, %v6098_v28  ;;  %3747 = vmatpush.msk.msrb.mxu2 %vm3034_vm13, %v6105_v51  ;;  %vm3007_vm12 = vcmp.eq.s32.totalorder %v6685_v36, %v6085_v47 }
 0x77f   :  { %3804 = vmatpush.msk.msra.mxu3 %vm3034_vm13, %v6105_v51  ;;  %vm3004_vm13 = vcmp.eq.s32.totalorder %v6686_v17, %v6085_v47  ;;  %v6258_v17 = vperm.slane %v2402_v46, 0 }
 0x780   :  { %3933 = vset.pattern.permute.xlu1 %v6687_v42  ;;  %3763 = vmatpush.msk.msrb.mxu0 %vm3058_vm2, %v6105_v51 }
 0x781   :  { %3938 = vset.pattern.permute.xlu2 %v6680_v45  ;;  %3943 = vset.pattern.permute.xlu0 %v6688_v12 }
 0x782   :  { %2757 = vperm.xlu2 %3938, %v6088_v7   ;;  %2502 = vperm.xlu1 %3933, %v6088_v7  }
 0x783   :  { %2421 = vperm.xlu0 %3943, %v6121_v43   ;;  %3748 = vmatpush.msk.msrb.mxu2 %vm3031_vm5, %v6114_v23 }
 0x784   :  { %3805 = vmatpush.msk.msra.mxu3 %vm3031_vm5, %v6114_v23  ;;  %3764 = vmatpush.msk.msrb.mxu0 %vm3055_vm3, %v6114_v23 }
 0x785   :  { %3749 = vmatpush.msk.msrb.mxu2 %vm3028_vm4, %v6130_v10 }
 0x786   :  { %3806 = vmatpush.msk.msra.mxu3 %vm3028_vm4, %v6130_v10  ;;  %3765 = vmatpush.msk.msrb.mxu0 %vm3052_vm0, %v6130_v10 }
 0x787   :  { %3750 = vmatpush.msk.msrb.mxu2 %vm3025_vm1, %v6098_v28 }
 0x788   :  { %3807 = vmatpush.msk.msra.mxu3 %vm3025_vm1, %v6098_v28 }
 0x789   :  { %3751 = vmatpush.msk.msrb.mxu2 %vm3022_vm6, %v6105_v51 }
 0x78a   :  { %3808 = vmatpush.msk.msra.mxu3 %vm3022_vm6, %v6105_v51  ;;  %3939 = vset.pattern.permute.xlu2 %v6687_v42 }
 0x78b   :  { %3936 = vset.pattern.permute.xlu1 %v6681_v53  ;;  %3944 = vset.pattern.permute.xlu0 %v6680_v45 }
 0x78c   :  { %2672 = vperm.xlu1 %3936, %v6088_v7   ;;  %2761 = vperm.xlu0 %3944, %v6121_v43  }
 0x78d   :  { %2506 = vperm.xlu2 %3939, %v6121_v43   ;;  %3752 = vmatpush.msk.msrb.mxu2 %vm3019_vm7, %v6114_v23 }
 0x78e   :  { %3809 = vmatpush.msk.msra.mxu3 %vm3019_vm7, %v6114_v23 }
 0x78f   :  { %3753 = vmatpush.msk.msrb.mxu2 %vm3016_vm8, %v6130_v10 }
 0x790   :  { %3810 = vmatpush.msk.msra.mxu3 %vm3016_vm8, %v6130_v10 }
 0x791   :  { %3754 = vmatpush.msk.msrb.mxu2 %vm3013_vm10, %v6098_v28 }
 0x792   :  { %3811 = vmatpush.msk.msra.mxu3 %vm3013_vm10, %v6098_v28 }
 0x793   :  { %3755 = vmatpush.msk.msrb.mxu2 %vm3010_vm11, %v6105_v51 }
 0x794   :  { %3812 = vmatpush.msk.msra.mxu3 %vm3010_vm11, %v6105_v51  ;;  %3937 = vset.pattern.permute.xlu1 %v6688_v12 }
 0x795   :  { %3941 = vset.pattern.permute.xlu2 %v6689_v39  ;;  %3756 = vmatpush.msk.msrb.mxu2 %vm3007_vm12, %v6114_v23 }
 0x796   :  { %3813 = vmatpush.msk.msra.mxu3 %vm3007_vm12, %v6114_v23  ;;  %2416 = vperm.xlu1 %3937, %v6088_v7  }
 0x797   :  { %2591 = vperm.xlu2 %3941, %v6121_v43   ;;  %3757 = vmatpush.msk.msrb.mxu2 %vm3004_vm13, %v6130_v10 }
 0x798   :  { %3814 = vmatpush.msk.msra.mxu3 %vm3004_vm13, %v6130_v10  ;;  %3965 = vset.pattern.permute.xlu0 %v6682_v9 }
 0x79e   :  { %3940 = vset.pattern.permute.xlu1 %v6682_v9 }
 0x79f   :  { %2846 = vperm.xlu1 %3940, %v6121_v43  }
 0x7aa   :  { %v2580_v52 = vpop.permute.xlu2 %2579 }
 0x7ab   :  { %v2595_v48 = vadd.f32 %v6221_v24, %v2580_v52 }
 0x7ad   :  { %vm2599_vm2 = vcmp.gt.f32.partialorder %v2595_v48, 0.0  ;;  %v2603_v22 = vmul.f32 0.2, %v2595_v48 }
 0x7af   :  { %v2607_v57 = vsel %vm2599_vm2, %v2595_v48, %v2603_v22 }
 0x7b0   :  { %v6225_v62 = vadd.f32 %v2607_v57, %v6690_v55 }
 0x7b2   :  { %v2615_v61 = vsel %vm241_vm9, %v6225_v62, -inf }
 0x7b5   :  { %v2750_v8 = vpop.permute.xlu2 %2749 }
 0x7b6   :  { %2616 = vmax.xlane.f32.xlu0 %v2615_v61  ;;  %v2765_v31 = vadd.f32 %v6243_v37, %v2750_v8 }
 0x7b8   :  { %v2773_v45 = vmul.f32 0.2, %v2765_v31  ;;  %vm2769_vm1 = vcmp.gt.f32.partialorder %v2765_v31, 0.0 }
 0x7ba   :  { %v2777_v54 = vsel %vm2769_vm1, %v2765_v31, %v2773_v45 }
 0x7bb   :  { %v6268_v39 = vadd.f32 %v2777_v54, %v6690_v55 }
 0x7bd   :  { %v2785_v23 = vsel %vm241_vm9, %v6268_v39, -inf }
 0x7c0   :  { %v2499_v33 = vpop.permute.xlu2 %2498 }
 0x7c1   :  { %v2511_v18 = vadd.f32 %v6231_v26, %v2499_v33 }
 0x7c2   :  { %v2835_v34 = vpop.permute.xlu1 %2834 }
 0x7c3   :  { %v2850_v15 = vadd.f32 %v6229_v19, %v2835_v34  ;;  %v2495_v0 = vpop.permute.xlu0 %2494  ;;  %v2519_v7 = vmul.f32 0.2, %v2511_v18  ;;  %vm2515_vm7 = vcmp.gt.f32.partialorder %v2511_v18, 0.0 }
 0x7c4   :  { %v2510_v49 = vadd.f32 %v6231_v26, %v2495_v0 }
 0x7c5   :  { %vm2854_vm5 = vcmp.gt.f32.partialorder %v2850_v15, 0.0  ;;  %v2858_v14 = vmul.f32 0.2, %v2850_v15  ;;  %v2523_v10 = vsel %vm2515_vm7, %v2511_v18, %v2519_v7 }
 0x7c6   :  { %vm2514_vm3 = vcmp.gt.f32.partialorder %v2510_v49, 0.0  ;;  %v2518_v50 = vmul.f32 0.2, %v2510_v49  ;;  %v6281_v48 = vadd.f32 %v2523_v10, %v6691_v63 }
 0x7c7   :  { %v2862_v20 = vsel %vm2854_vm5, %v2850_v15, %v2858_v14 }
 0x7c8   :  { %v6236_v1 = vadd.f32 %v2862_v20, %v6690_v55  ;;  %v2522_v21 = vsel %vm2514_vm3, %v2510_v49, %v2518_v50  ;;  %v2533_v8 = vsel %vm241_vm9, %v6281_v48, -inf }
 0x7c9   :  { %v6239_v44 = vadd.f32 %v2522_v21, %v6690_v55  ;;  %v2669_v58 = vpop.permute.xlu2 %2668 }
 0x7ca   :  { %v2870_v27 = vsel %vm241_vm9, %v6236_v1, -inf  ;;  %v2681_v2 = vadd.f32 %v6247_v11, %v2669_v58 }
 0x7cb   :  { %2871 = vmax.xlane.f32.xlu1 %v2870_v27  ;;  %v2530_v4 = vsel %vm241_vm9, %v6239_v44, -inf }
 0x7cc   :  { %2531 = vmax.xlane.f32.xlu2 %v2530_v4  ;;  %v2689_v30 = vmul.f32 0.2, %v2681_v2  ;;  %vm2685_vm8 = vcmp.gt.f32.partialorder %v2681_v2, 0.0  ;;  %v6692_v4 = vld [vmem:[#allocation11_spill] sm:$0xff] }
 0x7ce   :  { %v2665_v41 = vpop.permute.xlu1 %2664  ;;  %v2839_v29 = vpop.permute.xlu0 %2838  ;;  %v2693_v32 = vsel %vm2685_vm8, %v2681_v2, %v2689_v30 }
 0x7cf   :  { %v2680_v56 = vadd.f32 %v6247_v11, %v2665_v41  ;;  %v2851_v5 = vadd.f32 %v6229_v19, %v2839_v29  ;;  %v6284_v57 = vadd.f32 %v2693_v32, %v6691_v63 }
 0x7d1   :  { %vm2684_vm4 = vcmp.gt.f32.partialorder %v2680_v56, 0.0  ;;  %v2688_v13 = vmul.f32 0.2, %v2680_v56  ;;  %vm2855_vm0 = vcmp.gt.f32.partialorder %v2851_v5, 0.0  ;;  %v2859_v16 = vmul.f32 0.2, %v2851_v5 }
 0x7d2   :  { %v2703_v34 = vsel %vm241_vm9, %v6284_v57, -inf }
 0x7d3   :  { %v2863_v53 = vsel %vm2855_vm0, %v2851_v5, %v2859_v16  ;;  %v2692_v9 = vsel %vm2684_vm4, %v2680_v56, %v2688_v13  ;;  %v2843_v3 = vpop.permute.xlu2 %2842 }
 0x7d4   :  { %v6253_v38 = vadd.f32 %v2863_v53, %v6691_v63  ;;  %v6256_v36 = vadd.f32 %v2692_v9, %v6690_v55  ;;  %v2852_v21 = vadd.f32 %v6229_v19, %v2843_v3 }
 0x7d6   :  { %v2873_v42 = vsel %vm241_vm9, %v6253_v38, -inf  ;;  %v2700_v12 = vsel %vm241_vm9, %v6256_v36, -inf  ;;  %v2860_v31 = vmul.f32 0.2, %v2852_v21  ;;  %vm2856_vm2 = vcmp.gt.f32.partialorder %v2852_v21, 0.0 }
 0x7d7   :  { %v2407_v6 = vpop.permute.xlu1 %2406  ;;  %2874 = vmax.xlane.f32.xlu0 %v2873_v42  ;;  %2701 = vmax.xlane.f32.xlu2 %v2700_v12 }
 0x7d8   :  { %v2425_v47 = vadd.f32 %v6258_v17, %v2407_v6  ;;  %v2754_v28 = vpop.permute.xlu0 %2753  ;;  %v2864_v53 = vsel %vm2856_vm2, %v2852_v21, %v2860_v31 }
 0x7d9   :  { %v2766_v25 = vadd.f32 %v6243_v37, %v2754_v28  ;;  %v6315_v12 = vadd.f32 %v2864_v53, %v6692_v4 }
 0x7da   :  { %vm2429_vm6 = vcmp.gt.f32.partialorder %v2425_v47, 0.0  ;;  %v2433_v40 = vmul.f32 0.2, %v2425_v47 }
 0x7db   :  { %v2774_v22 = vmul.f32 0.2, %v2766_v25  ;;  %vm2770_vm10 = vcmp.gt.f32.partialorder %v2766_v25, 0.0  ;;  %v2876_v2 = vsel %vm241_vm9, %v6315_v12, -inf }
 0x7dc   :  { %v2437_v51 = vsel %vm2429_vm6, %v2425_v47, %v2433_v40  ;;  %v2758_v35 = vpop.permute.xlu2 %2757 }
 0x7dd   :  { %v6271_v59 = vadd.f32 %v2437_v51, %v6690_v55  ;;  %v2767_v46 = vadd.f32 %v6243_v37, %v2758_v35  ;;  %v2778_v0 = vsel %vm2770_vm10, %v2766_v25, %v2774_v22 }
 0x7de   :  { %v6296_v50 = vadd.f32 %v2778_v0, %v6691_v63 }
 0x7df   :  { %2786 = vmax.xlane.f32.xlu2 %v2785_v23  ;;  %v2445_v43 = vsel %vm241_vm9, %v6271_v59, -inf  ;;  %v2775_v61 = vmul.f32 0.2, %v2767_v46  ;;  %vm2771_vm12 = vcmp.gt.f32.partialorder %v2767_v46, 0.0 }
 0x7e0   :  { %2446 = vmax.xlane.f32.xlu1 %v2445_v43  ;;  %v2788_v29 = vsel %vm241_vm9, %v6296_v50, -inf }
 0x7e1   :  { %v2584_v60 = vpop.permute.xlu1 %2583  ;;  %v2779_v20 = vsel %vm2771_vm12, %v2767_v46, %v2775_v61 }
 0x7e2   :  { %v2596_v52 = vadd.f32 %v6221_v24, %v2584_v60  ;;  %v6301_v41 = vadd.f32 %v2779_v20, %v6692_v4  ;;  %v2588_v13 = vpop.permute.xlu0 %2587 }
 0x7e3   :  { %v2597_v3 = vadd.f32 %v6221_v24, %v2588_v13 }
 0x7e4   :  { %vm2600_vm11 = vcmp.gt.f32.partialorder %v2596_v52, 0.0  ;;  %v2604_v55 = vmul.f32 0.2, %v2596_v52  ;;  %v2791_v16 = vsel %vm241_vm9, %v6301_v41, -inf }
 0x7e5   :  { %v2605_v18 = vmul.f32 0.2, %v2597_v3  ;;  %vm2601_vm3 = vcmp.gt.f32.partialorder %v2597_v3, 0.0 }
 0x7e6   :  { %v2608_v33 = vsel %vm2600_vm11, %v2596_v52, %v2604_v55 }
 0x7e7   :  { %2534 = vmax.xlane.f32.xlu2 %v2533_v8  ;;  %v6291_v15 = vadd.f32 %v2608_v33, %v6691_v63  ;;  %v2507_v54 = vpop.permute.xlu2 %2506  ;;  %v2609_v28 = vsel %vm2601_vm3, %v2597_v3, %v2605_v18  ;;  %v6693_v8 = vld [vmem:[#allocation12_spill] sm:$0xff] }
 0x7e8   :  { %2704 = vmax.xlane.f32.xlu1 %v2703_v34  ;;  %v2513_v30 = vadd.f32 %v6231_v26, %v2507_v54  ;;  %v6327_v25 = vadd.f32 %v2609_v28, %v6692_v4 }
 0x7e9   :  { %v2618_v49 = vsel %vm241_vm9, %v6291_v15, -inf }
 0x7ea   :  { %v2412_v14 = vpop.permute.xlu1 %2411  ;;  %2619 = vmax.xlane.f32.xlu0 %v2618_v49  ;;  %v2521_v35 = vmul.f32 0.2, %v2513_v30  ;;  %vm2517_vm0 = vcmp.gt.f32.partialorder %v2513_v30, 0.0  ;;  %v2621_v32 = vsel %vm241_vm9, %v6327_v25, -inf }
 0x7eb   :  { %v2426_v27 = vadd.f32 %v6258_v17, %v2412_v14  ;;  %v2677_v40 = vpop.permute.xlu0 %2676 }
 0x7ec   :  { %v2525_v52 = vsel %vm2517_vm0, %v2513_v30, %v2521_v35 }
 0x7ed   :  { %vm2430_vm13 = vcmp.gt.f32.partialorder %v2426_v27, 0.0  ;;  %v2434_v58 = vmul.f32 0.2, %v2426_v27  ;;  %v6338_v33 = vadd.f32 %v2525_v52, %v6693_v8 }
 0x7ef   :  { %2789 = vmax.xlane.f32.xlu2 %v2788_v29  ;;  %v2438_v56 = vsel %vm2430_vm13, %v2426_v27, %v2434_v58  ;;  %v2539_v14 = vsel %vm241_vm9, %v6338_v33, -inf }
 0x7f0   :  { %v6306_v5 = vadd.f32 %v2438_v56, %v6691_v63 }
 0x7f1   :  { %v2592_v22 = vpop.permute.xlu2 %2591 }
 0x7f2   :  { %2792 = vmax.xlane.f32.xlu0 %v2791_v16  ;;  %v2448_v45 = vsel %vm241_vm9, %v6306_v5, -inf  ;;  %v2598_v0 = vadd.f32 %v6221_v24, %v2592_v22 }
 0x7f3   :  { %2449 = vmax.xlane.f32.xlu1 %v2448_v45 }
 0x7f4   :  { %v2503_v9 = vpop.permute.xlu1 %2502  ;;  %v2606_v20 = vmul.f32 0.2, %v2598_v0  ;;  %vm2602_vm7 = vcmp.gt.f32.partialorder %v2598_v0, 0.0 }
 0x7f5   :  { %v2512_v42 = vadd.f32 %v6231_v26, %v2503_v9  ;;  %v2683_v26 = vadd.f32 %v6247_v11, %v2677_v40  ;;  %v2422_v46 = vpop.permute.xlu0 %2421 }
 0x7f6   :  { %v2428_v56 = vadd.f32 %v6258_v17, %v2422_v46  ;;  %v2610_v16 = vsel %vm2602_vm7, %v2598_v0, %v2606_v20 }
 0x7f7   :  { %vm2516_vm5 = vcmp.gt.f32.partialorder %v2512_v42, 0.0  ;;  %v2520_v63 = vmul.f32 0.2, %v2512_v42  ;;  %v2691_v34 = vmul.f32 0.2, %v2683_v26  ;;  %vm2687_vm1 = vcmp.gt.f32.partialorder %v2683_v26, 0.0 }
 0x7f8   :  { %v6358_v3 = vadd.f32 %v2610_v16, %v6693_v8  ;;  %vm2432_vm10 = vcmp.gt.f32.partialorder %v2428_v56, 0.0 }
 0x7f9   :  { %v2524_v6 = vsel %vm2516_vm5, %v2512_v42, %v2520_v63  ;;  %v2695_v27 = vsel %vm2687_vm1, %v2683_v26, %v2691_v34  ;;  %v2436_v42 = vmul.f32 0.2, %v2428_v56  ;;  %vm3474_vm1 = vcmask 1040384  }
 0x7fa   :  { %v6320_v47 = vadd.f32 %v2524_v6, %v6692_v4  ;;  %v6350_v31 = vadd.f32 %v2695_v27, %v6693_v8 }
 0x7fb   :  { %2877 = vmax.xlane.f32.xlu1 %v2876_v2  ;;  %v2440_v6 = vsel %vm2432_vm10, %v2428_v56, %v2436_v42 }
 0x7fc   :  { %v2536_v7 = vsel %vm241_vm9, %v6320_v47, -inf  ;;  %v6368_v2 = vadd.f32 %v2440_v6, %v6693_v8 }
 0x7fd   :  { %2537 = vmax.xlane.f32.xlu2 %v2536_v7 }
 0x7fe   :  { %v2673_v51 = vpop.permute.xlu1 %2672  ;;  %v2762_v29 = vpop.permute.xlu0 %2761  ;;  %v2454_v7 = vsel %vm241_vm9, %v6368_v2, -inf }
 0x7ff   :  { %v2682_v23 = vadd.f32 %v6247_v11, %v2673_v51  ;;  %v2768_v45 = vadd.f32 %v6243_v37, %v2762_v29 }
 0x801   :  { %vm2686_vm4 = vcmp.gt.f32.partialorder %v2682_v23, 0.0  ;;  %v2690_v43 = vmul.f32 0.2, %v2682_v23  ;;  %v2776_v63 = vmul.f32 0.2, %v2768_v45  ;;  %vm2772_vm11 = vcmp.gt.f32.partialorder %v2768_v45, 0.0 }
 0x803   :  { %v2694_v10 = vsel %vm2686_vm4, %v2682_v23, %v2690_v43  ;;  %v2780_v54 = vsel %vm2772_vm11, %v2768_v45, %v2776_v63 }
 0x804   :  { %v6332_v60 = vadd.f32 %v2694_v10, %v6692_v4  ;;  %v6371_v40 = vadd.f32 %v2780_v54, %v6693_v8 }
 0x805   :  { %2622 = vmax.xlane.f32.xlu2 %v2621_v32 }
 0x806   :  { %v2706_v55 = vsel %vm241_vm9, %v6332_v60, -inf  ;;  %v2794_v30 = vsel %vm241_vm9, %v6371_v40, -inf }
 0x807   :  { %2707 = vmax.xlane.f32.xlu1 %v2706_v55 }
 0x808   :  { %v2417_v61 = vpop.permute.xlu1 %2416 }
 0x809   :  { %v2427_v49 = vadd.f32 %v6258_v17, %v2417_v61 }
 0x80b   :  { %vm2431_vm6 = vcmp.gt.f32.partialorder %v2427_v49, 0.0  ;;  %v2435_v11 = vmul.f32 0.2, %v2427_v49 }
 0x80d   :  { %2540 = vmax.xlane.f32.xlu2 %v2539_v14  ;;  %v2439_v21 = vsel %vm2431_vm6, %v2427_v49, %v2435_v11 }
 0x80e   :  { %v6345_v58 = vadd.f32 %v2439_v21, %v6692_v4  ;;  %v2709_v4 = vsel %vm241_vm9, %v6350_v31, -inf }
 0x810   :  { %v2451_v24 = vsel %vm241_vm9, %v6345_v58, -inf }
 0x811   :  { %v2847_v13 = vpop.permute.xlu1 %2846  ;;  %2452 = vmax.xlane.f32.xlu1 %v2451_v24 }
 0x812   :  { %v2853_v53 = vadd.f32 %v6229_v19, %v2847_v13  ;;  %v2624_v19 = vsel %vm241_vm9, %v6358_v3, -inf }
 0x814   :  { %vm2857_vm8 = vcmp.gt.f32.partialorder %v2853_v53, 0.0  ;;  %v2861_v9 = vmul.f32 0.2, %v2853_v53 }
 0x815   :  { %2710 = vmax.xlane.f32.xlu2 %v2709_v4 }
 0x816   :  { %v2865_v17 = vsel %vm2857_vm8, %v2853_v53, %v2861_v9 }
 0x817   :  { %v6361_v18 = vadd.f32 %v2865_v17, %v6693_v8 }
 0x819   :  { %2625 = vmax.xlane.f32.xlu1 %v2624_v19  ;;  %v2879_v37 = vsel %vm241_vm9, %v6361_v18, -inf }
 0x81a   :  { %2880 = vmax.xlane.f32.xlu0 %v2879_v37 }
 0x821   :  { %2455 = vmax.xlane.f32.xlu1 %v2454_v7 }
 0x822   :  { %2795 = vmax.xlane.f32.xlu0 %v2794_v30 }
 0x829   :  { %v2617_v51 = vpop.xlane.xlu0 %2616 }
 0x82a   :  { %v2627_v32 = vsub.f32 %v6225_v62, %v2617_v51 }
 0x82c   :  { %v2631_v46 = vmul.f32 1.442695, %v2627_v32 }
 0x83e   :  { %v2872_v28 = vpop.xlane.xlu1 %2871 }
 0x83f   :  { %v2882_v23 = vsub.f32 %v6236_v1, %v2872_v28  ;;  %v2532_v35 = vpop.xlane.xlu2 %2531 }
 0x840   :  { %v2542_v43 = vsub.f32 %v6239_v44, %v2532_v35 }
 0x841   :  { %v2886_v10 = vmul.f32 1.442695, %v2882_v23 }
 0x842   :  { %v2546_v26 = vmul.f32 1.442695, %v2542_v43 }
 0x843   :  { %4182 = vpow2.f32 %v2886_v10 }
 0x844   :  { %4184 = vpow2.f32 %v2546_v26 }
 0x845   :  { %4186 = vpow2.f32 %v2631_v46 }
 0x849   :  { %v6380_v52 = vpop.eup %4182 }
 0x84a   :  { %v6382_v22 = vpop.eup %4184  ;;  %v2875_v55 = vpop.xlane.xlu0 %2874  ;;  %v2894_v1 = vsel %vm241_vm9, %v6380_v52, 0.0 }
 0x84b   :  { %v2702_v61 = vpop.xlane.xlu2 %2701  ;;  %v2883_v8 = vsub.f32 %v6253_v38, %v2875_v55  ;;  %2895 = vadd.xlane.f32.xlu2 %v2894_v1  ;;  %v2554_v62 = vsel %vm241_vm9, %v6382_v22, 0.0  ;;  %v6390_v49 = vpop.eup %4186 }
 0x84c   :  { %v2712_v44 = vsub.f32 %v6256_v36, %v2702_v61  ;;  %2555 = vadd.xlane.f32.xlu1 %v2554_v62  ;;  %v2639_v38 = vsel %vm241_vm9, %v6390_v49, 0.0 }
 0x84d   :  { %v2888_v0 = vmul.f32 1.442695, %v2883_v8 }
 0x84e   :  { %v2716_v34 = vmul.f32 1.442695, %v2712_v44 }
 0x850   :  { %4188 = vpow2.f32 %v2716_v34 }
 0x851   :  { %4190 = vpow2.f32 %v2888_v0 }
 0x853   :  { %v2787_v11 = vpop.xlane.xlu2 %2786  ;;  %v2447_v20 = vpop.xlane.xlu1 %2446 }
 0x854   :  { %v2797_v14 = vsub.f32 %v6268_v39, %v2787_v11  ;;  %v2457_v36 = vsub.f32 %v6271_v59, %v2447_v20  ;;  %2640 = vadd.xlane.f32.xlu1 %v2639_v38 }
 0x856   :  { %v2801_v21 = vmul.f32 1.442695, %v2797_v14  ;;  %v6396_v27 = vpop.eup %4188  ;;  %v2461_v29 = vmul.f32 1.442695, %v2457_v36 }
 0x857   :  { %v2724_v24 = vsel %vm241_vm9, %v6396_v27, 0.0  ;;  %v6400_v56 = vpop.eup %4190 }
 0x858   :  { %4192 = vpow2.f32 %v2801_v21  ;;  %2725 = vadd.xlane.f32.xlu2 %v2724_v24  ;;  %v2897_v59 = vsel %vm241_vm9, %v6400_v56, 0.0 }
 0x859   :  { %4194 = vpow2.f32 %v2461_v29 }
 0x85b   :  { %v2535_v39 = vpop.xlane.xlu2 %2534  ;;  %v2705_v16 = vpop.xlane.xlu1 %2704 }
 0x85c   :  { %v2543_v13 = vsub.f32 %v6281_v48, %v2535_v39  ;;  %2898 = vadd.xlane.f32.xlu1 %v2897_v59  ;;  %v2713_v42 = vsub.f32 %v6284_v57, %v2705_v16 }
 0x85d   :  { %v2620_v9 = vpop.xlane.xlu0 %2619 }
 0x85e   :  { %v6405_v45 = vpop.eup %4192  ;;  %v2548_v53 = vmul.f32 1.442695, %v2543_v13  ;;  %v2628_v63 = vsub.f32 %v6291_v15, %v2620_v9  ;;  %v2718_v37 = vmul.f32 1.442695, %v2713_v42 }
 0x85f   :  { %v6407_v4 = vpop.eup %4194  ;;  %v2809_v17 = vsel %vm241_vm9, %v6405_v45, 0.0 }
 0x860   :  { %4196 = vpow2.f32 %v2548_v53  ;;  %v2469_v48 = vsel %vm241_vm9, %v6407_v4, 0.0  ;;  %v2633_v19 = vmul.f32 1.442695, %v2628_v63  ;;  %2810 = vadd.xlane.f32.xlu2 %v2809_v17 }
 0x861   :  { %2470 = vadd.xlane.f32.xlu0 %v2469_v48 }
 0x862   :  { %4198 = vpow2.f32 %v2633_v19 }
 0x863   :  { %v2790_v6 = vpop.xlane.xlu2 %2789  ;;  %4200 = vpow2.f32 %v2718_v37 }
 0x864   :  { %v2798_v54 = vsub.f32 %v6296_v50, %v2790_v6 }
 0x866   :  { %v6416_v7 = vpop.eup %4196  ;;  %v2803_v57 = vmul.f32 1.442695, %v2798_v54  ;;  %v2450_v15 = vpop.xlane.xlu1 %2449 }
 0x867   :  { %v2557_v30 = vsel %vm241_vm9, %v6416_v7, 0.0  ;;  %v2458_v28 = vsub.f32 %v6306_v5, %v2450_v15 }
 0x868   :  { %v6421_v51 = vpop.eup %4198  ;;  %4202 = vpow2.f32 %v2803_v57  ;;  %2558 = vadd.xlane.f32.xlu2 %v2557_v30 }
 0x869   :  { %v2463_v23 = vmul.f32 1.442695, %v2458_v28  ;;  %v2642_v35 = vsel %vm241_vm9, %v6421_v51, 0.0  ;;  %v6425_v50 = vpop.eup %4200 }
 0x86a   :  { %2643 = vadd.xlane.f32.xlu0 %v2642_v35  ;;  %v2727_v5 = vsel %vm241_vm9, %v6425_v50, 0.0 }
 0x86b   :  { %4204 = vpow2.f32 %v2463_v23 }
 0x86e   :  { %v6427_v43 = vpop.eup %4202  ;;  %v2878_v10 = vpop.xlane.xlu1 %2877 }
 0x86f   :  { %v2884_v32 = vsub.f32 %v6315_v12, %v2878_v10  ;;  %v2812_v1 = vsel %vm241_vm9, %v6427_v43, 0.0 }
 0x870   :  { %v2538_v26 = vpop.xlane.xlu2 %2537  ;;  %2728 = vadd.xlane.f32.xlu2 %v2727_v5 }
 0x871   :  { %v6432_v46 = vpop.eup %4204  ;;  %v2890_v55 = vmul.f32 1.442695, %v2884_v32  ;;  %v2544_v61 = vsub.f32 %v6320_v47, %v2538_v26 }
 0x872   :  { %2813 = vadd.xlane.f32.xlu0 %v2812_v1  ;;  %v2472_v8 = vsel %vm241_vm9, %v6432_v46, 0.0 }
 0x873   :  { %4206 = vpow2.f32 %v2890_v55  ;;  %v2550_v44 = vmul.f32 1.442695, %v2544_v61  ;;  %2473 = vadd.xlane.f32.xlu1 %v2472_v8 }
 0x875   :  { %4208 = vpow2.f32 %v2550_v44 }
 0x878   :  { %v2623_v12 = vpop.xlane.xlu2 %2622 }
 0x879   :  { %v6439_v62 = vpop.eup %4206  ;;  %v2629_v34 = vsub.f32 %v6327_v25, %v2623_v12 }
 0x87a   :  { %v2708_v0 = vpop.xlane.xlu1 %2707  ;;  %v2900_v47 = vsel %vm241_vm9, %v6439_v62, 0.0 }
 0x87b   :  { %v6444_v11 = vpop.eup %4208  ;;  %v2635_v14 = vmul.f32 1.442695, %v2629_v34  ;;  %v2714_v20 = vsub.f32 %v6332_v60, %v2708_v0  ;;  %2901 = vadd.xlane.f32.xlu1 %v2900_v47  ;;  %v6456_v60 = vpop.xlane.xlu0 %2792 }
 0x87c   :  { %v2560_v38 = vsel %vm241_vm9, %v6444_v11, 0.0 }
 0x87d   :  { %4210 = vpow2.f32 %v2635_v14  ;;  %v2720_v36 = vmul.f32 1.442695, %v2714_v20  ;;  %2561 = vadd.xlane.f32.xlu2 %v2560_v38 }
 0x87f   :  { %4212 = vpow2.f32 %v2720_v36 }
 0x880   :  { %v2541_v21 = vpop.xlane.xlu2 %2540 }
 0x881   :  { %v2545_v25 = vsub.f32 %v6338_v33, %v2541_v21 }
 0x883   :  { %v6450_v29 = vpop.eup %4210  ;;  %v2552_v24 = vmul.f32 1.442695, %v2545_v25  ;;  %v2799_v25 = vsub.f32 %v6301_v41, %v6456_v60 }
 0x884   :  { %v2453_v39 = vpop.xlane.xlu1 %2452  ;;  %v2645_v13 = vsel %vm241_vm9, %v6450_v29, 0.0 }
 0x885   :  { %v6454_v16 = vpop.eup %4212  ;;  %4214 = vpow2.f32 %v2552_v24  ;;  %v2459_v59 = vsub.f32 %v6345_v58, %v2453_v39  ;;  %2646 = vadd.xlane.f32.xlu0 %v2645_v13 }
 0x886   :  { %v2730_v53 = vsel %vm241_vm9, %v6454_v16, 0.0 }
 0x887   :  { %v2465_v9 = vmul.f32 1.442695, %v2459_v59  ;;  %2731 = vadd.xlane.f32.xlu2 %v2730_v53 }
 0x888   :  { %v2711_v33 = vpop.xlane.xlu2 %2710 }
 0x889   :  { %4216 = vpow2.f32 %v2465_v9  ;;  %v2715_v42 = vsub.f32 %v6350_v31, %v2711_v33 }
 0x88b   :  { %v6462_v63 = vpop.eup %4214  ;;  %v2722_v17 = vmul.f32 1.442695, %v2715_v42  ;;  %v2805_v42 = vmul.f32 1.442695, %v2799_v25 }
 0x88c   :  { %v2626_v48 = vpop.xlane.xlu1 %2625  ;;  %v2563_v19 = vsel %vm241_vm9, %v6462_v63, 0.0 }
 0x88d   :  { %4218 = vpow2.f32 %v2722_v17  ;;  %v2630_v58 = vsub.f32 %v6358_v3, %v2626_v48  ;;  %v2881_v37 = vpop.xlane.xlu0 %2880  ;;  %2564 = vadd.xlane.f32.xlu1 %v2563_v19 }
 0x88e   :  { %v2885_v6 = vsub.f32 %v6361_v18, %v2881_v37 }
 0x88f   :  { %v6468_v54 = vpop.eup %4216  ;;  %v2637_v57 = vmul.f32 1.442695, %v2630_v58 }
 0x890   :  { %v2892_v15 = vmul.f32 1.442695, %v2885_v6  ;;  %v2475_v31 = vsel %vm241_vm9, %v6468_v54, 0.0 }
 0x891   :  { %4220 = vpow2.f32 %v2637_v57  ;;  %2476 = vadd.xlane.f32.xlu2 %v2475_v31 }
 0x892   :  { %4222 = vpow2.f32 %v2892_v15 }
 0x893   :  { %v6472_v30 = vpop.eup %4218 }
 0x894   :  { %v2733_v28 = vsel %vm241_vm9, %v6472_v30, 0.0  ;;  %v6484_v5 = vpop.xlane.xlu1 %2455 }
 0x895   :  { %2734 = vadd.xlane.f32.xlu1 %v2733_v28  ;;  %v2796_v61 = vpop.xlane.xlu0 %2795 }
 0x897   :  { %v6476_v3 = vpop.eup %4220 }
 0x898   :  { %v6478_v23 = vpop.eup %4222  ;;  %v2648_v18 = vsel %vm241_vm9, %v6476_v3, 0.0 }
 0x899   :  { %2649 = vadd.xlane.f32.xlu2 %v2648_v18  ;;  %v2903_v35 = vsel %vm241_vm9, %v6478_v23, 0.0 }
 0x89a   :  { %2904 = vadd.xlane.f32.xlu0 %v2903_v35 }
 0x8be   :  { %v2896_v10 = vpop.xlane.xlu2 %2895 }
 0x8bf   :  { %v2906_v32 = vmax.f32 %v2896_v10, 1e-20  ;;  %v2556_v8 = vpop.xlane.xlu1 %2555 }
 0x8c0   :  { %v2566_v0 = vmax.f32 %v2556_v8, 1e-20 }
 0x8c1   :  { %4224 = vrcp.f32 %v2906_v32 }
 0x8c2   :  { %4226 = vrcp.f32 %v2566_v0 }
 0x8c7   :  { %v4225_v26 = vpop.eup %4224  ;;  %v2641_v34 = vpop.xlane.xlu1 %2640 }
 0x8c8   :  { %v2914_v55 = vmul.f32 %v4225_v26, %v6380_v52  ;;  %v2651_v47 = vmax.f32 %v2641_v34, 1e-20  ;;  %v4227_v21 = vpop.eup %4226 }
 0x8c9   :  { %v2574_v53 = vmul.f32 %v4227_v21, %v6382_v22 }
 0x8ca   :  { %2970 = vrot.lane.b32.xlu1 %v2914_v55, %s4367_s2  ;;  %4228 = vrcp.f32 %v2651_v47 }
 0x8cb   :  { %v2726_v1 = vpop.xlane.xlu2 %2725 }
 0x8cc   :  { %v2736_v52 = vmax.f32 %v2726_v1, 1e-20 }
 0x8cf   :  { %v2899_v17 = vpop.xlane.xlu1 %2898 }
 0x8d0   :  { %v4229_v24 = vpop.eup %4228  ;;  %v2907_v37 = vmax.f32 %v2899_v17, 1e-20 }
 0x8d1   :  { %v2659_v48 = vmul.f32 %v4229_v24, %v6390_v49 }
 0x8d3   :  { %v6488_v44 = vpop.xlane.xlu2 %2810 }
 0x8d4   :  { %v6490_v12 = vpop.xlane.xlu0 %2470 }
 0x8db   :  { %v2559_v14 = vpop.xlane.xlu2 %2558 }
 0x8dc   :  { %v2567_v20 = vmax.f32 %v2559_v14, 1e-20 }
 0x8dd   :  { %v2644_v38 = vpop.xlane.xlu0 %2643 }
 0x8de   :  { %4230 = vrcp.f32 %v2567_v20  ;;  %v2652_v36 = vmax.f32 %v2644_v38, 1e-20 }
 0x8e0   :  { %4232 = vrcp.f32 %v2652_v36 }
 0x8e1   :  { %4234 = vrcp.f32 %v2736_v52  ;;  %v2460_v52 = vsub.f32 %v6368_v2, %v6484_v5 }
 0x8e3   :  { %v2729_v39 = vpop.xlane.xlu2 %2728 }
 0x8e4   :  { %v4231_v13 = vpop.eup %4230  ;;  %v2737_v59 = vmax.f32 %v2729_v39, 1e-20 }
 0x8e5   :  { %v2575_v9 = vmul.f32 %v4231_v13, %v6416_v7 }
 0x8e6   :  { %v4233_v33 = vpop.eup %4232  ;;  %4236 = vrcp.f32 %v2737_v59  ;;  %v6501_v6 = vpop.xlane.xlu1 %2473 }
 0x8e7   :  { %v2660_v19 = vmul.f32 %v4233_v33, %v6421_v51  ;;  %v3945_v58 = vpack.i.bf16 %v2575_v9, %v2574_v53  ;;  %4238 = vpow2.f32 %v2805_v42  ;;  %v4235_v60 = vpop.eup %4234  ;;  %v2821_v42 = vmax.f32 %v6488_v44, 1e-20 }
 0x8e8   :  { %v2744_v57 = vmul.f32 %v4235_v60, %v6396_v27  ;;  %4240 = vrcp.f32 %v2907_v37  ;;  %v2800_v27 = vsub.f32 %v6371_v40, %v2796_v61  ;;  %v2814_v61 = vpop.xlane.xlu0 %2813 }
 0x8e9   :  { %3946 = vrot.lane.b32.xlu2 %v3945_v58, %s4367_s2  ;;  %v3950_v41 = vpack.i.bf16 %v2660_v19, %v2659_v48 }
 0x8ea   :  { %v2807_v26 = vmul.f32 1.442695, %v2800_v27 }
 0x8eb   :  { %3951 = vrot.lane.b32.xlu0 %v3950_v41, %s4368_s19 }
 0x8ec   :  { %v4237_v22 = vpop.eup %4236 }
 0x8ed   :  { %v2745_v7 = vmul.f32 %v4237_v22, %v6425_v50  ;;  %v6504_v15 = vpop.eup %4238 }
 0x8ee   :  { %v2815_v51 = vsel %vm241_vm9, %v6504_v15, 0.0  ;;  %v4241_v31 = vpop.eup %4240  ;;  %v2902_v28 = vpop.xlane.xlu1 %2901 }
 0x8ef   :  { %v3955_v49 = vpack.i.bf16 %v2745_v7, %v2744_v57  ;;  %v2915_v18 = vmul.f32 %v4241_v31, %v6400_v56  ;;  %v2908_v24 = vmax.f32 %v2902_v28, 1e-20  ;;  %v2481_v7 = vmax.f32 %v6490_v12, 1e-20 }
 0x8f0   :  { %v2562_v35 = vpop.xlane.xlu2 %2561  ;;  %v2822_v57 = vmax.f32 %v2814_v61, 1e-20 }
 0x8f1   :  { %v2568_v50 = vmax.f32 %v2562_v35, 1e-20 }
 0x8f3   :  { %3956 = vrot.lane.b32.xlu0 %v3955_v49, %s4369_s20  ;;  %4242 = vrcp.f32 %v2568_v50  ;;  %v2482_v49 = vmax.f32 %v6501_v6, 1e-20 }
 0x8f4   :  { %2816 = vadd.xlane.f32.xlu1 %v2815_v51 }
 0x8f8   :  { %v2647_v21 = vpop.xlane.xlu0 %2646 }
 0x8f9   :  { %v4243_v1 = vpop.eup %4242  ;;  %v2653_v33 = vmax.f32 %v2647_v21, 1e-20 }
 0x8fa   :  { %v2732_v55 = vpop.xlane.xlu2 %2731  ;;  %v2576_v0 = vmul.f32 %v4243_v1, %v6444_v11 }
 0x8fb   :  { %2972 = vrot.lane.b32.xlu0 %v2915_v18, %s4367_s2  ;;  %v2738_v8 = vmax.f32 %v2732_v55, 1e-20 }
 0x900   :  { %v2565_v10 = vpop.xlane.xlu1 %2564 }
 0x901   :  { %v2569_v32 = vmax.f32 %v2565_v10, 1e-20 }
 0x903   :  { %4244 = vrcp.f32 %v2569_v32 }
 0x904   :  { %4246 = vpow2.f32 %v2807_v26  ;;  %v6529_v5 = vpop.xlane.xlu2 %2476 }
 0x905   :  { %4248 = vrcp.f32 %v2738_v8 }
 0x908   :  { %v2735_v47 = vpop.xlane.xlu1 %2734 }
 0x909   :  { %v4245_v34 = vpop.eup %4244  ;;  %v2739_v40 = vmax.f32 %v2735_v47, 1e-20 }
 0x90a   :  { %v2577_v56 = vmul.f32 %v4245_v34, %v6462_v63  ;;  %v6514_v20 = vpop.eup %4246  ;;  %v2467_v63 = vmul.f32 1.442695, %v2460_v52 }
 0x90b   :  { %v4249_v38 = vpop.eup %4248  ;;  %v2818_v36 = vsel %vm241_vm9, %v6514_v20, 0.0  ;;  %4250 = vrcp.f32 %v2739_v40 }
 0x90c   :  { %v3960_v14 = vpack.i.bf16 %v2577_v56, %v2576_v0  ;;  %v2746_v11 = vmul.f32 %v4249_v38, %v6454_v16  ;;  %4252 = vpow2.f32 %v2467_v63  ;;  %v2650_v17 = vpop.xlane.xlu2 %2649 }
 0x90d   :  { %4254 = vrcp.f32 %v2908_v24  ;;  %v2905_v13 = vpop.xlane.xlu0 %2904  ;;  %v2654_v19 = vmax.f32 %v2650_v17, 1e-20  ;;  %v2483_v24 = vmax.f32 %v6529_v5, 1e-20 }
 0x90e   :  { %3961 = vrot.lane.b32.xlu1 %v3960_v14, %s4367_s2  ;;  %v2909_v53 = vmax.f32 %v2905_v13, 1e-20 }
 0x910   :  { %4256 = vrcp.f32 %v2909_v53 }
 0x911   :  { %v4251_v25 = vpop.eup %4250  ;;  %4258 = vrcp.f32 %v2653_v33 }
 0x912   :  { %2819 = vadd.xlane.f32.xlu2 %v2818_v36  ;;  %v2747_v39 = vmul.f32 %v4251_v25, %v6472_v30  ;;  %v6525_v59 = vpop.eup %4252  ;;  %4260 = vrcp.f32 %v2821_v42 }
 0x913   :  { %v2478_v2 = vsel %vm241_vm9, %v6525_v59, 0.0  ;;  %v4255_v16 = vpop.eup %4254  ;;  %4262 = vrcp.f32 %v2654_v19 }
 0x914   :  { %v2916_v9 = vmul.f32 %v4255_v16, %v6439_v62  ;;  %4264 = vrcp.f32 %v2481_v7 }
 0x915   :  { %4266 = vrcp.f32 %v2822_v57 }
 0x916   :  { %2958 = vrot.lane.b32.xlu1 %v2746_v11, %s4369_s20  ;;  %v4257_v30 = vpop.eup %4256  ;;  %4268 = vrcp.f32 %v2482_v49 }
 0x917   :  { %v2917_v48 = vmul.f32 %v4257_v30, %v6478_v23  ;;  %v4259_v58 = vpop.eup %4258 }
 0x918   :  { %v2661_v41 = vmul.f32 %v4259_v58, %v6450_v29  ;;  %v4261_v60 = vpop.eup %4260 }
 0x919   :  { %v2829_v62 = vmul.f32 %v4261_v60, %v6405_v45  ;;  %v4263_v22 = vpop.eup %4262 }
 0x91a   :  { %v2662_v23 = vmul.f32 %v4263_v22, %v6476_v3  ;;  %v4265_v51 = vpop.eup %4264 }
 0x91b   :  { %v2489_v18 = vmul.f32 %v4265_v51, %v6407_v4  ;;  %v4267_v12 = vpop.eup %4266 }
 0x91c   :  { %v4269_v32 = vpop.eup %4268  ;;  %v2830_v1 = vmul.f32 %v4267_v12, %v6427_v43 }
 0x91d   :  { %v2490_v55 = vmul.f32 %v4269_v32, %v6432_v46 }
 0x91e   :  { %2960 = vrot.lane.b32.xlu1 %v2747_v39, %s4369_s20 }
 0x925   :  { %2479 = vadd.xlane.f32.xlu0 %v2478_v2 }
 0x92a   :  { %2974 = vrot.lane.b32.xlu2 %v2916_v9, %s4367_s2 }
 0x932   :  { %2976 = vrot.lane.b32.xlu2 %v2917_v48, %s4367_s2 }
 0x939   :  { %2942 = vrot.lane.b32.xlu0 %v2661_v41, %s4368_s19 }
 0x93c   :  { %v2971_v37 = vpop.permute.xlu1 %2970 }
 0x93d   :  { %v2994_v44 = vsel %vm241_vm9, %v2829_v62, %v2971_v37 }
 0x93e   :  { %3710 = vmatmul.msk.f32.vlgmr.msra.gmra.mxu0 %vm783_vm14, %v2994_v44  ;;  %3738 = vmatmul.msk.f32.vlgmr.msrb.gmra.mxu1 %vm783_vm14, %v2994_v44 }
 0x941   :  { %2944 = vrot.lane.b32.xlu0 %v2662_v23, %s4368_s19 }
 0x943   :  { %v3947_v45 = vpop.permute.xlu2 %3946 }
 0x944   :  { %v3948_v31 = vunpack.i.l.bf16 %v3947_v45  ;;  %v3949_v6 = vunpack.i.h.bf16 %v3947_v45 }
 0x946   :  { %v2982_v3 = vsel %vm241_vm9, %v2489_v18, %v3948_v31  ;;  %v2983_v0 = vsel %vm241_vm9, %v2490_v55, %v3949_v6 }
 0x95d   :  { %v3952_v29 = vpop.permute.xlu0 %3951 }
 0x95e   :  { %v3953_v28 = vunpack.i.l.bf16 %v3952_v29  ;;  %v3954_v26 = vunpack.i.h.bf16 %v3952_v29 }
 0x960   :  { %v2986_v27 = vsel %vm783_vm14, %v2982_v3, %v3953_v28  ;;  %v2987_v56 = vsel %vm783_vm14, %v2983_v0, %v3954_v26 }
 0x965   :  { %v3957_v35 = vpop.permute.xlu0 %3956 }
 0x966   :  { %v3958_v50 = vunpack.i.l.bf16 %v3957_v35  ;;  %v3959_v4 = vunpack.i.h.bf16 %v3957_v35 }
 0x967   :  { %v2817_v14 = vpop.xlane.xlu1 %2816 }
 0x968   :  { %v6550_v10 = vsel %vm788_vm15, %v2986_v27, %v3958_v50  ;;  %v2991_v47 = vsel %vm788_vm15, %v2987_v56, %v3959_v4  ;;  %v2823_v46 = vmax.f32 %v2817_v14, 1e-20 }
 0x969   :  { %3174 = vmatmul.f32.vlgmr.msrb.gmra.mxu3 %v6550_v10  ;;  %3232 = vmatmul.f32.vlgmr.msra.gmra.mxu2 %v6550_v10 }
 0x96a   :  { %4270 = vrcp.f32 %v2823_v46 }
 0x96d   :  { %v2973_v8 = vpop.permute.xlu0 %2972 }
 0x96e   :  { %v2995_v34 = vsel %vm241_vm9, %v2830_v1, %v2973_v8 }
 0x96f   :  { %3711 = vmatmul.msk.f32.gmra.mxu0 %vm783_vm14, %v2995_v34  ;;  %3739 = vmatmul.msk.f32.gmra.mxu1 %vm783_vm14, %v2995_v34 }
 0x970   :  { %v4271_v61 = vpop.eup %4270 }
 0x971   :  { %3177 = vmatmul.f32.gmra.mxu3 %v2991_v47  ;;  %3235 = vmatmul.f32.gmra.mxu2 %v2991_v47  ;;  %v2831_v38 = vmul.f32 %v4271_v61, %v6504_v15 }
 0x980   :  { %v3962_v39 = vpop.permute.xlu1 %3961 }
 0x981   :  { %v3963_v2 = vunpack.i.l.bf16 %v3962_v39  ;;  %v3964_v48 = vunpack.i.h.bf16 %v3962_v39 }
 0x985   :  { %v2820_v40 = vpop.xlane.xlu2 %2819 }
 0x986   :  { %v2824_v43 = vmax.f32 %v2820_v40, 1e-20 }
 0x988   :  { %4272 = vrcp.f32 %v2824_v43  ;;  %v2959_v16 = vpop.permute.xlu1 %2958 }
 0x989   :  { %4274 = vrcp.f32 %v2483_v24 }
 0x98d   :  { %v2975_v36 = vpop.permute.xlu2 %2974 }
 0x98e   :  { %v2996_v52 = vsel %vm241_vm9, %v2831_v38, %v2975_v36  ;;  %v4273_v11 = vpop.eup %4272 }
 0x98f   :  { %3712 = vmatmul.msk.f32.gmra.mxu0 %vm783_vm14, %v2996_v52  ;;  %3740 = vmatmul.msk.f32.gmra.mxu1 %vm783_vm14, %v2996_v52  ;;  %v2832_v63 = vmul.f32 %v4273_v11, %v6514_v20  ;;  %v4275_v53 = vpop.eup %4274 }
 0x990   :  { %v2491_v20 = vmul.f32 %v4275_v53, %v6468_v54  ;;  %v2961_v54 = vpop.permute.xlu1 %2960 }
 0x992   :  { %v2984_v33 = vsel %vm241_vm9, %v2491_v20, %v3963_v2 }
 0x995   :  { %v2977_v21 = vpop.permute.xlu2 %2976 }
 0x996   :  { %v2997_v25 = vsel %vm241_vm9, %v2832_v63, %v2977_v21 }
 0x997   :  { %3713 = vmatmul.msk.f32.gmra.mxu0 %vm783_vm14, %v2997_v25  ;;  %3741 = vmatmul.msk.f32.gmra.mxu1 %vm783_vm14, %v2997_v25 }
 0x998   :  { %v2480_v15 = vpop.xlane.xlu0 %2479 }
 0x999   :  { %v2484_v13 = vmax.f32 %v2480_v15, 1e-20 }
 0x99b   :  { %4276 = vrcp.f32 %v2484_v13 }
 0x99f   :  { %3766 = vmatmul.msk.f32.vlgmr.msrb.gmra.mxu0 %vm783_vm14, %v2994_v44 }
 0x9a1   :  { %v4277_v30 = vpop.eup %4276 }
 0x9a2   :  { %v2492_v17 = vmul.f32 %v4277_v30, %v6525_v59 }
 0x9a4   :  { %v2985_v58 = vsel %vm241_vm9, %v2492_v17, %v3964_v48 }
 0x9a7   :  { %3767 = vmatmul.msk.f32.gmra.mxu0 %vm783_vm14, %v2995_v34 }
 0x9ab   :  { %v2943_v9 = vpop.permute.xlu0 %2942 }
 0x9ac   :  { %v2988_v5 = vsel %vm783_vm14, %v2984_v33, %v2943_v9 }
 0x9ad   :  { %v2992_v42 = vsel %vm788_vm15, %v2988_v5, %v2959_v16 }
 0x9ae   :  { %3180 = vmatmul.f32.gmra.mxu3 %v2992_v42  ;;  %3238 = vmatmul.f32.gmra.mxu2 %v2992_v42 }
 0x9af   :  { %3768 = vmatmul.msk.f32.gmra.mxu0 %vm783_vm14, %v2996_v52 }
 0x9b3   :  { %v2945_v19 = vpop.permute.xlu0 %2944 }
 0x9b4   :  { %v2989_v41 = vsel %vm783_vm14, %v2985_v58, %v2945_v19 }
 0x9b5   :  { %v2993_v60 = vsel %vm788_vm15, %v2989_v41, %v2961_v54 }
 0x9b6   :  { %3183 = vmatmul.f32.gmra.mxu3 %v2993_v60  ;;  %3241 = vmatmul.f32.gmra.mxu2 %v2993_v60 }
 0x9b7   :  { %3769 = vmatmul.msk.f32.gmra.mxu0 %vm783_vm14, %v2997_v25 }
 0x9bb   :  { %v3204_v59 = vpop.f32.mrf.mxu0  ;;  %v3262_v44 = vpop.f32.mrf.mxu1 }
 0x9be   :  { %3290 = vmatmul.f32.vlgmr.msrb.gmra.mxu2 %v6550_v10  ;;  %3293 = vmatmul.f32.vlgmr.msra.gmra.mxu3 %v2991_v47 }
 0x9c6   :  { %3296 = vmatmul.f32.gmra.mxu3 %v2992_v42 }
 0x9ce   :  { %3299 = vmatmul.f32.gmra.mxu3 %v2993_v60 }
 0x9ec   :  { %v3175_v62 = vpop.f32.mrf.mxu3  ;;  %v3233_v22 = vpop.f32.mrf.mxu2 }
 0x9ed   :  { %v3207_v37 = vpop.f32.mrf.mxu0  ;;  %v3265_v57 = vpop.f32.mrf.mxu1  ;;  %v3205_v51 = vadd.f32 %v3204_v59, %v3175_v62  ;;  %v3263_v31 = vadd.f32 %v3262_v44, %v3233_v22 }
 0x9ef   :  { %v3344_v35 = vmin.f32 %v3205_v51, 0.0  ;;  %v3345_v3 = vmin.f32 %v3263_v31, 0.0  ;;  %vm3332_vm9 = vcmp.gt.f32.partialorder %v3205_v51, 0.0  ;;  %vm3333_vm12 = vcmp.gt.f32.partialorder %v3263_v31, 0.0 }
 0x9f1   :  { %v3356_v10 = vmul.f32 1.442695, %v3344_v35  ;;  %v3358_v32 = vmul.f32 1.442695, %v3345_v3 }
 0x9f4   :  { %v3178_v23 = vpop.f32.mrf.mxu3  ;;  %v3236_v29 = vpop.f32.mrf.mxu2 }
 0x9f5   :  { %v3208_v49 = vadd.f32 %v3207_v37, %v3178_v23  ;;  %v3266_v45 = vadd.f32 %v3265_v57, %v3236_v29 }
 0x9f7   :  { %v3347_v28 = vmin.f32 %v3208_v49, 0.0  ;;  %v3348_v18 = vmin.f32 %v3266_v45, 0.0  ;;  %vm3335_vm14 = vcmp.gt.f32.partialorder %v3208_v49, 0.0  ;;  %vm3336_vm15 = vcmp.gt.f32.partialorder %v3266_v45, 0.0 }
 0x9f9   :  { %v3362_v27 = vmul.f32 1.442695, %v3347_v28  ;;  %v3364_v12 = vmul.f32 1.442695, %v3348_v18 }
 0x9fb   :  { %4278 = vpow2.f32 %v3362_v27 }
 0x9fc   :  { %4280 = vpow2.f32 %v3364_v12 }
 0x9fd   :  { %4282 = vpow2.f32 %v3356_v10 }
 0x9fe   :  { %4284 = vpow2.f32 %v3358_v32 }
 0xa01   :  { %v4279_v34 = vpop.eup %4278 }
 0xa02   :  { %v4281_v0 = vpop.eup %4280  ;;  %v3773_v40 = vadd.f32 -1.0, %v4279_v34 }
 0xa03   :  { %v4283_v56 = vpop.eup %4282  ;;  %v3774_v43 = vadd.f32 -1.0, %v4281_v0 }
 0xa04   :  { %v4285_v14 = vpop.eup %4284  ;;  %v3770_v38 = vadd.f32 -1.0, %v4283_v56  ;;  %v3395_v15 = vsel %vm3335_vm14, %v3208_v49, %v3773_v40 }
 0xa05   :  { %v3771_v11 = vadd.f32 -1.0, %v4285_v14  ;;  %v3396_v39 = vsel %vm3336_vm15, %v3266_v45, %v3774_v43 }
 0xa06   :  { %v3392_v2 = vsel %vm3332_vm9, %v3205_v51, %v3770_v38  ;;  %vm3514_vm9 = vcmask 0  }
 0xa07   :  { %v3393_v16 = vsel %vm3333_vm12, %v3263_v31, %v3771_v11  ;;  %v3404_v30 = vadd.f32 %v3395_v15, %v3392_v2 }
 0xa08   :  { %v3411_v5 = vadd.f32 %v3396_v39, %v3393_v16 }
 0xa09   :  { %v3405_v58 = vrot.slane %v3404_v30, 4 }
 0xa0a   :  { %v3412_v54 = vrot.slane %v3411_v5, 4 }
 0xa0c   :  { %v3210_v7 = vpop.f32.mrf.mxu0  ;;  %v3268_v6 = vpop.f32.mrf.mxu1  ;;  %v3413_v29 = vadd.f32 %v3412_v54, %v3411_v5 }
 0xa0e   :  { %v3414_v3 = vrot.slane %v3413_v29, 2 }
 0xa10   :  { %v3415_v0 = vadd.f32 %v3414_v3, %v3413_v29 }
 0xa12   :  { %v3416_v11 = vrot.slane %v3415_v0, 1 }
 0xa14   :  { %v3213_v50 = vpop.f32.mrf.mxu0  ;;  %v3271_v61 = vpop.f32.mrf.mxu1 }
 0xa1c   :  { %v3320_v1 = vpop.f32.mrf.mxu0 }
 0xa24   :  { %v3323_v20 = vpop.f32.mrf.mxu0 }
 0xa2c   :  { %v3326_v57 = vpop.f32.mrf.mxu0 }
 0xa31   :  { %v3181_v26 = vpop.f32.mrf.mxu3  ;;  %v3239_v55 = vpop.f32.mrf.mxu2 }
 0xa32   :  { %v6584_v4 = vadd.f32 %v3210_v7, %v3181_v26  ;;  %v6586_v8 = vadd.f32 %v3268_v6, %v3239_v55  ;;  %v3406_v7 = vadd.f32 %v3405_v58, %v3404_v30 }
 0xa34   :  { %v3350_v47 = vmin.f32 %v6584_v4, 0.0  ;;  %v3351_v46 = vmin.f32 %v6586_v8, 0.0  ;;  %v3407_v35 = vrot.slane %v3406_v7, 2  ;;  %vm3338_vm5 = vcmp.gt.f32.partialorder %v6584_v4, 0.0 }
 0xa35   :  { %vm3339_vm3 = vcmp.gt.f32.partialorder %v6586_v8, 0.0 }
 0xa36   :  { %v3368_v63 = vmul.f32 1.442695, %v3350_v47  ;;  %v3370_v24 = vmul.f32 1.442695, %v3351_v46  ;;  %v3408_v34 = vadd.f32 %v3407_v35, %v3406_v7  ;;  %v3329_v46 = vpop.f32.mrf.mxu0 }
 0xa38   :  { %4286 = vpow2.f32 %v3368_v63  ;;  %v3446_v63 = vld [vmem:[%s6625_s11] ss:$2 sm:$0x7] }
 0xa39   :  { %v3184_v36 = vpop.f32.mrf.mxu3  ;;  %v3242_v52 = vpop.f32.mrf.mxu2  ;;  %4288 = vpow2.f32 %v3370_v24  ;;  %v3466_v16 = vperm.slane %v3446_v63, 1 }
 0xa3a   :  { %v3214_v21 = vadd.f32 %v3213_v50, %v3184_v36  ;;  %v3272_v25 = vadd.f32 %v3271_v61, %v3242_v52 }
 0xa3c   :  { %v3353_v13 = vmin.f32 %v3214_v21, 0.0  ;;  %v3354_v53 = vmin.f32 %v3272_v25, 0.0  ;;  %vm3341_vm13 = vcmp.gt.f32.partialorder %v3214_v21, 0.0  ;;  %vm3342_vm2 = vcmp.gt.f32.partialorder %v3272_v25, 0.0 }
 0xa3e   :  { %v3374_v9 = vmul.f32 1.442695, %v3353_v13  ;;  %v3376_v33 = vmul.f32 1.442695, %v3354_v53  ;;  %v4287_v41 = vpop.eup %4286  ;;  %v3465_v13 = vperm.slane %v3446_v63, 0 }
 0xa3f   :  { %v4289_v62 = vpop.eup %4288  ;;  %v3776_v51 = vadd.f32 -1.0, %v4287_v41 }
 0xa40   :  { %4290 = vpow2.f32 %v3374_v9  ;;  %v3777_v31 = vadd.f32 -1.0, %v4289_v62 }
 0xa41   :  { %4292 = vpow2.f32 %v3376_v33  ;;  %v3291_v42 = vpop.f32.mrf.mxu2  ;;  %v3294_v17 = vpop.f32.mrf.mxu3  ;;  %v3398_v10 = vsel %vm3338_vm5, %v6584_v4, %v3776_v51 }
 0xa42   :  { %v3321_v48 = vadd.f32 %v3320_v1, %v3291_v42  ;;  %v3324_v19 = vadd.f32 %v3323_v20, %v3294_v17  ;;  %v3399_v32 = vsel %vm3339_vm3, %v6586_v8, %v3777_v31  ;;  %v3409_v8 = vrot.slane %v3408_v34, 1 }
 0xa43   :  { %v3417_v20 = vadd.f32 %v3416_v11, %v3415_v0 }
 0xa44   :  { %v3346_v60 = vmin.f32 %v3321_v48, 0.0  ;;  %v3349_v59 = vmin.f32 %v3324_v19, 0.0  ;;  %vm3334_vm4 = vcmp.gt.f32.partialorder %v3321_v48, 0.0  ;;  %vm3337_vm0 = vcmp.gt.f32.partialorder %v3324_v19, 0.0 }
 0xa45   :  { %v3410_v2 = vadd.f32 %v3409_v8, %v3408_v34  ;;  %v3450_v58 = vmul.f32 %v3417_v20, %v3417_v20 }
 0xa46   :  { %v4291_v22 = vpop.eup %4290  ;;  %v3360_v37 = vmul.f32 1.442695, %v3346_v60  ;;  %v3366_v44 = vmul.f32 1.442695, %v3349_v59  ;;  %v3467_v60 = vperm.slane %v3446_v63, 2 }
 0xa47   :  { %v4293_v23 = vpop.eup %4292  ;;  %v3779_v49 = vadd.f32 -1.0, %v4291_v22  ;;  %v3471_v17 = vmul.f32 %v3465_v13, %v3410_v2 }
 0xa48   :  { %v3780_v45 = vadd.f32 -1.0, %v4293_v23  ;;  %4294 = vpow2.f32 %v3360_v37 }
 0xa49   :  { %4296 = vpow2.f32 %v3366_v44  ;;  %v3297_v28 = vpop.f32.mrf.mxu3  ;;  %v3401_v50 = vsel %vm3341_vm13, %v3214_v21, %v3779_v49  ;;  %v3475_v23 = vsel %vm3474_vm1, %v3471_v17, 0.0  ;;  %v3512_v17 = vld [vmem:[#allocation2] sm:$0x1] }
 0xa4a   :  { %v6590_v18 = vadd.f32 %v3326_v57, %v3297_v28  ;;  %v3402_v27 = vsel %vm3342_vm2, %v3272_v25, %v3780_v45  ;;  %v3425_v26 = vadd.f32 %v3401_v50, %v3398_v10  ;;  %v3782_v50 = vld [vmem:[%s6625_s11 + $0x1] ss:$2 sm:$0x7]  ;;  %s4370_s11 = smov [#allocation6]  }
 0xa4b   :  { %v3432_v55 = vadd.f32 %v3402_v27, %v3399_v32  ;;  %s3521_s14 = sshll.u32 %s4370_s11, 4  ;;  %s3522_s14 = int_to_ptr.vmem [resolvable:$true] %s3521_s14 }
 0xa4c   :  { %v3352_v12 = vmin.f32 %v6590_v18, 0.0  ;;  %v3426_v61 = vrot.slane %v3425_v26, 4  ;;  %vm3340_vm6 = vcmp.gt.f32.partialorder %v6590_v18, 0.0 }
 0xa4d   :  { %v3433_v38 = vrot.slane %v3432_v55, 4 }
 0xa4e   :  { %v4295_v6 = vpop.eup %4294  ;;  %v3372_v14 = vmul.f32 1.442695, %v3352_v12  ;;  %v3427_v24 = vadd.f32 %v3426_v61, %v3425_v26 }
 0xa4f   :  { %v4297_v1 = vpop.eup %4296  ;;  %v3772_v56 = vadd.f32 -1.0, %v4295_v6  ;;  %v3434_v15 = vadd.f32 %v3433_v38, %v3432_v55  ;;  %v3483_v6 = vperm.slane %v3782_v50, 0 }
 0xa50   :  { %v3775_v47 = vadd.f32 -1.0, %v4297_v1  ;;  %4298 = vpow2.f32 %v3372_v14  ;;  %v3428_v30 = vrot.slane %v3427_v24, 2  ;;  %v3484_v1 = vperm.slane %v3782_v50, 1 }
 0xa51   :  { %v3394_v40 = vsel %vm3334_vm4, %v3321_v48, %v3772_v56  ;;  %v3300_v43 = vpop.f32.mrf.mxu3  ;;  %v3435_v5 = vrot.slane %v3434_v15, 2  ;;  %v3472_v48 = vmul.f32 %v3466_v16, %v3417_v20 }
 0xa52   :  { %v3397_v36 = vsel %vm3337_vm0, %v3324_v19, %v3775_v47  ;;  %v3330_v4 = vadd.f32 %v3329_v46, %v3300_v43  ;;  %v3449_v19 = vmul.f32 %v3410_v2, %v3410_v2  ;;  %v3429_v62 = vadd.f32 %v3428_v30, %v3427_v24 }
 0xa53   :  { %v3418_v52 = vadd.f32 %v3397_v36, %v3394_v40  ;;  %v3436_v22 = vadd.f32 %v3435_v5, %v3434_v15  ;;  %v3476_v7 = vsel %vm3474_vm1, %v3472_v48, 0.0  ;;  %v3485_v43 = vperm.slane %v3782_v50, 2 }
 0xa54   :  { %v3355_v21 = vmin.f32 %v3330_v4, 0.0  ;;  %vm3343_vm7 = vcmp.gt.f32.partialorder %v3330_v4, 0.0  ;;  %v3452_v29 = vadd.f32 %v3450_v58, %v3449_v19  ;;  %v3477_v28 = vadd.f32 %v3476_v7, %v3475_v23 }
 0xa55   :  { %v3419_v25 = vrot.slane %v3418_v52, 4  ;;  %v3430_v35 = vrot.slane %v3429_v62, 1  ;;  %v3437_v3 = vrot.slane %v3436_v22, 1 }
 0xa56   :  { %v3378_v39 = vmul.f32 1.442695, %v3355_v21  ;;  %v4299_v33 = vpop.eup %4298 }
 0xa57   :  { %v3420_v53 = vadd.f32 %v3419_v25, %v3418_v52  ;;  %v3778_v54 = vadd.f32 -1.0, %v4299_v33  ;;  %v3438_v55 = vadd.f32 %v3437_v3, %v3436_v22 }
 0xa58   :  { %4300 = vpow2.f32 %v3378_v39 }
 0xa59   :  { %v3421_v9 = vrot.slane %v3420_v53, 2  ;;  %v3400_v57 = vsel %vm3340_vm6, %v6590_v18, %v3778_v54  ;;  %v3431_v18 = vadd.f32 %v3430_v35, %v3429_v62  ;;  %v3490_v47 = vmul.f32 %v3484_v1, %v3438_v55 }
 0xa5a   :  { %v3457_v40 = vmul.f32 %v3438_v55, %v3438_v55 }
 0xa5b   :  { %v3422_v42 = vadd.f32 %v3421_v9, %v3420_v53  ;;  %v3489_v56 = vmul.f32 %v3483_v6, %v3431_v18  ;;  %v3456_v46 = vmul.f32 %v3431_v18, %v3431_v18  ;;  %v3493_v36 = vsel %vm3474_vm1, %v3490_v47, 0.0 }
 0xa5d   :  { %v3423_v41 = vrot.slane %v3422_v42, 1  ;;  %v3492_v38 = vsel %vm3474_vm1, %v3489_v56, 0.0  ;;  %v3459_v52 = vadd.f32 %v3457_v40, %v3456_v46 }
 0xa5e   :  { %v4301_v59 = vpop.eup %4300  ;;  %v3494_v11 = vadd.f32 %v3493_v36, %v3492_v38 }
 0xa5f   :  { %v3781_v37 = vadd.f32 -1.0, %v4301_v59  ;;  %v3424_v44 = vadd.f32 %v3423_v41, %v3422_v42 }
 0xa61   :  { %v3403_v49 = vsel %vm3343_vm7, %v3330_v4, %v3781_v37  ;;  %v3451_v45 = vmul.f32 %v3424_v44, %v3424_v44  ;;  %v3473_v51 = vmul.f32 %v3467_v60, %v3424_v44 }
 0xa62   :  { %v3439_v31 = vadd.f32 %v3403_v49, %v3400_v57 }
 0xa63   :  { %v3453_v27 = vadd.f32 %v3452_v29, %v3451_v45  ;;  %v3478_v12 = vsel %vm3474_vm1, %v3473_v51, 0.0 }
 0xa64   :  { %v3440_v10 = vrot.slane %v3439_v31, 4  ;;  %v3479_v32 = vadd.f32 %v3478_v12, %v3477_v28 }
 0xa65   :  { %3454 = vadd.xlane.f32.xlu2 %v3453_v27 }
 0xa66   :  { %v3441_v26 = vadd.f32 %v3440_v10, %v3439_v31  ;;  %3480 = vadd.xlane.f32.xlu1 %v3479_v32 }
 0xa68   :  { %v3442_v34 = vrot.slane %v3441_v26, 2 }
 0xa6a   :  { %v3443_v0 = vadd.f32 %v3442_v34, %v3441_v26 }
 0xa6c   :  { %v3444_v14 = vrot.slane %v3443_v0, 1 }
 0xa6e   :  { %v3445_v61 = vadd.f32 %v3444_v14, %v3443_v0 }
 0xa70   :  { %v3458_v4 = vmul.f32 %v3445_v61, %v3445_v61  ;;  %v3491_v8 = vmul.f32 %v3485_v43, %v3445_v61 }
 0xa72   :  { %v3460_v63 = vadd.f32 %v3459_v52, %v3458_v4  ;;  %v3495_v21 = vsel %vm3474_vm1, %v3491_v8, 0.0 }
 0xa73   :  { %v3496_v25 = vadd.f32 %v3495_v21, %v3494_v11 }
 0xa74   :  { %3461 = vadd.xlane.f32.xlu0 %v3460_v63 }
 0xa75   :  { %3497 = vadd.xlane.f32.xlu2 %v3496_v25 }
 0xad8   :  { %v3455_v24 = vpop.xlane.xlu2 %3454 }
 0xad9   :  { %v3481_v30 = vpop.xlane.xlu1 %3480 }
 0xae7   :  { %v3462_v15 = vpop.xlane.xlu0 %3461 }
 0xae8   :  { %v3463_v39 = vadd.f32 %v3462_v15, %v3455_v24  ;;  %v3498_v33 = vpop.xlane.xlu2 %3497 }
 0xae9   :  { %v3499_v42 = vadd.f32 %v3498_v33, %v3481_v30 }
 0xaea   :  { %v3500_v13 = vmax.f32 %v3463_v39, 1e-24 }
 0xaec   :  { %4302 = vrsqrt.f32 %v3500_v13  ;;  %vm3507_vm10 = vweird.f32 %v3500_v13 }
 0xaf2   :  { %v4303_v53 = vpop.eup %4302 }
 0xaf3   :  { %v3502_v2 = vmul.f32 %v4303_v53, %v3500_v13  ;;  %vm3508_vm8 = vweird.f32 %v4303_v53 }
 0xaf4   :  { %vm3509_vm11 = vmor %vm3507_vm10, %vm3508_vm8 }
 0xaf5   :  { %v3503_v20 = vmul.f32 %v4303_v53, %v3502_v2 }
 0xaf7   :  { %v3504_v16 = vmul.f32 0.5, %v3503_v20 }
 0xaf9   :  { %v3505_v9 = vsub.f32 1.5, %v3504_v16 }
 0xafb   :  { %v3506_v5 = vmul.f32 %v4303_v53, %v3505_v9 }
 0xafd   :  { %v3510_v48 = vsel %vm3509_vm11, %v4303_v53, %v3506_v5 }
 0xafe   :  { %v3511_v19 = vmul.f32 %v3510_v48, %v3499_v42 }
 0xb00   :  { %v3513_v58 = vadd.f32 %v3512_v17, %v3511_v19 }
 0xb02   :  { %3515 = vst.msk [vmem:[#allocation6] sm:$0x1] %vm3514_vm9, %v3513_v58 }
 0xb03   :  { %3526 = dma.vmem_to_hbm [thread:$0]  %s3522_s14, 16, %s3524_s4, [#allocation5]  }
 0xb04   :  { %4354 = dma.done.wait [#allocation5], 16  }
 0xb05   :  { %4355 = vsyncadd [#allocation5], 4294967280 }
 0xb06   :  { %3531 = vsyncpa [#allocation4], 1 }
 0xb07   :  { %3532 = vsyncpa [#allocation5], 1 }

</bundles_post_ra>
